<compile_context>
chip_gen: v6e
topology: v6e:2x2x1
jax: 0.10.0
libtpu: 0.0.40
codegen_flags: <defaults>
</compile_context>

<pallas_src>
import math

import jax
import jax.numpy as jnp
from jax import lax
from jax.experimental import pallas as pl
from jax.experimental.pallas import tpu as pltpu

LANE = 128


# ------------------------------ fused kernel ---------------------------------
def make_fused_kernel(dims):
    B = dims['B']; L = dims['L']; Cin = dims['Cin']; K = dims['K']
    L1 = dims['L1']; L2 = dims['L2']; L3 = dims['L3']
    C1 = dims['C1']; C2 = dims['C2']
    Tc = dims['Tc']; Tm = dims['Tm']

    def conv_layer(x2d, wpack, bpack, k, lout):
        # x2d: [Lin, Cin_l]; wpack: [Cin_l, k*128] (tap k lives in lane group k);
        # bpack: [1, 128].  ONE MXU dot per layer, then k aligned slice-adds.
        y = jnp.dot(x2d, wpack, preferred_element_type=jnp.float32)   # [Lin, k*128]
        acc = y[0:lout, 0:LANE]
        for kk in range(1, k):              # lane-group aligned, sublane shift kk
            acc = acc + y[kk:kk + lout, kk * LANE:(kk + 1) * LANE]
        return jnp.maximum(acc + bpack, 0.0)   # [lout, 128]; lanes >= Cout stay 0

    def gru_step(h, gx_t, whh, bhh):
        # h: [B, 128] (lanes >= H are exactly 0); whh: [H, 3*128] gate-slot packed.
        H = whh.shape[0]
        gh = jnp.dot(h[:, 0:H], whh, preferred_element_type=jnp.float32) + bhh  # [B,384]
        r = jax.nn.sigmoid(gx_t[:, 0:LANE] + gh[:, 0:LANE])
        z = jax.nn.sigmoid(gx_t[:, LANE:2 * LANE] + gh[:, LANE:2 * LANE])
        n = jnp.tanh(gx_t[:, 2 * LANE:3 * LANE] + r * gh[:, 2 * LANE:3 * LANE])
        return (1.0 - z) * n + z * h        # padded lanes stay exactly 0

    def kernel(xp_ref, camp_ref, meet_ref, fav_ref,
               cw1_ref, cb1_ref, cw2_ref, cb2_ref, cw3_ref, cb3_ref,
               cwih_ref, cwhh_ref, cbih_ref, cbhh_ref,
               mwih_ref, mwhh_ref, mbih_ref, mbhh_ref,
               wcp_ref, bcp_ref, wcmc_ref, bcmc_ref,
               wfp_ref, wfmc_ref, bfc_ref,
               o_ref,
               pad_ref, hp_ref, gxc_ref, gxm_ref):
        # ---------------- profile branch: 3x (Conv1d + ReLU), channels-last ----
        pad_ref[...] = jnp.zeros((B, L + 4, Cin), jnp.float32)
        pad_ref[:, 2:2 + L, :] = xp_ref[...]          # layer-1 padding=2, in VMEM
        w1 = cw1_ref[...]; b1 = cb1_ref[...]
        w2 = cw2_ref[...]; b2 = cb2_ref[...]
        w3 = cw3_ref[...]; b3 = cb3_ref[...]
        for b in range(B):                            # tiny static batch
            h1 = conv_layer(pad_ref[b], w1, b1, K, L1)          # [L1, 128]
            h2 = conv_layer(h1[:, 0:C1], w2, b2, 2 * K, L2)     # [L2, 128]
            h3 = conv_layer(h2[:, 0:C2], w3, b3, K, L3)         # [L3, 128]
            for l in range(L3):                       # 128-lane ALIGNED stores
                hp_ref[b:b + 1, l * LANE:(l + 1) * LANE] = h3[l:l + 1, :]

        # -------- hoisted GRU input projections (1 packed dot / branch / batch) -
        cwih = cwih_ref[...]; cbih = cbih_ref[...]
        mwih = mwih_ref[...]; mbih = mbih_ref[...]
        for b in range(B):
            gxc_ref[b] = jnp.dot(camp_ref[b], cwih,
                                 preferred_element_type=jnp.float32) + cbih
            gxm_ref[b] = jnp.dot(meet_ref[b], mwih,
                                 preferred_element_type=jnp.float32) + mbih
        gxc = gxc_ref[...]; gxm = gxm_ref[...]        # [B, T, 3*128]

        # -------- interleaved GRU recurrences: one packed dot per step/branch ---
        cwhh = cwhh_ref[...]; cbhh = cbhh_ref[...]
        mwhh = mwhh_ref[...]; mbhh = mbhh_ref[...]
        h_c = jnp.zeros((B, LANE), jnp.float32)
        h_m = jnp.zeros((B, LANE), jnp.float32)
        for t in range(max(Tc, Tm)):                  # static unroll, one basic block
            if t < Tc:
                h_c = gru_step(h_c, gxc[:, t, :], cwhh, cbhh)
            if t < Tm:
                h_m = gru_step(h_m, gxm[:, t, :], mwhh, mbhh)

        # -------------- context add + ReLU + fc, lane-packed segments -----------
        fav = fav_ref[...]                                           # [B, 6]
        ctx_p = jnp.dot(fav, wcp_ref[...],
                        preferred_element_type=jnp.float32) + bcp_ref[...]
        ap = jnp.maximum(hp_ref[...] + ctx_p, 0.0)                   # [B, L3*128]
        h_mc = jnp.concatenate([h_m, h_c], axis=1)                   # [B, 256] meet|camp
        ctx_mc = jnp.dot(fav, wcmc_ref[...],
                         preferred_element_type=jnp.float32) + bcmc_ref[...]
        a_mc = jnp.maximum(h_mc + ctx_mc, 0.0)
        o_ref[...] = (jnp.dot(ap, wfp_ref[...], preferred_element_type=jnp.float32)
                      + jnp.dot(a_mc, wfmc_ref[...], preferred_element_type=jnp.float32)
                      + bfc_ref[...])

    return kernel


# -------------------------- one-time parameter prep --------------------------
def prepare_params(params, cfg, L3):
    """Transform PyTorch-layout params into kernel-ready packed arrays (done once)."""
    P = cfg['out_channel_profile']
    Hc = cfg['hidden_size_campaign']
    Hm = cfg['hidden_size_meeting']
    OUT = cfg['out_channel']
    PL3 = P * L3

    (w1, b1), (w2, b2), (w3, b3) = params['conv']

    def prep_conv_pack(w, b):
        # w: [Cout, Cin, K] -> wpack [Cin, K*128] (tap k in lane slot k), bpack [1,128]
        Cout, Cin, K = w.shape
        wpack = jnp.zeros((Cin, K * LANE), jnp.float32)
        for k in range(K):
            wpack = wpack.at[:, k * LANE:k * LANE + Cout].set(w[:, :, k].T)
        bpack = jnp.zeros((1, LANE), jnp.float32).at[0, :Cout].set(b)
        return wpack, bpack

    def prep_gru_pack(p, H):
        # split gates (r,z,n) into their own 128-lane slots; transpose for x @ W
        wih, whh, bih, bhh = p                        # [3H,I], [3H,H], [3H], [3H]
        I = wih.shape[1]
        wih_p = jnp.zeros((I, 3 * LANE), jnp.float32)
        whh_p = jnp.zeros((H, 3 * LANE), jnp.float32)
        bih_p = jnp.zeros((1, 3 * LANE), jnp.float32)
        bhh_p = jnp.zeros((1, 3 * LANE), jnp.float32)
        for g in range(3):
            wih_p = wih_p.at[:, g * LANE:g * LANE + H].set(wih[g * H:(g + 1) * H, :].T)
            whh_p = whh_p.at[:, g * LANE:g * LANE + H].set(whh[g * H:(g + 1) * H, :].T)
            bih_p = bih_p.at[0, g * LANE:g * LANE + H].set(bih[g * H:(g + 1) * H])
            bhh_p = bhh_p.at[0, g * LANE:g * LANE + H].set(bhh[g * H:(g + 1) * H])
        return wih_p, whh_p, bih_p, bhh_p

    cw1, cb1 = prep_conv_pack(w1, b1)
    cw2, cb2 = prep_conv_pack(w2, b2)
    cw3, cb3 = prep_conv_pack(w3, b3)
    gru_c = prep_gru_pack(params['gru_campaign'], Hc)
    gru_m = prep_gru_pack(params['gru_meeting'], Hm)

    wctx, bctx = params['ctx']               # [lin_in, 6], [lin_in]
    wfc, bfc = params['fc']                  # [OUT, lin_in], [OUT]

    # Profile segment.  PyTorch flatten order is (p, l); the kernel stores length
    # position l in lane slot l (lanes [l*128, l*128+P)).  Re-lay-out once here.
    wcp3 = jnp.zeros((6, L3, LANE), jnp.float32)
    wcp3 = wcp3.at[:, :, :P].set(wctx[:PL3].reshape(P, L3, 6).transpose(2, 1, 0))
    wcp = wcp3.reshape(6, L3 * LANE)                               # [6, L3*128]
    bcp3 = jnp.zeros((L3, LANE), jnp.float32).at[:, :P].set(bctx[:PL3].reshape(P, L3).T)
    bcp = bcp3.reshape(1, L3 * LANE)                               # [1, L3*128]
    wfp3 = jnp.zeros((L3, LANE, OUT), jnp.float32)
    wfp3 = wfp3.at[:, :P, :].set(wfc[:, :PL3].reshape(OUT, P, L3).transpose(2, 1, 0))
    wfp = wfp3.reshape(L3 * LANE, OUT)                             # [L3*128, OUT]

    # Meeting + campaign packed into adjacent 128-lane slots: [meet | camp]
    wcmc = jnp.zeros((6, 2 * LANE), jnp.float32)
    wcmc = wcmc.at[:, :Hm].set(wctx[PL3:PL3 + Hm].T)
    wcmc = wcmc.at[:, LANE:LANE + Hc].set(wctx[PL3 + Hm:].T)
    bcmc = jnp.zeros((1, 2 * LANE), jnp.float32)
    bcmc = bcmc.at[0, :Hm].set(bctx[PL3:PL3 + Hm])
    bcmc = bcmc.at[0, LANE:LANE + Hc].set(bctx[PL3 + Hm:])
    wfmc = jnp.zeros((2 * LANE, OUT), jnp.float32)
    wfmc = wfmc.at[:Hm, :].set(wfc[:, PL3:PL3 + Hm].T)
    wfmc = wfmc.at[LANE:LANE + Hc, :].set(wfc[:, PL3 + Hm:].T)
    bfc_row = bfc[None, :]                                         # [1, OUT]

    return (cw1, cb1, cw2, cb2, cw3, cb3,
            *gru_c, *gru_m,
            wcp, bcp, wcmc, bcmc, wfp, wfmc, bfc_row)


# ------------------------------ fused forward --------------------------------
def fused_forward(prepped, inputs, cfg, L1, L2, L3):
    cust_profile, campaign_hist, meeting_hist, fav = inputs
    B, L, Cin = cust_profile.shape
    _, Tc, Ic = campaign_hist.shape
    _, Tm, Im = meeting_hist.shape
    K = cfg['kernel_size']
    P = cfg['out_channel_profile']
    Hc = cfg['hidden_size_campaign']
    Hm = cfg['hidden_size_meeting']
    OUT = cfg['out_channel']
    C1, C2 = Cin // 2, Cin // 2 // 2
    lin_in = P * L3 + Hm + Hc

    dims = dict(B=B, L=L, Cin=Cin, K=K, L1=L1, L2=L2, L3=L3,
                C1=C1, C2=C2, Tc=Tc, Tm=Tm)

    args = (cust_profile, campaign_hist, meeting_hist, fav) + tuple(prepped)

    flops = 2 * B * (L1 * K * Cin * C1 + L2 * 2 * K * C1 * C2 + L3 * K * C2 * P
                     + Tc * (Ic + Hc) * 3 * Hc + Tm * (Im + Hm) * 3 * Hm
                     + 6 * lin_in + lin_in * OUT)
    transcendentals = 3 * B * (Tc * Hc + Tm * Hm)
    bytes_accessed = 4 * (sum(int(a.size) for a in args) + B * OUT)

    scratch = [
        pltpu.VMEM((B, L + 4, Cin), jnp.float32),     # padded conv input
        pltpu.VMEM((B, L3 * LANE), jnp.float32),      # lane-flat profile features
        pltpu.VMEM((B, Tc, 3 * LANE), jnp.float32),   # campaign gate-packed x-proj
        pltpu.VMEM((B, Tm, 3 * LANE), jnp.float32),   # meeting  gate-packed x-proj
    ]

    return pl.pallas_call(
        make_fused_kernel(dims),
        out_shape=jax.ShapeDtypeStruct((B, OUT), jnp.float32),
        in_specs=[pl.BlockSpec(memory_space=pltpu.MemorySpace.VMEM) for _ in args],
        out_specs=pl.BlockSpec(memory_space=pltpu.MemorySpace.VMEM),
        scratch_shapes=scratch,
        cost_estimate=pl.CostEstimate(flops=flops, transcendentals=transcendentals,
                                      bytes_accessed=bytes_accessed),
    )(*args)


# ----------------------------- parameter init --------------------------------
def init_params(key, cfg):
    Cin = cfg['in_channels_profile']
    C1, C2 = Cin // 2, Cin // 2 // 2
    P = cfg['out_channel_profile']
    K = cfg['kernel_size']
    Hc, Hm = cfg['hidden_size_campaign'], cfg['hidden_size_meeting']
    Ic, Im = cfg['in_channels_campaign'], cfg['in_channels_meeting']
    L3 = cfg['profile_hist_len'] + 2 - (2 * K - 1) - (K - 1)
    lin_in = Hc + Hm + P * L3
    out = cfg['out_channel']
    keys = jax.random.split(key, 18)

    def xavier(k, shape, fan_in, fan_out):
        std = math.sqrt(2.0 / (fan_in + fan_out))
        return (std * jax.random.normal(k, shape)).astype(jnp.float32)

    def uni(k, shape, bound):
        return jax.random.uniform(k, shape, jnp.float32, -bound, bound)

    w1 = xavier(keys[0], (C1, Cin, K), Cin * K, C1 * K)
    b1 = uni(keys[1], (C1,), 1.0 / math.sqrt(Cin * K))
    w2 = xavier(keys[2], (C2, C1, 2 * K), C1 * 2 * K, C2 * 2 * K)
    b2 = uni(keys[3], (C2,), 1.0 / math.sqrt(C1 * 2 * K))
    w3 = xavier(keys[4], (P, C2, K), C2 * K, P * K)
    b3 = uni(keys[5], (P,), 1.0 / math.sqrt(C2 * K))

    def gru_p(ks, I, H):
        bound = 1.0 / math.sqrt(H)
        return (uni(ks[0], (3 * H, I), bound), uni(ks[1], (3 * H, H), bound),
                uni(ks[2], (3 * H,), bound), uni(ks[3], (3 * H,), bound))

    gru_c = gru_p(keys[6:10], Ic, Hc)
    gru_m = gru_p(keys[10:14], Im, Hm)
    wctx = xavier(keys[14], (lin_in, 6), 6, lin_in)
    bctx = uni(keys[15], (lin_in,), 1.0 / math.sqrt(6))
    wfc = xavier(keys[16], (out, lin_in), lin_in, out)
    bfc = uni(keys[17], (out,), 1.0 / math.sqrt(lin_in))
    return {'conv': ((w1, b1), (w2, b2), (w3, b3)),
            'gru_campaign': gru_c, 'gru_meeting': gru_m,
            'ctx': (wctx, bctx), 'fc': (wfc, bfc)}, L3


# ------------------------- plain-JAX reference (check) -----------------------
def ref_forward(params, inputs, cfg):
    cust_profile, campaign_hist, meeting_hist, fav = inputs
    x = jnp.transpose(cust_profile, (0, 2, 1))

    def conv1d(x, w, b, pad):
        y = lax.conv_general_dilated(x, w, window_strides=(1,), padding=[(pad, pad)],
                                     dimension_numbers=('NCH', 'OIH', 'NCH'))
        return jax.nn.relu(y + b[None, :, None])

    (w1, b1), (w2, b2), (w3, b3) = params['conv']
    h = conv1d(x, w1, b1, 2)
    h = conv1d(h, w2, b2, 0)
    h = conv1d(h, w3, b3, 0)
    hp = h.reshape(h.shape[0], -1)

    def gru(x, p, H):
        wih, whh, bih, bhh = p
        B, T, _ = x.shape
        hs = jnp.zeros((B, H), jnp.float32)
        for t in range(T):
            gx = x[:, t, :] @ wih.T + bih
            gh = hs @ whh.T + bhh
            r = jax.nn.sigmoid(gx[:, :H] + gh[:, :H])
            z = jax.nn.sigmoid(gx[:, H:2 * H] + gh[:, H:2 * H])
            n = jnp.tanh(gx[:, 2 * H:] + r * gh[:, 2 * H:])
            hs = (1 - z) * n + z * hs
        return hs

    hc = gru(campaign_hist, params['gru_campaign'], cfg['hidden_size_campaign'])
    hm = gru(meeting_hist, params['gru_meeting'], cfg['hidden_size_meeting'])
    wctx, bctx = params['ctx']
    ctx = fav @ wctx.T + bctx
    h_c = jnp.concatenate([hp, hm, hc], axis=1) + ctx
    h = jax.nn.relu(h_c)
    wfc, bfc = params['fc']
    return h @ wfc.T + bfc


if __name__ == "__main__":
    cfg = dict(in_channels_profile=8, in_channels_campaign=4, in_channels_meeting=3,
               profile_hist_len=16, out_channel_profile=10, hidden_size_campaign=10,
               hidden_size_meeting=5, out_channel=3, kernel_size=3)
    B, Tc, Tm = 2, 8, 6
    L1 = cfg['profile_hist_len'] + 2 * 2 - (cfg['kernel_size'] - 1)      # 18
    L2 = L1 - (2 * cfg['kernel_size'] - 1)                               # 13
    L3 = L2 - (cfg['kernel_size'] - 1)                                   # 11

    key = jax.random.PRNGKey(0)
    kparam, k1, k2, k3, k4 = jax.random.split(key, 5)
    params, _L3 = init_params(kparam, cfg)
    assert _L3 == L3

    cust_profile = jax.random.normal(
        k1, (B, cfg['profile_hist_len'], cfg['in_channels_profile']), jnp.float32)
    campaign_hist = jax.random.normal(k2, (B, Tc, cfg['in_channels_campaign']), jnp.float32)
    meeting_hist = jax.random.normal(k3, (B, Tm, cfg['in_channels_meeting']), jnp.float32)
    fav = jax.random.normal(k4, (B, 6), jnp.float32)
    inputs = (cust_profile, campaign_hist, meeting_hist, fav)

    prepped = prepare_params(params, cfg, L3)   # one-time, off the hot path
    out = fused_forward(prepped, inputs, cfg, L1, L2, L3)
    out = jax.block_until_ready(out)

    ref = ref_forward(params, inputs, cfg)
    assert out.shape == (B, cfg['out_channel'])
    assert jnp.allclose(out, ref, atol=2e-4, rtol=2e-4)
    # TODO(synk): Dropout is a no-op in eval/forward here (module's dropout arg is unused).
    print("KERNEL_OK")
</pallas_src>

<mosaic_0001>
module attributes {stable_mosaic.version = 11 : i64} {
  func.func @kernel(%arg0: memref<2x16x8xf32, #tpu.memory_space<vmem>>, %arg1: memref<2x8x4xf32, #tpu.memory_space<vmem>>, %arg2: memref<2x6x3xf32, #tpu.memory_space<vmem>>, %arg3: memref<2x6xf32, #tpu.memory_space<vmem>>, %arg4: memref<8x384xf32, #tpu.memory_space<vmem>>, %arg5: memref<1x128xf32, #tpu.memory_space<vmem>>, %arg6: memref<4x768xf32, #tpu.memory_space<vmem>>, %arg7: memref<1x128xf32, #tpu.memory_space<vmem>>, %arg8: memref<2x384xf32, #tpu.memory_space<vmem>>, %arg9: memref<1x128xf32, #tpu.memory_space<vmem>>, %arg10: memref<4x384xf32, #tpu.memory_space<vmem>>, %arg11: memref<10x384xf32, #tpu.memory_space<vmem>>, %arg12: memref<1x384xf32, #tpu.memory_space<vmem>>, %arg13: memref<1x384xf32, #tpu.memory_space<vmem>>, %arg14: memref<3x384xf32, #tpu.memory_space<vmem>>, %arg15: memref<5x384xf32, #tpu.memory_space<vmem>>, %arg16: memref<1x384xf32, #tpu.memory_space<vmem>>, %arg17: memref<1x384xf32, #tpu.memory_space<vmem>>, %arg18: memref<6x1408xf32, #tpu.memory_space<vmem>>, %arg19: memref<1x1408xf32, #tpu.memory_space<vmem>>, %arg20: memref<6x256xf32, #tpu.memory_space<vmem>>, %arg21: memref<1x256xf32, #tpu.memory_space<vmem>>, %arg22: memref<1408x3xf32, #tpu.memory_space<vmem>>, %arg23: memref<256x3xf32, #tpu.memory_space<vmem>>, %arg24: memref<1x3xf32, #tpu.memory_space<vmem>>, %arg25: memref<2x3xf32, #tpu.memory_space<vmem>>, %arg26: memref<2x20x8xf32, #tpu.memory_space<vmem>>, %arg27: memref<2x1408xf32, #tpu.memory_space<vmem>>, %arg28: memref<2x8x384xf32, #tpu.memory_space<vmem>>, %arg29: memref<2x6x384xf32, #tpu.memory_space<vmem>>) attributes {dimension_semantics = [], scalar_prefetch = 0 : i64, scratch_operands = 4 : i64, tpu.core_type = #tpu.core_type<tc>} {
    %cst = arith.constant 0.000000e+00 : f32
    %0 = vector.broadcast %cst : f32 to vector<2x20x8xf32>
    %c0 = arith.constant 0 : index
    %c0_0 = arith.constant 0 : index
    %c0_1 = arith.constant 0 : index
    %1 = vector.load %arg26[%c0, %c0_0, %c0_1] : memref<2x20x8xf32, #tpu.memory_space<vmem>>, vector<2x20x8xf32>
    tpu.vector_store %arg26[%c0, %c0_0, %c0_1], %0 {strides = array<i32>} : memref<2x20x8xf32, #tpu.memory_space<vmem>>, vector<2x20x8xf32>,
    %c0_2 = arith.constant 0 : index
    %c0_3 = arith.constant 0 : index
    %c0_4 = arith.constant 0 : index
    %2 = vector.load %arg0[%c0_2, %c0_3, %c0_4] : memref<2x16x8xf32, #tpu.memory_space<vmem>>, vector<2x16x8xf32>
    %c0_5 = arith.constant 0 : index
    %c2 = arith.constant 2 : index
    %c0_6 = arith.constant 0 : index
    %3 = vector.load %arg26[%c0_5, %c2, %c0_6] : memref<2x20x8xf32, #tpu.memory_space<vmem>>, vector<2x16x8xf32>
    tpu.vector_store %arg26[%c0_5, %c2, %c0_6], %2 {strides = array<i32>} : memref<2x20x8xf32, #tpu.memory_space<vmem>>, vector<2x16x8xf32>,
    %c0_7 = arith.constant 0 : index
    %c0_8 = arith.constant 0 : index
    %4 = vector.load %arg4[%c0_7, %c0_8] : memref<8x384xf32, #tpu.memory_space<vmem>>, vector<8x384xf32>
    %c0_9 = arith.constant 0 : index
    %c0_10 = arith.constant 0 : index
    %5 = vector.load %arg5[%c0_9, %c0_10] : memref<1x128xf32, #tpu.memory_space<vmem>>, vector<1x128xf32>
    %c0_11 = arith.constant 0 : index
    %c0_12 = arith.constant 0 : index
    %6 = vector.load %arg6[%c0_11, %c0_12] : memref<4x768xf32, #tpu.memory_space<vmem>>, vector<4x768xf32>
    %c0_13 = arith.constant 0 : index
    %c0_14 = arith.constant 0 : index
    %7 = vector.load %arg7[%c0_13, %c0_14] : memref<1x128xf32, #tpu.memory_space<vmem>>, vector<1x128xf32>
    %c0_15 = arith.constant 0 : index
    %c0_16 = arith.constant 0 : index
    %8 = vector.load %arg8[%c0_15, %c0_16] : memref<2x384xf32, #tpu.memory_space<vmem>>, vector<2x384xf32>
    %c0_17 = arith.constant 0 : index
    %c0_18 = arith.constant 0 : index
    %9 = vector.load %arg9[%c0_17, %c0_18] : memref<1x128xf32, #tpu.memory_space<vmem>>, vector<1x128xf32>
    %c0_19 = arith.constant 0 : index
    %c0_20 = arith.constant 0 : index
    %c0_21 = arith.constant 0 : index
    %10 = vector.load %arg26[%c0_19, %c0_20, %c0_21] : memref<2x20x8xf32, #tpu.memory_space<vmem>>, vector<1x20x8xf32>
    %11 = vector.shape_cast %10 : vector<1x20x8xf32> to vector<20x8xf32>
    %cst_22 = arith.constant dense<0.000000e+00> : vector<20x384xf32>
    %12 = tpu.matmul %11, %4, %cst_22 {dimension_numbers = #tpu.dot_dimension_numbers<[1], [0], [0], [1], [0, 0, 1, 1], [], []>} : vector<20x8xf32>, vector<8x384xf32>, vector<20x384xf32> -> vector<20x384xf32>
    %13 = vector.extract_strided_slice %12 {offsets = [0, 0], sizes = [18, 128], strides = [1, 1]} : vector<20x384xf32> to vector<18x128xf32>
    %14 = vector.extract_strided_slice %12 {offsets = [1, 128], sizes = [18, 128], strides = [1, 1]} : vector<20x384xf32> to vector<18x128xf32>
    %15 = arith.addf %13, %14 : vector<18x128xf32>
    %16 = vector.extract_strided_slice %12 {offsets = [2, 256], sizes = [18, 128], strides = [1, 1]} : vector<20x384xf32> to vector<18x128xf32>
    %17 = arith.addf %15, %16 : vector<18x128xf32>
    %18 = vector.broadcast %5 : vector<1x128xf32> to vector<18x128xf32>
    %19 = arith.addf %17, %18 : vector<18x128xf32>
    %cst_23 = arith.constant 0.000000e+00 : f32
    %20 = vector.broadcast %cst_23 : f32 to vector<18x128xf32>
    %21 = arith.maximumf %19, %20 : vector<18x128xf32>
    %22 = vector.extract_strided_slice %21 {offsets = [0, 0], sizes = [18, 4], strides = [1, 1]} : vector<18x128xf32> to vector<18x4xf32>
    %cst_24 = arith.constant dense<0.000000e+00> : vector<18x768xf32>
    %23 = tpu.matmul %22, %6, %cst_24 {dimension_numbers = #tpu.dot_dimension_numbers<[1], [0], [0], [1], [0, 0, 1, 1], [], []>} : vector<18x4xf32>, vector<4x768xf32>, vector<18x768xf32> -> vector<18x768xf32>
    %24 = vector.extract_strided_slice %23 {offsets = [0, 0], sizes = [13, 128], strides = [1, 1]} : vector<18x768xf32> to vector<13x128xf32>
    %25 = vector.extract_strided_slice %23 {offsets = [1, 128], sizes = [13, 128], strides = [1, 1]} : vector<18x768xf32> to vector<13x128xf32>
    %26 = arith.addf %24, %25 : vector<13x128xf32>
    %27 = vector.extract_strided_slice %23 {offsets = [2, 256], sizes = [13, 128], strides = [1, 1]} : vector<18x768xf32> to vector<13x128xf32>
    %28 = arith.addf %26, %27 : vector<13x128xf32>
    %29 = vector.extract_strided_slice %23 {offsets = [3, 384], sizes = [13, 128], strides = [1, 1]} : vector<18x768xf32> to vector<13x128xf32>
    %30 = arith.addf %28, %29 : vector<13x128xf32>
    %31 = vector.extract_strided_slice %23 {offsets = [4, 512], sizes = [13, 128], strides = [1, 1]} : vector<18x768xf32> to vector<13x128xf32>
    %32 = arith.addf %30, %31 : vector<13x128xf32>
    %33 = vector.extract_strided_slice %23 {offsets = [5, 640], sizes = [13, 128], strides = [1, 1]} : vector<18x768xf32> to vector<13x128xf32>
    %34 = arith.addf %32, %33 : vector<13x128xf32>
    %35 = vector.broadcast %7 : vector<1x128xf32> to vector<13x128xf32>
    %36 = arith.addf %34, %35 : vector<13x128xf32>
    %cst_25 = arith.constant 0.000000e+00 : f32
    %37 = vector.broadcast %cst_25 : f32 to vector<13x128xf32>
    %38 = arith.maximumf %36, %37 : vector<13x128xf32>
    %39 = vector.extract_strided_slice %38 {offsets = [0, 0], sizes = [13, 2], strides = [1, 1]} : vector<13x128xf32> to vector<13x2xf32>
    %cst_26 = arith.constant dense<0.000000e+00> : vector<13x384xf32>
    %40 = tpu.matmul %39, %8, %cst_26 {dimension_numbers = #tpu.dot_dimension_numbers<[1], [0], [0], [1], [0, 0, 1, 1], [], []>} : vector<13x2xf32>, vector<2x384xf32>, vector<13x384xf32> -> vector<13x384xf32>
    %41 = vector.extract_strided_slice %40 {offsets = [0, 0], sizes = [11, 128], strides = [1, 1]} : vector<13x384xf32> to vector<11x128xf32>
    %42 = vector.extract_strided_slice %40 {offsets = [1, 128], sizes = [11, 128], strides = [1, 1]} : vector<13x384xf32> to vector<11x128xf32>
    %43 = arith.addf %41, %42 : vector<11x128xf32>
    %44 = vector.extract_strided_slice %40 {offsets = [2, 256], sizes = [11, 128], strides = [1, 1]} : vector<13x384xf32> to vector<11x128xf32>
    %45 = arith.addf %43, %44 : vector<11x128xf32>
    %46 = vector.broadcast %9 : vector<1x128xf32> to vector<11x128xf32>
    %47 = arith.addf %45, %46 : vector<11x128xf32>
    %cst_27 = arith.constant 0.000000e+00 : f32
    %48 = vector.broadcast %cst_27 : f32 to vector<11x128xf32>
    %49 = arith.maximumf %47, %48 : vector<11x128xf32>
    %50 = vector.extract_strided_slice %49 {offsets = [0, 0], sizes = [1, 128], strides = [1, 1]} : vector<11x128xf32> to vector<1x128xf32>
    %c0_28 = arith.constant 0 : index
    %c0_29 = arith.constant 0 : index
    %51 = vector.load %arg27[%c0_28, %c0_29] : memref<2x1408xf32, #tpu.memory_space<vmem>>, vector<1x128xf32>
    tpu.vector_store %arg27[%c0_28, %c0_29], %50 {strides = array<i32>} : memref<2x1408xf32, #tpu.memory_space<vmem>>, vector<1x128xf32>,
    %52 = vector.extract_strided_slice %49 {offsets = [1, 0], sizes = [1, 128], strides = [1, 1]} : vector<11x128xf32> to vector<1x128xf32>
    %c0_30 = arith.constant 0 : index
    %c128 = arith.constant 128 : index
    %53 = vector.load %arg27[%c0_30, %c128] : memref<2x1408xf32, #tpu.memory_space<vmem>>, vector<1x128xf32>
    tpu.vector_store %arg27[%c0_30, %c128], %52 {strides = array<i32>} : memref<2x1408xf32, #tpu.memory_space<vmem>>, vector<1x128xf32>,
    %54 = vector.extract_strided_slice %49 {offsets = [2, 0], sizes = [1, 128], strides = [1, 1]} : vector<11x128xf32> to vector<1x128xf32>
    %c0_31 = arith.constant 0 : index
    %c256 = arith.constant 256 : index
    %55 = vector.load %arg27[%c0_31, %c256] : memref<2x1408xf32, #tpu.memory_space<vmem>>, vector<1x128xf32>
    tpu.vector_store %arg27[%c0_31, %c256], %54 {strides = array<i32>} : memref<2x1408xf32, #tpu.memory_space<vmem>>, vector<1x128xf32>,
    %56 = vector.extract_strided_slice %49 {offsets = [3, 0], sizes = [1, 128], strides = [1, 1]} : vector<11x128xf32> to vector<1x128xf32>
    %c0_32 = arith.constant 0 : index
    %c384 = arith.constant 384 : index
    %57 = vector.load %arg27[%c0_32, %c384] : memref<2x1408xf32, #tpu.memory_space<vmem>>, vector<1x128xf32>
    tpu.vector_store %arg27[%c0_32, %c384], %56 {strides = array<i32>} : memref<2x1408xf32, #tpu.memory_space<vmem>>, vector<1x128xf32>,
    %58 = vector.extract_strided_slice %49 {offsets = [4, 0], sizes = [1, 128], strides = [1, 1]} : vector<11x128xf32> to vector<1x128xf32>
    %c0_33 = arith.constant 0 : index
    %c512 = arith.constant 512 : index
    %59 = vector.load %arg27[%c0_33, %c512] : memref<2x1408xf32, #tpu.memory_space<vmem>>, vector<1x128xf32>
    tpu.vector_store %arg27[%c0_33, %c512], %58 {strides = array<i32>} : memref<2x1408xf32, #tpu.memory_space<vmem>>, vector<1x128xf32>,
    %60 = vector.extract_strided_slice %49 {offsets = [5, 0], sizes = [1, 128], strides = [1, 1]} : vector<11x128xf32> to vector<1x128xf32>
    %c0_34 = arith.constant 0 : index
    %c640 = arith.constant 640 : index
    %61 = vector.load %arg27[%c0_34, %c640] : memref<2x1408xf32, #tpu.memory_space<vmem>>, vector<1x128xf32>
    tpu.vector_store %arg27[%c0_34, %c640], %60 {strides = array<i32>} : memref<2x1408xf32, #tpu.memory_space<vmem>>, vector<1x128xf32>,
    %62 = vector.extract_strided_slice %49 {offsets = [6, 0], sizes = [1, 128], strides = [1, 1]} : vector<11x128xf32> to vector<1x128xf32>
    %c0_35 = arith.constant 0 : index
    %c768 = arith.constant 768 : index
    %63 = vector.load %arg27[%c0_35, %c768] : memref<2x1408xf32, #tpu.memory_space<vmem>>, vector<1x128xf32>
    tpu.vector_store %arg27[%c0_35, %c768], %62 {strides = array<i32>} : memref<2x1408xf32, #tpu.memory_space<vmem>>, vector<1x128xf32>,
    %64 = vector.extract_strided_slice %49 {offsets = [7, 0], sizes = [1, 128], strides = [1, 1]} : vector<11x128xf32> to vector<1x128xf32>
    %c0_36 = arith.constant 0 : index
    %c896 = arith.constant 896 : index
    %65 = vector.load %arg27[%c0_36, %c896] : memref<2x1408xf32, #tpu.memory_space<vmem>>, vector<1x128xf32>
    tpu.vector_store %arg27[%c0_36, %c896], %64 {strides = array<i32>} : memref<2x1408xf32, #tpu.memory_space<vmem>>, vector<1x128xf32>,
    %66 = vector.extract_strided_slice %49 {offsets = [8, 0], sizes = [1, 128], strides = [1, 1]} : vector<11x128xf32> to vector<1x128xf32>
    %c0_37 = arith.constant 0 : index
    %c1024 = arith.constant 1024 : index
    %67 = vector.load %arg27[%c0_37, %c1024] : memref<2x1408xf32, #tpu.memory_space<vmem>>, vector<1x128xf32>
    tpu.vector_store %arg27[%c0_37, %c1024], %66 {strides = array<i32>} : memref<2x1408xf32, #tpu.memory_space<vmem>>, vector<1x128xf32>,
    %68 = vector.extract_strided_slice %49 {offsets = [9, 0], sizes = [1, 128], strides = [1, 1]} : vector<11x128xf32> to vector<1x128xf32>
    %c0_38 = arith.constant 0 : index
    %c1152 = arith.constant 1152 : index
    %69 = vector.load %arg27[%c0_38, %c1152] : memref<2x1408xf32, #tpu.memory_space<vmem>>, vector<1x128xf32>
    tpu.vector_store %arg27[%c0_38, %c1152], %68 {strides = array<i32>} : memref<2x1408xf32, #tpu.memory_space<vmem>>, vector<1x128xf32>,
    %70 = vector.extract_strided_slice %49 {offsets = [10, 0], sizes = [1, 128], strides = [1, 1]} : vector<11x128xf32> to vector<1x128xf32>
    %c0_39 = arith.constant 0 : index
    %c1280 = arith.constant 1280 : index
    %71 = vector.load %arg27[%c0_39, %c1280] : memref<2x1408xf32, #tpu.memory_space<vmem>>, vector<1x128xf32>
    tpu.vector_store %arg27[%c0_39, %c1280], %70 {strides = array<i32>} : memref<2x1408xf32, #tpu.memory_space<vmem>>, vector<1x128xf32>,
    %c1 = arith.constant 1 : index
    %c0_40 = arith.constant 0 : index
    %c0_41 = arith.constant 0 : index
    %72 = vector.load %arg26[%c1, %c0_40, %c0_41] : memref<2x20x8xf32, #tpu.memory_space<vmem>>, vector<1x20x8xf32>
    %73 = vector.shape_cast %72 : vector<1x20x8xf32> to vector<20x8xf32>
    %cst_42 = arith.constant dense<0.000000e+00> : vector<20x384xf32>
    %74 = tpu.matmul %73, %4, %cst_42 {dimension_numbers = #tpu.dot_dimension_numbers<[1], [0], [0], [1], [0, 0, 1, 1], [], []>} : vector<20x8xf32>, vector<8x384xf32>, vector<20x384xf32> -> vector<20x384xf32>
    %75 = vector.extract_strided_slice %74 {offsets = [0, 0], sizes = [18, 128], strides = [1, 1]} : vector<20x384xf32> to vector<18x128xf32>
    %76 = vector.extract_strided_slice %74 {offsets = [1, 128], sizes = [18, 128], strides = [1, 1]} : vector<20x384xf32> to vector<18x128xf32>
    %77 = arith.addf %75, %76 : vector<18x128xf32>
    %78 = vector.extract_strided_slice %74 {offsets = [2, 256], sizes = [18, 128], strides = [1, 1]} : vector<20x384xf32> to vector<18x128xf32>
    %79 = arith.addf %77, %78 : vector<18x128xf32>
    %80 = vector.broadcast %5 : vector<1x128xf32> to vector<18x128xf32>
    %81 = arith.addf %79, %80 : vector<18x128xf32>
    %cst_43 = arith.constant 0.000000e+00 : f32
    %82 = vector.broadcast %cst_43 : f32 to vector<18x128xf32>
    %83 = arith.maximumf %81, %82 : vector<18x128xf32>
    %84 = vector.extract_strided_slice %83 {offsets = [0, 0], sizes = [18, 4], strides = [1, 1]} : vector<18x128xf32> to vector<18x4xf32>
    %cst_44 = arith.constant dense<0.000000e+00> : vector<18x768xf32>
    %85 = tpu.matmul %84, %6, %cst_44 {dimension_numbers = #tpu.dot_dimension_numbers<[1], [0], [0], [1], [0, 0, 1, 1], [], []>} : vector<18x4xf32>, vector<4x768xf32>, vector<18x768xf32> -> vector<18x768xf32>
    %86 = vector.extract_strided_slice %85 {offsets = [0, 0], sizes = [13, 128], strides = [1, 1]} : vector<18x768xf32> to vector<13x128xf32>
    %87 = vector.extract_strided_slice %85 {offsets = [1, 128], sizes = [13, 128], strides = [1, 1]} : vector<18x768xf32> to vector<13x128xf32>
    %88 = arith.addf %86, %87 : vector<13x128xf32>
    %89 = vector.extract_strided_slice %85 {offsets = [2, 256], sizes = [13, 128], strides = [1, 1]} : vector<18x768xf32> to vector<13x128xf32>
    %90 = arith.addf %88, %89 : vector<13x128xf32>
    %91 = vector.extract_strided_slice %85 {offsets = [3, 384], sizes = [13, 128], strides = [1, 1]} : vector<18x768xf32> to vector<13x128xf32>
    %92 = arith.addf %90, %91 : vector<13x128xf32>
    %93 = vector.extract_strided_slice %85 {offsets = [4, 512], sizes = [13, 128], strides = [1, 1]} : vector<18x768xf32> to vector<13x128xf32>
    %94 = arith.addf %92, %93 : vector<13x128xf32>
    %95 = vector.extract_strided_slice %85 {offsets = [5, 640], sizes = [13, 128], strides = [1, 1]} : vector<18x768xf32> to vector<13x128xf32>
    %96 = arith.addf %94, %95 : vector<13x128xf32>
    %97 = vector.broadcast %7 : vector<1x128xf32> to vector<13x128xf32>
    %98 = arith.addf %96, %97 : vector<13x128xf32>
    %cst_45 = arith.constant 0.000000e+00 : f32
    %99 = vector.broadcast %cst_45 : f32 to vector<13x128xf32>
    %100 = arith.maximumf %98, %99 : vector<13x128xf32>
    %101 = vector.extract_strided_slice %100 {offsets = [0, 0], sizes = [13, 2], strides = [1, 1]} : vector<13x128xf32> to vector<13x2xf32>
    %cst_46 = arith.constant dense<0.000000e+00> : vector<13x384xf32>
    %102 = tpu.matmul %101, %8, %cst_46 {dimension_numbers = #tpu.dot_dimension_numbers<[1], [0], [0], [1], [0, 0, 1, 1], [], []>} : vector<13x2xf32>, vector<2x384xf32>, vector<13x384xf32> -> vector<13x384xf32>
    %103 = vector.extract_strided_slice %102 {offsets = [0, 0], sizes = [11, 128], strides = [1, 1]} : vector<13x384xf32> to vector<11x128xf32>
    %104 = vector.extract_strided_slice %102 {offsets = [1, 128], sizes = [11, 128], strides = [1, 1]} : vector<13x384xf32> to vector<11x128xf32>
    %105 = arith.addf %103, %104 : vector<11x128xf32>
    %106 = vector.extract_strided_slice %102 {offsets = [2, 256], sizes = [11, 128], strides = [1, 1]} : vector<13x384xf32> to vector<11x128xf32>
    %107 = arith.addf %105, %106 : vector<11x128xf32>
    %108 = vector.broadcast %9 : vector<1x128xf32> to vector<11x128xf32>
    %109 = arith.addf %107, %108 : vector<11x128xf32>
    %cst_47 = arith.constant 0.000000e+00 : f32
    %110 = vector.broadcast %cst_47 : f32 to vector<11x128xf32>
    %111 = arith.maximumf %109, %110 : vector<11x128xf32>
    %112 = vector.extract_strided_slice %111 {offsets = [0, 0], sizes = [1, 128], strides = [1, 1]} : vector<11x128xf32> to vector<1x128xf32>
    %c1_48 = arith.constant 1 : index
    %c0_49 = arith.constant 0 : index
    %113 = vector.load %arg27[%c1_48, %c0_49] : memref<2x1408xf32, #tpu.memory_space<vmem>>, vector<1x128xf32>
    tpu.vector_store %arg27[%c1_48, %c0_49], %112 {strides = array<i32>} : memref<2x1408xf32, #tpu.memory_space<vmem>>, vector<1x128xf32>,
    %114 = vector.extract_strided_slice %111 {offsets = [1, 0], sizes = [1, 128], strides = [1, 1]} : vector<11x128xf32> to vector<1x128xf32>
    %c1_50 = arith.constant 1 : index
    %c128_51 = arith.constant 128 : index
    %115 = vector.load %arg27[%c1_50, %c128_51] : memref<2x1408xf32, #tpu.memory_space<vmem>>, vector<1x128xf32>
    tpu.vector_store %arg27[%c1_50, %c128_51], %114 {strides = array<i32>} : memref<2x1408xf32, #tpu.memory_space<vmem>>, vector<1x128xf32>,
    %116 = vector.extract_strided_slice %111 {offsets = [2, 0], sizes = [1, 128], strides = [1, 1]} : vector<11x128xf32> to vector<1x128xf32>
    %c1_52 = arith.constant 1 : index
    %c256_53 = arith.constant 256 : index
    %117 = vector.load %arg27[%c1_52, %c256_53] : memref<2x1408xf32, #tpu.memory_space<vmem>>, vector<1x128xf32>
    tpu.vector_store %arg27[%c1_52, %c256_53], %116 {strides = array<i32>} : memref<2x1408xf32, #tpu.memory_space<vmem>>, vector<1x128xf32>,
    %118 = vector.extract_strided_slice %111 {offsets = [3, 0], sizes = [1, 128], strides = [1, 1]} : vector<11x128xf32> to vector<1x128xf32>
    %c1_54 = arith.constant 1 : index
    %c384_55 = arith.constant 384 : index
    %119 = vector.load %arg27[%c1_54, %c384_55] : memref<2x1408xf32, #tpu.memory_space<vmem>>, vector<1x128xf32>
    tpu.vector_store %arg27[%c1_54, %c384_55], %118 {strides = array<i32>} : memref<2x1408xf32, #tpu.memory_space<vmem>>, vector<1x128xf32>,
    %120 = vector.extract_strided_slice %111 {offsets = [4, 0], sizes = [1, 128], strides = [1, 1]} : vector<11x128xf32> to vector<1x128xf32>
    %c1_56 = arith.constant 1 : index
    %c512_57 = arith.constant 512 : index
    %121 = vector.load %arg27[%c1_56, %c512_57] : memref<2x1408xf32, #tpu.memory_space<vmem>>, vector<1x128xf32>
    tpu.vector_store %arg27[%c1_56, %c512_57], %120 {strides = array<i32>} : memref<2x1408xf32, #tpu.memory_space<vmem>>, vector<1x128xf32>,
    %122 = vector.extract_strided_slice %111 {offsets = [5, 0], sizes = [1, 128], strides = [1, 1]} : vector<11x128xf32> to vector<1x128xf32>
    %c1_58 = arith.constant 1 : index
    %c640_59 = arith.constant 640 : index
    %123 = vector.load %arg27[%c1_58, %c640_59] : memref<2x1408xf32, #tpu.memory_space<vmem>>, vector<1x128xf32>
    tpu.vector_store %arg27[%c1_58, %c640_59], %122 {strides = array<i32>} : memref<2x1408xf32, #tpu.memory_space<vmem>>, vector<1x128xf32>,
    %124 = vector.extract_strided_slice %111 {offsets = [6, 0], sizes = [1, 128], strides = [1, 1]} : vector<11x128xf32> to vector<1x128xf32>
    %c1_60 = arith.constant 1 : index
    %c768_61 = arith.constant 768 : index
    %125 = vector.load %arg27[%c1_60, %c768_61] : memref<2x1408xf32, #tpu.memory_space<vmem>>, vector<1x128xf32>
    tpu.vector_store %arg27[%c1_60, %c768_61], %124 {strides = array<i32>} : memref<2x1408xf32, #tpu.memory_space<vmem>>, vector<1x128xf32>,
    %126 = vector.extract_strided_slice %111 {offsets = [7, 0], sizes = [1, 128], strides = [1, 1]} : vector<11x128xf32> to vector<1x128xf32>
    %c1_62 = arith.constant 1 : index
    %c896_63 = arith.constant 896 : index
    %127 = vector.load %arg27[%c1_62, %c896_63] : memref<2x1408xf32, #tpu.memory_space<vmem>>, vector<1x128xf32>
    tpu.vector_store %arg27[%c1_62, %c896_63], %126 {strides = array<i32>} : memref<2x1408xf32, #tpu.memory_space<vmem>>, vector<1x128xf32>,
    %128 = vector.extract_strided_slice %111 {offsets = [8, 0], sizes = [1, 128], strides = [1, 1]} : vector<11x128xf32> to vector<1x128xf32>
    %c1_64 = arith.constant 1 : index
    %c1024_65 = arith.constant 1024 : index
    %129 = vector.load %arg27[%c1_64, %c1024_65] : memref<2x1408xf32, #tpu.memory_space<vmem>>, vector<1x128xf32>
    tpu.vector_store %arg27[%c1_64, %c1024_65], %128 {strides = array<i32>} : memref<2x1408xf32, #tpu.memory_space<vmem>>, vector<1x128xf32>,
    %130 = vector.extract_strided_slice %111 {offsets = [9, 0], sizes = [1, 128], strides = [1, 1]} : vector<11x128xf32> to vector<1x128xf32>
    %c1_66 = arith.constant 1 : index
    %c1152_67 = arith.constant 1152 : index
    %131 = vector.load %arg27[%c1_66, %c1152_67] : memref<2x1408xf32, #tpu.memory_space<vmem>>, vector<1x128xf32>
    tpu.vector_store %arg27[%c1_66, %c1152_67], %130 {strides = array<i32>} : memref<2x1408xf32, #tpu.memory_space<vmem>>, vector<1x128xf32>,
    %132 = vector.extract_strided_slice %111 {offsets = [10, 0], sizes = [1, 128], strides = [1, 1]} : vector<11x128xf32> to vector<1x128xf32>
    %c1_68 = arith.constant 1 : index
    %c1280_69 = arith.constant 1280 : index
    %133 = vector.load %arg27[%c1_68, %c1280_69] : memref<2x1408xf32, #tpu.memory_space<vmem>>, vector<1x128xf32>
    tpu.vector_store %arg27[%c1_68, %c1280_69], %132 {strides = array<i32>} : memref<2x1408xf32, #tpu.memory_space<vmem>>, vector<1x128xf32>,
    %c0_70 = arith.constant 0 : index
    %c0_71 = arith.constant 0 : index
    %134 = vector.load %arg10[%c0_70, %c0_71] : memref<4x384xf32, #tpu.memory_space<vmem>>, vector<4x384xf32>
    %c0_72 = arith.constant 0 : index
    %c0_73 = arith.constant 0 : index
    %135 = vector.load %arg12[%c0_72, %c0_73] : memref<1x384xf32, #tpu.memory_space<vmem>>, vector<1x384xf32>
    %c0_74 = arith.constant 0 : index
    %c0_75 = arith.constant 0 : index
    %136 = vector.load %arg14[%c0_74, %c0_75] : memref<3x384xf32, #tpu.memory_space<vmem>>, vector<3x384xf32>
    %c0_76 = arith.constant 0 : index
    %c0_77 = arith.constant 0 : index
    %137 = vector.load %arg16[%c0_76, %c0_77] : memref<1x384xf32, #tpu.memory_space<vmem>>, vector<1x384xf32>
    %c0_78 = arith.constant 0 : index
    %c0_79 = arith.constant 0 : index
    %c0_80 = arith.constant 0 : index
    %138 = vector.load %arg1[%c0_78, %c0_79, %c0_80] : memref<2x8x4xf32, #tpu.memory_space<vmem>>, vector<1x8x4xf32>
    %139 = vector.shape_cast %138 : vector<1x8x4xf32> to vector<8x4xf32>
    %cst_81 = arith.constant dense<0.000000e+00> : vector<8x384xf32>
    %140 = tpu.matmul %139, %134, %cst_81 {dimension_numbers = #tpu.dot_dimension_numbers<[1], [0], [0], [1], [0, 0, 1, 1], [], []>} : vector<8x4xf32>, vector<4x384xf32>, vector<8x384xf32> -> vector<8x384xf32>
    %141 = vector.broadcast %135 : vector<1x384xf32> to vector<8x384xf32>
    %142 = arith.addf %140, %141 : vector<8x384xf32>
    %c0_82 = arith.constant 0 : index
    %c0_83 = arith.constant 0 : index
    %c0_84 = arith.constant 0 : index
    %143 = vector.load %arg28[%c0_82, %c0_83, %c0_84] : memref<2x8x384xf32, #tpu.memory_space<vmem>>, vector<1x8x384xf32>
    %144 = vector.shape_cast %143 : vector<1x8x384xf32> to vector<8x384xf32>
    %145 = vector.shape_cast %142 : vector<8x384xf32> to vector<1x8x384xf32>
    tpu.vector_store %arg28[%c0_82, %c0_83, %c0_84], %145 {strides = array<i32>} : memref<2x8x384xf32, #tpu.memory_space<vmem>>, vector<1x8x384xf32>,
    %c0_85 = arith.constant 0 : index
    %c0_86 = arith.constant 0 : index
    %c0_87 = arith.constant 0 : index
    %146 = vector.load %arg2[%c0_85, %c0_86, %c0_87] : memref<2x6x3xf32, #tpu.memory_space<vmem>>, vector<1x6x3xf32>
    %147 = vector.shape_cast %146 : vector<1x6x3xf32> to vector<6x3xf32>
    %cst_88 = arith.constant dense<0.000000e+00> : vector<6x384xf32>
    %148 = tpu.matmul %147, %136, %cst_88 {dimension_numbers = #tpu.dot_dimension_numbers<[1], [0], [0], [1], [0, 0, 1, 1], [], []>} : vector<6x3xf32>, vector<3x384xf32>, vector<6x384xf32> -> vector<6x384xf32>
    %149 = vector.broadcast %137 : vector<1x384xf32> to vector<6x384xf32>
    %150 = arith.addf %148, %149 : vector<6x384xf32>
    %c0_89 = arith.constant 0 : index
    %c0_90 = arith.constant 0 : index
    %c0_91 = arith.constant 0 : index
    %151 = vector.load %arg29[%c0_89, %c0_90, %c0_91] : memref<2x6x384xf32, #tpu.memory_space<vmem>>, vector<1x6x384xf32>
    %152 = vector.shape_cast %151 : vector<1x6x384xf32> to vector<6x384xf32>
    %153 = vector.shape_cast %150 : vector<6x384xf32> to vector<1x6x384xf32>
    tpu.vector_store %arg29[%c0_89, %c0_90, %c0_91], %153 {strides = array<i32>} : memref<2x6x384xf32, #tpu.memory_space<vmem>>, vector<1x6x384xf32>,
    %c1_92 = arith.constant 1 : index
    %c0_93 = arith.constant 0 : index
    %c0_94 = arith.constant 0 : index
    %154 = vector.load %arg1[%c1_92, %c0_93, %c0_94] : memref<2x8x4xf32, #tpu.memory_space<vmem>>, vector<1x8x4xf32>
    %155 = vector.shape_cast %154 : vector<1x8x4xf32> to vector<8x4xf32>
    %cst_95 = arith.constant dense<0.000000e+00> : vector<8x384xf32>
    %156 = tpu.matmul %155, %134, %cst_95 {dimension_numbers = #tpu.dot_dimension_numbers<[1], [0], [0], [1], [0, 0, 1, 1], [], []>} : vector<8x4xf32>, vector<4x384xf32>, vector<8x384xf32> -> vector<8x384xf32>
    %157 = vector.broadcast %135 : vector<1x384xf32> to vector<8x384xf32>
    %158 = arith.addf %156, %157 : vector<8x384xf32>
    %c1_96 = arith.constant 1 : index
    %c0_97 = arith.constant 0 : index
    %c0_98 = arith.constant 0 : index
    %159 = vector.load %arg28[%c1_96, %c0_97, %c0_98] : memref<2x8x384xf32, #tpu.memory_space<vmem>>, vector<1x8x384xf32>
    %160 = vector.shape_cast %159 : vector<1x8x384xf32> to vector<8x384xf32>
    %161 = vector.shape_cast %158 : vector<8x384xf32> to vector<1x8x384xf32>
    tpu.vector_store %arg28[%c1_96, %c0_97, %c0_98], %161 {strides = array<i32>} : memref<2x8x384xf32, #tpu.memory_space<vmem>>, vector<1x8x384xf32>,
    %c1_99 = arith.constant 1 : index
    %c0_100 = arith.constant 0 : index
    %c0_101 = arith.constant 0 : index
    %162 = vector.load %arg2[%c1_99, %c0_100, %c0_101] : memref<2x6x3xf32, #tpu.memory_space<vmem>>, vector<1x6x3xf32>
    %163 = vector.shape_cast %162 : vector<1x6x3xf32> to vector<6x3xf32>
    %cst_102 = arith.constant dense<0.000000e+00> : vector<6x384xf32>
    %164 = tpu.matmul %163, %136, %cst_102 {dimension_numbers = #tpu.dot_dimension_numbers<[1], [0], [0], [1], [0, 0, 1, 1], [], []>} : vector<6x3xf32>, vector<3x384xf32>, vector<6x384xf32> -> vector<6x384xf32>
    %165 = vector.broadcast %137 : vector<1x384xf32> to vector<6x384xf32>
    %166 = arith.addf %164, %165 : vector<6x384xf32>
    %c1_103 = arith.constant 1 : index
    %c0_104 = arith.constant 0 : index
    %c0_105 = arith.constant 0 : index
    %167 = vector.load %arg29[%c1_103, %c0_104, %c0_105] : memref<2x6x384xf32, #tpu.memory_space<vmem>>, vector<1x6x384xf32>
    %168 = vector.shape_cast %167 : vector<1x6x384xf32> to vector<6x384xf32>
    %169 = vector.shape_cast %166 : vector<6x384xf32> to vector<1x6x384xf32>
    tpu.vector_store %arg29[%c1_103, %c0_104, %c0_105], %169 {strides = array<i32>} : memref<2x6x384xf32, #tpu.memory_space<vmem>>, vector<1x6x384xf32>,
    %c0_106 = arith.constant 0 : index
    %c0_107 = arith.constant 0 : index
    %c0_108 = arith.constant 0 : index
    %170 = vector.load %arg28[%c0_106, %c0_107, %c0_108] : memref<2x8x384xf32, #tpu.memory_space<vmem>>, vector<2x8x384xf32>
    %c0_109 = arith.constant 0 : index
    %c0_110 = arith.constant 0 : index
    %c0_111 = arith.constant 0 : index
    %171 = vector.load %arg29[%c0_109, %c0_110, %c0_111] : memref<2x6x384xf32, #tpu.memory_space<vmem>>, vector<2x6x384xf32>
    %c0_112 = arith.constant 0 : index
    %c0_113 = arith.constant 0 : index
    %172 = vector.load %arg11[%c0_112, %c0_113] : memref<10x384xf32, #tpu.memory_space<vmem>>, vector<10x384xf32>
    %c0_114 = arith.constant 0 : index
    %c0_115 = arith.constant 0 : index
    %173 = vector.load %arg13[%c0_114, %c0_115] : memref<1x384xf32, #tpu.memory_space<vmem>>, vector<1x384xf32>
    %c0_116 = arith.constant 0 : index
    %c0_117 = arith.constant 0 : index
    %174 = vector.load %arg15[%c0_116, %c0_117] : memref<5x384xf32, #tpu.memory_space<vmem>>, vector<5x384xf32>
    %c0_118 = arith.constant 0 : index
    %c0_119 = arith.constant 0 : index
    %175 = vector.load %arg17[%c0_118, %c0_119] : memref<1x384xf32, #tpu.memory_space<vmem>>, vector<1x384xf32>
    %cst_120 = arith.constant 0.000000e+00 : f32
    %176 = vector.broadcast %cst_120 : f32 to vector<2x128xf32>
    %cst_121 = arith.constant 0.000000e+00 : f32
    %177 = vector.broadcast %cst_121 : f32 to vector<2x128xf32>
    %178 = vector.extract_strided_slice %170 {offsets = [0, 0, 0], sizes = [2, 1, 384], strides = [1, 1, 1]} : vector<2x8x384xf32> to vector<2x1x384xf32>
    %179 = vector.shape_cast %178 : vector<2x1x384xf32> to vector<2x384xf32>
    %180 = vector.extract_strided_slice %176 {offsets = [0, 0], sizes = [2, 10], strides = [1, 1]} : vector<2x128xf32> to vector<2x10xf32>
    %cst_122 = arith.constant dense<0.000000e+00> : vector<2x384xf32>
    %181 = tpu.matmul %180, %172, %cst_122 {dimension_numbers = #tpu.dot_dimension_numbers<[1], [0], [0], [1], [0, 0, 1, 1], [], []>} : vector<2x10xf32>, vector<10x384xf32>, vector<2x384xf32> -> vector<2x384xf32>
    %182 = vector.broadcast %173 : vector<1x384xf32> to vector<2x384xf32>
    %183 = arith.addf %181, %182 : vector<2x384xf32>
    %184 = vector.extract_strided_slice %179 {offsets = [0, 0], sizes = [2, 128], strides = [1, 1]} : vector<2x384xf32> to vector<2x128xf32>
    %185 = vector.extract_strided_slice %183 {offsets = [0, 0], sizes = [2, 128], strides = [1, 1]} : vector<2x384xf32> to vector<2x128xf32>
    %186 = arith.addf %184, %185 : vector<2x128xf32>
    %187 = arith.negf %186 : vector<2x128xf32>
    %188 = math.exp %187 : vector<2x128xf32>
    %cst_123 = arith.constant 1.000000e+00 : f32
    %189 = vector.broadcast %cst_123 : f32 to vector<2x128xf32>
    %190 = arith.addf %189, %188 : vector<2x128xf32>
    %191 = arith.divf %189, %190 : vector<2x128xf32>
    %192 = vector.extract_strided_slice %179 {offsets = [0, 128], sizes = [2, 128], strides = [1, 1]} : vector<2x384xf32> to vector<2x128xf32>
    %193 = vector.extract_strided_slice %183 {offsets = [0, 128], sizes = [2, 128], strides = [1, 1]} : vector<2x384xf32> to vector<2x128xf32>
    %194 = arith.addf %192, %193 : vector<2x128xf32>
    %195 = arith.negf %194 : vector<2x128xf32>
    %196 = math.exp %195 : vector<2x128xf32>
    %cst_124 = arith.constant 1.000000e+00 : f32
    %197 = vector.broadcast %cst_124 : f32 to vector<2x128xf32>
    %198 = arith.addf %197, %196 : vector<2x128xf32>
    %199 = arith.divf %197, %198 : vector<2x128xf32>
    %200 = vector.extract_strided_slice %179 {offsets = [0, 256], sizes = [2, 128], strides = [1, 1]} : vector<2x384xf32> to vector<2x128xf32>
    %201 = vector.extract_strided_slice %183 {offsets = [0, 256], sizes = [2, 128], strides = [1, 1]} : vector<2x384xf32> to vector<2x128xf32>
    %202 = arith.mulf %191, %201 : vector<2x128xf32>
    %203 = arith.addf %200, %202 : vector<2x128xf32>
    %204 = math.tanh %203 : vector<2x128xf32>
    %cst_125 = arith.constant 1.000000e+00 : f32
    %205 = vector.broadcast %cst_125 : f32 to vector<2x128xf32>
    %206 = arith.subf %205, %199 : vector<2x128xf32>
    %207 = arith.mulf %206, %204 : vector<2x128xf32>
    %208 = arith.mulf %199, %176 : vector<2x128xf32>
    %209 = arith.addf %207, %208 : vector<2x128xf32>
    %210 = vector.extract_strided_slice %171 {offsets = [0, 0, 0], sizes = [2, 1, 384], strides = [1, 1, 1]} : vector<2x6x384xf32> to vector<2x1x384xf32>
    %211 = vector.shape_cast %210 : vector<2x1x384xf32> to vector<2x384xf32>
    %212 = vector.extract_strided_slice %177 {offsets = [0, 0], sizes = [2, 5], strides = [1, 1]} : vector<2x128xf32> to vector<2x5xf32>
    %cst_126 = arith.constant dense<0.000000e+00> : vector<2x384xf32>
    %213 = tpu.matmul %212, %174, %cst_126 {dimension_numbers = #tpu.dot_dimension_numbers<[1], [0], [0], [1], [0, 0, 1, 1], [], []>} : vector<2x5xf32>, vector<5x384xf32>, vector<2x384xf32> -> vector<2x384xf32>
    %214 = vector.broadcast %175 : vector<1x384xf32> to vector<2x384xf32>
    %215 = arith.addf %213, %214 : vector<2x384xf32>
    %216 = vector.extract_strided_slice %211 {offsets = [0, 0], sizes = [2, 128], strides = [1, 1]} : vector<2x384xf32> to vector<2x128xf32>
    %217 = vector.extract_strided_slice %215 {offsets = [0, 0], sizes = [2, 128], strides = [1, 1]} : vector<2x384xf32> to vector<2x128xf32>
    %218 = arith.addf %216, %217 : vector<2x128xf32>
    %219 = arith.negf %218 : vector<2x128xf32>
    %220 = math.exp %219 : vector<2x128xf32>
    %cst_127 = arith.constant 1.000000e+00 : f32
    %221 = vector.broadcast %cst_127 : f32 to vector<2x128xf32>
    %222 = arith.addf %221, %220 : vector<2x128xf32>
    %223 = arith.divf %221, %222 : vector<2x128xf32>
    %224 = vector.extract_strided_slice %211 {offsets = [0, 128], sizes = [2, 128], strides = [1, 1]} : vector<2x384xf32> to vector<2x128xf32>
    %225 = vector.extract_strided_slice %215 {offsets = [0, 128], sizes = [2, 128], strides = [1, 1]} : vector<2x384xf32> to vector<2x128xf32>
    %226 = arith.addf %224, %225 : vector<2x128xf32>
    %227 = arith.negf %226 : vector<2x128xf32>
    %228 = math.exp %227 : vector<2x128xf32>
    %cst_128 = arith.constant 1.000000e+00 : f32
    %229 = vector.broadcast %cst_128 : f32 to vector<2x128xf32>
    %230 = arith.addf %229, %228 : vector<2x128xf32>
    %231 = arith.divf %229, %230 : vector<2x128xf32>
    %232 = vector.extract_strided_slice %211 {offsets = [0, 256], sizes = [2, 128], strides = [1, 1]} : vector<2x384xf32> to vector<2x128xf32>
    %233 = vector.extract_strided_slice %215 {offsets = [0, 256], sizes = [2, 128], strides = [1, 1]} : vector<2x384xf32> to vector<2x128xf32>
    %234 = arith.mulf %223, %233 : vector<2x128xf32>
    %235 = arith.addf %232, %234 : vector<2x128xf32>
    %236 = math.tanh %235 : vector<2x128xf32>
    %cst_129 = arith.constant 1.000000e+00 : f32
    %237 = vector.broadcast %cst_129 : f32 to vector<2x128xf32>
    %238 = arith.subf %237, %231 : vector<2x128xf32>
    %239 = arith.mulf %238, %236 : vector<2x128xf32>
    %240 = arith.mulf %231, %177 : vector<2x128xf32>
    %241 = arith.addf %239, %240 : vector<2x128xf32>
    %242 = vector.extract_strided_slice %170 {offsets = [0, 1, 0], sizes = [2, 1, 384], strides = [1, 1, 1]} : vector<2x8x384xf32> to vector<2x1x384xf32>
    %243 = vector.shape_cast %242 : vector<2x1x384xf32> to vector<2x384xf32>
    %244 = vector.extract_strided_slice %209 {offsets = [0, 0], sizes = [2, 10], strides = [1, 1]} : vector<2x128xf32> to vector<2x10xf32>
    %cst_130 = arith.constant dense<0.000000e+00> : vector<2x384xf32>
    %245 = tpu.matmul %244, %172, %cst_130 {dimension_numbers = #tpu.dot_dimension_numbers<[1], [0], [0], [1], [0, 0, 1, 1], [], []>} : vector<2x10xf32>, vector<10x384xf32>, vector<2x384xf32> -> vector<2x384xf32>
    %246 = vector.broadcast %173 : vector<1x384xf32> to vector<2x384xf32>
    %247 = arith.addf %245, %246 : vector<2x384xf32>
    %248 = vector.extract_strided_slice %243 {offsets = [0, 0], sizes = [2, 128], strides = [1, 1]} : vector<2x384xf32> to vector<2x128xf32>
    %249 = vector.extract_strided_slice %247 {offsets = [0, 0], sizes = [2, 128], strides = [1, 1]} : vector<2x384xf32> to vector<2x128xf32>
    %250 = arith.addf %248, %249 : vector<2x128xf32>
    %251 = arith.negf %250 : vector<2x128xf32>
    %252 = math.exp %251 : vector<2x128xf32>
    %cst_131 = arith.constant 1.000000e+00 : f32
    %253 = vector.broadcast %cst_131 : f32 to vector<2x128xf32>
    %254 = arith.addf %253, %252 : vector<2x128xf32>
    %255 = arith.divf %253, %254 : vector<2x128xf32>
    %256 = vector.extract_strided_slice %243 {offsets = [0, 128], sizes = [2, 128], strides = [1, 1]} : vector<2x384xf32> to vector<2x128xf32>
    %257 = vector.extract_strided_slice %247 {offsets = [0, 128], sizes = [2, 128], strides = [1, 1]} : vector<2x384xf32> to vector<2x128xf32>
    %258 = arith.addf %256, %257 : vector<2x128xf32>
    %259 = arith.negf %258 : vector<2x128xf32>
    %260 = math.exp %259 : vector<2x128xf32>
    %cst_132 = arith.constant 1.000000e+00 : f32
    %261 = vector.broadcast %cst_132 : f32 to vector<2x128xf32>
    %262 = arith.addf %261, %260 : vector<2x128xf32>
    %263 = arith.divf %261, %262 : vector<2x128xf32>
    %264 = vector.extract_strided_slice %243 {offsets = [0, 256], sizes = [2, 128], strides = [1, 1]} : vector<2x384xf32> to vector<2x128xf32>
    %265 = vector.extract_strided_slice %247 {offsets = [0, 256], sizes = [2, 128], strides = [1, 1]} : vector<2x384xf32> to vector<2x128xf32>
    %266 = arith.mulf %255, %265 : vector<2x128xf32>
    %267 = arith.addf %264, %266 : vector<2x128xf32>
    %268 = math.tanh %267 : vector<2x128xf32>
    %cst_133 = arith.constant 1.000000e+00 : f32
    %269 = vector.broadcast %cst_133 : f32 to vector<2x128xf32>
    %270 = arith.subf %269, %263 : vector<2x128xf32>
    %271 = arith.mulf %270, %268 : vector<2x128xf32>
    %272 = arith.mulf %263, %209 : vector<2x128xf32>
    %273 = arith.addf %271, %272 : vector<2x128xf32>
    %274 = vector.extract_strided_slice %171 {offsets = [0, 1, 0], sizes = [2, 1, 384], strides = [1, 1, 1]} : vector<2x6x384xf32> to vector<2x1x384xf32>
    %275 = vector.shape_cast %274 : vector<2x1x384xf32> to vector<2x384xf32>
    %276 = vector.extract_strided_slice %241 {offsets = [0, 0], sizes = [2, 5], strides = [1, 1]} : vector<2x128xf32> to vector<2x5xf32>
    %cst_134 = arith.constant dense<0.000000e+00> : vector<2x384xf32>
    %277 = tpu.matmul %276, %174, %cst_134 {dimension_numbers = #tpu.dot_dimension_numbers<[1], [0], [0], [1], [0, 0, 1, 1], [], []>} : vector<2x5xf32>, vector<5x384xf32>, vector<2x384xf32> -> vector<2x384xf32>
    %278 = vector.broadcast %175 : vector<1x384xf32> to vector<2x384xf32>
    %279 = arith.addf %277, %278 : vector<2x384xf32>
    %280 = vector.extract_strided_slice %275 {offsets = [0, 0], sizes = [2, 128], strides = [1, 1]} : vector<2x384xf32> to vector<2x128xf32>
    %281 = vector.extract_strided_slice %279 {offsets = [0, 0], sizes = [2, 128], strides = [1, 1]} : vector<2x384xf32> to vector<2x128xf32>
    %282 = arith.addf %280, %281 : vector<2x128xf32>
    %283 = arith.negf %282 : vector<2x128xf32>
    %284 = math.exp %283 : vector<2x128xf32>
    %cst_135 = arith.constant 1.000000e+00 : f32
    %285 = vector.broadcast %cst_135 : f32 to vector<2x128xf32>
    %286 = arith.addf %285, %284 : vector<2x128xf32>
    %287 = arith.divf %285, %286 : vector<2x128xf32>
    %288 = vector.extract_strided_slice %275 {offsets = [0, 128], sizes = [2, 128], strides = [1, 1]} : vector<2x384xf32> to vector<2x128xf32>
    %289 = vector.extract_strided_slice %279 {offsets = [0, 128], sizes = [2, 128], strides = [1, 1]} : vector<2x384xf32> to vector<2x128xf32>
    %290 = arith.addf %288, %289 : vector<2x128xf32>
    %291 = arith.negf %290 : vector<2x128xf32>
    %292 = math.exp %291 : vector<2x128xf32>
    %cst_136 = arith.constant 1.000000e+00 : f32
    %293 = vector.broadcast %cst_136 : f32 to vector<2x128xf32>
    %294 = arith.addf %293, %292 : vector<2x128xf32>
    %295 = arith.divf %293, %294 : vector<2x128xf32>
    %296 = vector.extract_strided_slice %275 {offsets = [0, 256], sizes = [2, 128], strides = [1, 1]} : vector<2x384xf32> to vector<2x128xf32>
    %297 = vector.extract_strided_slice %279 {offsets = [0, 256], sizes = [2, 128], strides = [1, 1]} : vector<2x384xf32> to vector<2x128xf32>
    %298 = arith.mulf %287, %297 : vector<2x128xf32>
    %299 = arith.addf %296, %298 : vector<2x128xf32>
    %300 = math.tanh %299 : vector<2x128xf32>
    %cst_137 = arith.constant 1.000000e+00 : f32
    %301 = vector.broadcast %cst_137 : f32 to vector<2x128xf32>
    %302 = arith.subf %301, %295 : vector<2x128xf32>
    %303 = arith.mulf %302, %300 : vector<2x128xf32>
    %304 = arith.mulf %295, %241 : vector<2x128xf32>
    %305 = arith.addf %303, %304 : vector<2x128xf32>
    %306 = vector.extract_strided_slice %170 {offsets = [0, 2, 0], sizes = [2, 1, 384], strides = [1, 1, 1]} : vector<2x8x384xf32> to vector<2x1x384xf32>
    %307 = vector.shape_cast %306 : vector<2x1x384xf32> to vector<2x384xf32>
    %308 = vector.extract_strided_slice %273 {offsets = [0, 0], sizes = [2, 10], strides = [1, 1]} : vector<2x128xf32> to vector<2x10xf32>
    %cst_138 = arith.constant dense<0.000000e+00> : vector<2x384xf32>
    %309 = tpu.matmul %308, %172, %cst_138 {dimension_numbers = #tpu.dot_dimension_numbers<[1], [0], [0], [1], [0, 0, 1, 1], [], []>} : vector<2x10xf32>, vector<10x384xf32>, vector<2x384xf32> -> vector<2x384xf32>
    %310 = vector.broadcast %173 : vector<1x384xf32> to vector<2x384xf32>
    %311 = arith.addf %309, %310 : vector<2x384xf32>
    %312 = vector.extract_strided_slice %307 {offsets = [0, 0], sizes = [2, 128], strides = [1, 1]} : vector<2x384xf32> to vector<2x128xf32>
    %313 = vector.extract_strided_slice %311 {offsets = [0, 0], sizes = [2, 128], strides = [1, 1]} : vector<2x384xf32> to vector<2x128xf32>
    %314 = arith.addf %312, %313 : vector<2x128xf32>
    %315 = arith.negf %314 : vector<2x128xf32>
    %316 = math.exp %315 : vector<2x128xf32>
    %cst_139 = arith.constant 1.000000e+00 : f32
    %317 = vector.broadcast %cst_139 : f32 to vector<2x128xf32>
    %318 = arith.addf %317, %316 : vector<2x128xf32>
    %319 = arith.divf %317, %318 : vector<2x128xf32>
    %320 = vector.extract_strided_slice %307 {offsets = [0, 128], sizes = [2, 128], strides = [1, 1]} : vector<2x384xf32> to vector<2x128xf32>
    %321 = vector.extract_strided_slice %311 {offsets = [0, 128], sizes = [2, 128], strides = [1, 1]} : vector<2x384xf32> to vector<2x128xf32>
    %322 = arith.addf %320, %321 : vector<2x128xf32>
    %323 = arith.negf %322 : vector<2x128xf32>
    %324 = math.exp %323 : vector<2x128xf32>
    %cst_140 = arith.constant 1.000000e+00 : f32
    %325 = vector.broadcast %cst_140 : f32 to vector<2x128xf32>
    %326 = arith.addf %325, %324 : vector<2x128xf32>
    %327 = arith.divf %325, %326 : vector<2x128xf32>
    %328 = vector.extract_strided_slice %307 {offsets = [0, 256], sizes = [2, 128], strides = [1, 1]} : vector<2x384xf32> to vector<2x128xf32>
    %329 = vector.extract_strided_slice %311 {offsets = [0, 256], sizes = [2, 128], strides = [1, 1]} : vector<2x384xf32> to vector<2x128xf32>
    %330 = arith.mulf %319, %329 : vector<2x128xf32>
    %331 = arith.addf %328, %330 : vector<2x128xf32>
    %332 = math.tanh %331 : vector<2x128xf32>
    %cst_141 = arith.constant 1.000000e+00 : f32
    %333 = vector.broadcast %cst_141 : f32 to vector<2x128xf32>
    %334 = arith.subf %333, %327 : vector<2x128xf32>
    %335 = arith.mulf %334, %332 : vector<2x128xf32>
    %336 = arith.mulf %327, %273 : vector<2x128xf32>
    %337 = arith.addf %335, %336 : vector<2x128xf32>
    %338 = vector.extract_strided_slice %171 {offsets = [0, 2, 0], sizes = [2, 1, 384], strides = [1, 1, 1]} : vector<2x6x384xf32> to vector<2x1x384xf32>
    %339 = vector.shape_cast %338 : vector<2x1x384xf32> to vector<2x384xf32>
    %340 = vector.extract_strided_slice %305 {offsets = [0, 0], sizes = [2, 5], strides = [1, 1]} : vector<2x128xf32> to vector<2x5xf32>
    %cst_142 = arith.constant dense<0.000000e+00> : vector<2x384xf32>
    %341 = tpu.matmul %340, %174, %cst_142 {dimension_numbers = #tpu.dot_dimension_numbers<[1], [0], [0], [1], [0, 0, 1, 1], [], []>} : vector<2x5xf32>, vector<5x384xf32>, vector<2x384xf32> -> vector<2x384xf32>
    %342 = vector.broadcast %175 : vector<1x384xf32> to vector<2x384xf32>
    %343 = arith.addf %341, %342 : vector<2x384xf32>
    %344 = vector.extract_strided_slice %339 {offsets = [0, 0], sizes = [2, 128], strides = [1, 1]} : vector<2x384xf32> to vector<2x128xf32>
    %345 = vector.extract_strided_slice %343 {offsets = [0, 0], sizes = [2, 128], strides = [1, 1]} : vector<2x384xf32> to vector<2x128xf32>
    %346 = arith.addf %344, %345 : vector<2x128xf32>
    %347 = arith.negf %346 : vector<2x128xf32>
    %348 = math.exp %347 : vector<2x128xf32>
    %cst_143 = arith.constant 1.000000e+00 : f32
    %349 = vector.broadcast %cst_143 : f32 to vector<2x128xf32>
    %350 = arith.addf %349, %348 : vector<2x128xf32>
    %351 = arith.divf %349, %350 : vector<2x128xf32>
    %352 = vector.extract_strided_slice %339 {offsets = [0, 128], sizes = [2, 128], strides = [1, 1]} : vector<2x384xf32> to vector<2x128xf32>
    %353 = vector.extract_strided_slice %343 {offsets = [0, 128], sizes = [2, 128], strides = [1, 1]} : vector<2x384xf32> to vector<2x128xf32>
    %354 = arith.addf %352, %353 : vector<2x128xf32>
    %355 = arith.negf %354 : vector<2x128xf32>
    %356 = math.exp %355 : vector<2x128xf32>
    %cst_144 = arith.constant 1.000000e+00 : f32
    %357 = vector.broadcast %cst_144 : f32 to vector<2x128xf32>
    %358 = arith.addf %357, %356 : vector<2x128xf32>
    %359 = arith.divf %357, %358 : vector<2x128xf32>
    %360 = vector.extract_strided_slice %339 {offsets = [0, 256], sizes = [2, 128], strides = [1, 1]} : vector<2x384xf32> to vector<2x128xf32>
    %361 = vector.extract_strided_slice %343 {offsets = [0, 256], sizes = [2, 128], strides = [1, 1]} : vector<2x384xf32> to vector<2x128xf32>
    %362 = arith.mulf %351, %361 : vector<2x128xf32>
    %363 = arith.addf %360, %362 : vector<2x128xf32>
    %364 = math.tanh %363 : vector<2x128xf32>
    %cst_145 = arith.constant 1.000000e+00 : f32
    %365 = vector.broadcast %cst_145 : f32 to vector<2x128xf32>
    %366 = arith.subf %365, %359 : vector<2x128xf32>
    %367 = arith.mulf %366, %364 : vector<2x128xf32>
    %368 = arith.mulf %359, %305 : vector<2x128xf32>
    %369 = arith.addf %367, %368 : vector<2x128xf32>
    %370 = vector.extract_strided_slice %170 {offsets = [0, 3, 0], sizes = [2, 1, 384], strides = [1, 1, 1]} : vector<2x8x384xf32> to vector<2x1x384xf32>
    %371 = vector.shape_cast %370 : vector<2x1x384xf32> to vector<2x384xf32>
    %372 = vector.extract_strided_slice %337 {offsets = [0, 0], sizes = [2, 10], strides = [1, 1]} : vector<2x128xf32> to vector<2x10xf32>
    %cst_146 = arith.constant dense<0.000000e+00> : vector<2x384xf32>
    %373 = tpu.matmul %372, %172, %cst_146 {dimension_numbers = #tpu.dot_dimension_numbers<[1], [0], [0], [1], [0, 0, 1, 1], [], []>} : vector<2x10xf32>, vector<10x384xf32>, vector<2x384xf32> -> vector<2x384xf32>
    %374 = vector.broadcast %173 : vector<1x384xf32> to vector<2x384xf32>
    %375 = arith.addf %373, %374 : vector<2x384xf32>
    %376 = vector.extract_strided_slice %371 {offsets = [0, 0], sizes = [2, 128], strides = [1, 1]} : vector<2x384xf32> to vector<2x128xf32>
    %377 = vector.extract_strided_slice %375 {offsets = [0, 0], sizes = [2, 128], strides = [1, 1]} : vector<2x384xf32> to vector<2x128xf32>
    %378 = arith.addf %376, %377 : vector<2x128xf32>
    %379 = arith.negf %378 : vector<2x128xf32>
    %380 = math.exp %379 : vector<2x128xf32>
    %cst_147 = arith.constant 1.000000e+00 : f32
    %381 = vector.broadcast %cst_147 : f32 to vector<2x128xf32>
    %382 = arith.addf %381, %380 : vector<2x128xf32>
    %383 = arith.divf %381, %382 : vector<2x128xf32>
    %384 = vector.extract_strided_slice %371 {offsets = [0, 128], sizes = [2, 128], strides = [1, 1]} : vector<2x384xf32> to vector<2x128xf32>
    %385 = vector.extract_strided_slice %375 {offsets = [0, 128], sizes = [2, 128], strides = [1, 1]} : vector<2x384xf32> to vector<2x128xf32>
    %386 = arith.addf %384, %385 : vector<2x128xf32>
    %387 = arith.negf %386 : vector<2x128xf32>
    %388 = math.exp %387 : vector<2x128xf32>
    %cst_148 = arith.constant 1.000000e+00 : f32
    %389 = vector.broadcast %cst_148 : f32 to vector<2x128xf32>
    %390 = arith.addf %389, %388 : vector<2x128xf32>
    %391 = arith.divf %389, %390 : vector<2x128xf32>
    %392 = vector.extract_strided_slice %371 {offsets = [0, 256], sizes = [2, 128], strides = [1, 1]} : vector<2x384xf32> to vector<2x128xf32>
    %393 = vector.extract_strided_slice %375 {offsets = [0, 256], sizes = [2, 128], strides = [1, 1]} : vector<2x384xf32> to vector<2x128xf32>
    %394 = arith.mulf %383, %393 : vector<2x128xf32>
    %395 = arith.addf %392, %394 : vector<2x128xf32>
    %396 = math.tanh %395 : vector<2x128xf32>
    %cst_149 = arith.constant 1.000000e+00 : f32
    %397 = vector.broadcast %cst_149 : f32 to vector<2x128xf32>
    %398 = arith.subf %397, %391 : vector<2x128xf32>
    %399 = arith.mulf %398, %396 : vector<2x128xf32>
    %400 = arith.mulf %391, %337 : vector<2x128xf32>
    %401 = arith.addf %399, %400 : vector<2x128xf32>
    %402 = vector.extract_strided_slice %171 {offsets = [0, 3, 0], sizes = [2, 1, 384], strides = [1, 1, 1]} : vector<2x6x384xf32> to vector<2x1x384xf32>
    %403 = vector.shape_cast %402 : vector<2x1x384xf32> to vector<2x384xf32>
    %404 = vector.extract_strided_slice %369 {offsets = [0, 0], sizes = [2, 5], strides = [1, 1]} : vector<2x128xf32> to vector<2x5xf32>
    %cst_150 = arith.constant dense<0.000000e+00> : vector<2x384xf32>
    %405 = tpu.matmul %404, %174, %cst_150 {dimension_numbers = #tpu.dot_dimension_numbers<[1], [0], [0], [1], [0, 0, 1, 1], [], []>} : vector<2x5xf32>, vector<5x384xf32>, vector<2x384xf32> -> vector<2x384xf32>
    %406 = vector.broadcast %175 : vector<1x384xf32> to vector<2x384xf32>
    %407 = arith.addf %405, %406 : vector<2x384xf32>
    %408 = vector.extract_strided_slice %403 {offsets = [0, 0], sizes = [2, 128], strides = [1, 1]} : vector<2x384xf32> to vector<2x128xf32>
    %409 = vector.extract_strided_slice %407 {offsets = [0, 0], sizes = [2, 128], strides = [1, 1]} : vector<2x384xf32> to vector<2x128xf32>
    %410 = arith.addf %408, %409 : vector<2x128xf32>
    %411 = arith.negf %410 : vector<2x128xf32>
    %412 = math.exp %411 : vector<2x128xf32>
    %cst_151 = arith.constant 1.000000e+00 : f32
    %413 = vector.broadcast %cst_151 : f32 to vector<2x128xf32>
    %414 = arith.addf %413, %412 : vector<2x128xf32>
    %415 = arith.divf %413, %414 : vector<2x128xf32>
    %416 = vector.extract_strided_slice %403 {offsets = [0, 128], sizes = [2, 128], strides = [1, 1]} : vector<2x384xf32> to vector<2x128xf32>
    %417 = vector.extract_strided_slice %407 {offsets = [0, 128], sizes = [2, 128], strides = [1, 1]} : vector<2x384xf32> to vector<2x128xf32>
    %418 = arith.addf %416, %417 : vector<2x128xf32>
    %419 = arith.negf %418 : vector<2x128xf32>
    %420 = math.exp %419 : vector<2x128xf32>
    %cst_152 = arith.constant 1.000000e+00 : f32
    %421 = vector.broadcast %cst_152 : f32 to vector<2x128xf32>
    %422 = arith.addf %421, %420 : vector<2x128xf32>
    %423 = arith.divf %421, %422 : vector<2x128xf32>
    %424 = vector.extract_strided_slice %403 {offsets = [0, 256], sizes = [2, 128], strides = [1, 1]} : vector<2x384xf32> to vector<2x128xf32>
    %425 = vector.extract_strided_slice %407 {offsets = [0, 256], sizes = [2, 128], strides = [1, 1]} : vector<2x384xf32> to vector<2x128xf32>
    %426 = arith.mulf %415, %425 : vector<2x128xf32>
    %427 = arith.addf %424, %426 : vector<2x128xf32>
    %428 = math.tanh %427 : vector<2x128xf32>
    %cst_153 = arith.constant 1.000000e+00 : f32
    %429 = vector.broadcast %cst_153 : f32 to vector<2x128xf32>
    %430 = arith.subf %429, %423 : vector<2x128xf32>
    %431 = arith.mulf %430, %428 : vector<2x128xf32>
    %432 = arith.mulf %423, %369 : vector<2x128xf32>
    %433 = arith.addf %431, %432 : vector<2x128xf32>
    %434 = vector.extract_strided_slice %170 {offsets = [0, 4, 0], sizes = [2, 1, 384], strides = [1, 1, 1]} : vector<2x8x384xf32> to vector<2x1x384xf32>
    %435 = vector.shape_cast %434 : vector<2x1x384xf32> to vector<2x384xf32>
    %436 = vector.extract_strided_slice %401 {offsets = [0, 0], sizes = [2, 10], strides = [1, 1]} : vector<2x128xf32> to vector<2x10xf32>
    %cst_154 = arith.constant dense<0.000000e+00> : vector<2x384xf32>
    %437 = tpu.matmul %436, %172, %cst_154 {dimension_numbers = #tpu.dot_dimension_numbers<[1], [0], [0], [1], [0, 0, 1, 1], [], []>} : vector<2x10xf32>, vector<10x384xf32>, vector<2x384xf32> -> vector<2x384xf32>
    %438 = vector.broadcast %173 : vector<1x384xf32> to vector<2x384xf32>
    %439 = arith.addf %437, %438 : vector<2x384xf32>
    %440 = vector.extract_strided_slice %435 {offsets = [0, 0], sizes = [2, 128], strides = [1, 1]} : vector<2x384xf32> to vector<2x128xf32>
    %441 = vector.extract_strided_slice %439 {offsets = [0, 0], sizes = [2, 128], strides = [1, 1]} : vector<2x384xf32> to vector<2x128xf32>
    %442 = arith.addf %440, %441 : vector<2x128xf32>
    %443 = arith.negf %442 : vector<2x128xf32>
    %444 = math.exp %443 : vector<2x128xf32>
    %cst_155 = arith.constant 1.000000e+00 : f32
    %445 = vector.broadcast %cst_155 : f32 to vector<2x128xf32>
    %446 = arith.addf %445, %444 : vector<2x128xf32>
    %447 = arith.divf %445, %446 : vector<2x128xf32>
    %448 = vector.extract_strided_slice %435 {offsets = [0, 128], sizes = [2, 128], strides = [1, 1]} : vector<2x384xf32> to vector<2x128xf32>
    %449 = vector.extract_strided_slice %439 {offsets = [0, 128], sizes = [2, 128], strides = [1, 1]} : vector<2x384xf32> to vector<2x128xf32>
    %450 = arith.addf %448, %449 : vector<2x128xf32>
    %451 = arith.negf %450 : vector<2x128xf32>
    %452 = math.exp %451 : vector<2x128xf32>
    %cst_156 = arith.constant 1.000000e+00 : f32
    %453 = vector.broadcast %cst_156 : f32 to vector<2x128xf32>
    %454 = arith.addf %453, %452 : vector<2x128xf32>
    %455 = arith.divf %453, %454 : vector<2x128xf32>
    %456 = vector.extract_strided_slice %435 {offsets = [0, 256], sizes = [2, 128], strides = [1, 1]} : vector<2x384xf32> to vector<2x128xf32>
    %457 = vector.extract_strided_slice %439 {offsets = [0, 256], sizes = [2, 128], strides = [1, 1]} : vector<2x384xf32> to vector<2x128xf32>
    %458 = arith.mulf %447, %457 : vector<2x128xf32>
    %459 = arith.addf %456, %458 : vector<2x128xf32>
    %460 = math.tanh %459 : vector<2x128xf32>
    %cst_157 = arith.constant 1.000000e+00 : f32
    %461 = vector.broadcast %cst_157 : f32 to vector<2x128xf32>
    %462 = arith.subf %461, %455 : vector<2x128xf32>
    %463 = arith.mulf %462, %460 : vector<2x128xf32>
    %464 = arith.mulf %455, %401 : vector<2x128xf32>
    %465 = arith.addf %463, %464 : vector<2x128xf32>
    %466 = vector.extract_strided_slice %171 {offsets = [0, 4, 0], sizes = [2, 1, 384], strides = [1, 1, 1]} : vector<2x6x384xf32> to vector<2x1x384xf32>
    %467 = vector.shape_cast %466 : vector<2x1x384xf32> to vector<2x384xf32>
    %468 = vector.extract_strided_slice %433 {offsets = [0, 0], sizes = [2, 5], strides = [1, 1]} : vector<2x128xf32> to vector<2x5xf32>
    %cst_158 = arith.constant dense<0.000000e+00> : vector<2x384xf32>
    %469 = tpu.matmul %468, %174, %cst_158 {dimension_numbers = #tpu.dot_dimension_numbers<[1], [0], [0], [1], [0, 0, 1, 1], [], []>} : vector<2x5xf32>, vector<5x384xf32>, vector<2x384xf32> -> vector<2x384xf32>
    %470 = vector.broadcast %175 : vector<1x384xf32> to vector<2x384xf32>
    %471 = arith.addf %469, %470 : vector<2x384xf32>
    %472 = vector.extract_strided_slice %467 {offsets = [0, 0], sizes = [2, 128], strides = [1, 1]} : vector<2x384xf32> to vector<2x128xf32>
    %473 = vector.extract_strided_slice %471 {offsets = [0, 0], sizes = [2, 128], strides = [1, 1]} : vector<2x384xf32> to vector<2x128xf32>
    %474 = arith.addf %472, %473 : vector<2x128xf32>
    %475 = arith.negf %474 : vector<2x128xf32>
    %476 = math.exp %475 : vector<2x128xf32>
    %cst_159 = arith.constant 1.000000e+00 : f32
    %477 = vector.broadcast %cst_159 : f32 to vector<2x128xf32>
    %478 = arith.addf %477, %476 : vector<2x128xf32>
    %479 = arith.divf %477, %478 : vector<2x128xf32>
    %480 = vector.extract_strided_slice %467 {offsets = [0, 128], sizes = [2, 128], strides = [1, 1]} : vector<2x384xf32> to vector<2x128xf32>
    %481 = vector.extract_strided_slice %471 {offsets = [0, 128], sizes = [2, 128], strides = [1, 1]} : vector<2x384xf32> to vector<2x128xf32>
    %482 = arith.addf %480, %481 : vector<2x128xf32>
    %483 = arith.negf %482 : vector<2x128xf32>
    %484 = math.exp %483 : vector<2x128xf32>
    %cst_160 = arith.constant 1.000000e+00 : f32
    %485 = vector.broadcast %cst_160 : f32 to vector<2x128xf32>
    %486 = arith.addf %485, %484 : vector<2x128xf32>
    %487 = arith.divf %485, %486 : vector<2x128xf32>
    %488 = vector.extract_strided_slice %467 {offsets = [0, 256], sizes = [2, 128], strides = [1, 1]} : vector<2x384xf32> to vector<2x128xf32>
    %489 = vector.extract_strided_slice %471 {offsets = [0, 256], sizes = [2, 128], strides = [1, 1]} : vector<2x384xf32> to vector<2x128xf32>
    %490 = arith.mulf %479, %489 : vector<2x128xf32>
    %491 = arith.addf %488, %490 : vector<2x128xf32>
    %492 = math.tanh %491 : vector<2x128xf32>
    %cst_161 = arith.constant 1.000000e+00 : f32
    %493 = vector.broadcast %cst_161 : f32 to vector<2x128xf32>
    %494 = arith.subf %493, %487 : vector<2x128xf32>
    %495 = arith.mulf %494, %492 : vector<2x128xf32>
    %496 = arith.mulf %487, %433 : vector<2x128xf32>
    %497 = arith.addf %495, %496 : vector<2x128xf32>
    %498 = vector.extract_strided_slice %170 {offsets = [0, 5, 0], sizes = [2, 1, 384], strides = [1, 1, 1]} : vector<2x8x384xf32> to vector<2x1x384xf32>
    %499 = vector.shape_cast %498 : vector<2x1x384xf32> to vector<2x384xf32>
    %500 = vector.extract_strided_slice %465 {offsets = [0, 0], sizes = [2, 10], strides = [1, 1]} : vector<2x128xf32> to vector<2x10xf32>
    %cst_162 = arith.constant dense<0.000000e+00> : vector<2x384xf32>
    %501 = tpu.matmul %500, %172, %cst_162 {dimension_numbers = #tpu.dot_dimension_numbers<[1], [0], [0], [1], [0, 0, 1, 1], [], []>} : vector<2x10xf32>, vector<10x384xf32>, vector<2x384xf32> -> vector<2x384xf32>
    %502 = vector.broadcast %173 : vector<1x384xf32> to vector<2x384xf32>
    %503 = arith.addf %501, %502 : vector<2x384xf32>
    %504 = vector.extract_strided_slice %499 {offsets = [0, 0], sizes = [2, 128], strides = [1, 1]} : vector<2x384xf32> to vector<2x128xf32>
    %505 = vector.extract_strided_slice %503 {offsets = [0, 0], sizes = [2, 128], strides = [1, 1]} : vector<2x384xf32> to vector<2x128xf32>
    %506 = arith.addf %504, %505 : vector<2x128xf32>
    %507 = arith.negf %506 : vector<2x128xf32>
    %508 = math.exp %507 : vector<2x128xf32>
    %cst_163 = arith.constant 1.000000e+00 : f32
    %509 = vector.broadcast %cst_163 : f32 to vector<2x128xf32>
    %510 = arith.addf %509, %508 : vector<2x128xf32>
    %511 = arith.divf %509, %510 : vector<2x128xf32>
    %512 = vector.extract_strided_slice %499 {offsets = [0, 128], sizes = [2, 128], strides = [1, 1]} : vector<2x384xf32> to vector<2x128xf32>
    %513 = vector.extract_strided_slice %503 {offsets = [0, 128], sizes = [2, 128], strides = [1, 1]} : vector<2x384xf32> to vector<2x128xf32>
    %514 = arith.addf %512, %513 : vector<2x128xf32>
    %515 = arith.negf %514 : vector<2x128xf32>
    %516 = math.exp %515 : vector<2x128xf32>
    %cst_164 = arith.constant 1.000000e+00 : f32
    %517 = vector.broadcast %cst_164 : f32 to vector<2x128xf32>
    %518 = arith.addf %517, %516 : vector<2x128xf32>
    %519 = arith.divf %517, %518 : vector<2x128xf32>
    %520 = vector.extract_strided_slice %499 {offsets = [0, 256], sizes = [2, 128], strides = [1, 1]} : vector<2x384xf32> to vector<2x128xf32>
    %521 = vector.extract_strided_slice %503 {offsets = [0, 256], sizes = [2, 128], strides = [1, 1]} : vector<2x384xf32> to vector<2x128xf32>
    %522 = arith.mulf %511, %521 : vector<2x128xf32>
    %523 = arith.addf %520, %522 : vector<2x128xf32>
    %524 = math.tanh %523 : vector<2x128xf32>
    %cst_165 = arith.constant 1.000000e+00 : f32
    %525 = vector.broadcast %cst_165 : f32 to vector<2x128xf32>
    %526 = arith.subf %525, %519 : vector<2x128xf32>
    %527 = arith.mulf %526, %524 : vector<2x128xf32>
    %528 = arith.mulf %519, %465 : vector<2x128xf32>
    %529 = arith.addf %527, %528 : vector<2x128xf32>
    %530 = vector.extract_strided_slice %171 {offsets = [0, 5, 0], sizes = [2, 1, 384], strides = [1, 1, 1]} : vector<2x6x384xf32> to vector<2x1x384xf32>
    %531 = vector.shape_cast %530 : vector<2x1x384xf32> to vector<2x384xf32>
    %532 = vector.extract_strided_slice %497 {offsets = [0, 0], sizes = [2, 5], strides = [1, 1]} : vector<2x128xf32> to vector<2x5xf32>
    %cst_166 = arith.constant dense<0.000000e+00> : vector<2x384xf32>
    %533 = tpu.matmul %532, %174, %cst_166 {dimension_numbers = #tpu.dot_dimension_numbers<[1], [0], [0], [1], [0, 0, 1, 1], [], []>} : vector<2x5xf32>, vector<5x384xf32>, vector<2x384xf32> -> vector<2x384xf32>
    %534 = vector.broadcast %175 : vector<1x384xf32> to vector<2x384xf32>
    %535 = arith.addf %533, %534 : vector<2x384xf32>
    %536 = vector.extract_strided_slice %531 {offsets = [0, 0], sizes = [2, 128], strides = [1, 1]} : vector<2x384xf32> to vector<2x128xf32>
    %537 = vector.extract_strided_slice %535 {offsets = [0, 0], sizes = [2, 128], strides = [1, 1]} : vector<2x384xf32> to vector<2x128xf32>
    %538 = arith.addf %536, %537 : vector<2x128xf32>
    %539 = arith.negf %538 : vector<2x128xf32>
    %540 = math.exp %539 : vector<2x128xf32>
    %cst_167 = arith.constant 1.000000e+00 : f32
    %541 = vector.broadcast %cst_167 : f32 to vector<2x128xf32>
    %542 = arith.addf %541, %540 : vector<2x128xf32>
    %543 = arith.divf %541, %542 : vector<2x128xf32>
    %544 = vector.extract_strided_slice %531 {offsets = [0, 128], sizes = [2, 128], strides = [1, 1]} : vector<2x384xf32> to vector<2x128xf32>
    %545 = vector.extract_strided_slice %535 {offsets = [0, 128], sizes = [2, 128], strides = [1, 1]} : vector<2x384xf32> to vector<2x128xf32>
    %546 = arith.addf %544, %545 : vector<2x128xf32>
    %547 = arith.negf %546 : vector<2x128xf32>
    %548 = math.exp %547 : vector<2x128xf32>
    %cst_168 = arith.constant 1.000000e+00 : f32
    %549 = vector.broadcast %cst_168 : f32 to vector<2x128xf32>
    %550 = arith.addf %549, %548 : vector<2x128xf32>
    %551 = arith.divf %549, %550 : vector<2x128xf32>
    %552 = vector.extract_strided_slice %531 {offsets = [0, 256], sizes = [2, 128], strides = [1, 1]} : vector<2x384xf32> to vector<2x128xf32>
    %553 = vector.extract_strided_slice %535 {offsets = [0, 256], sizes = [2, 128], strides = [1, 1]} : vector<2x384xf32> to vector<2x128xf32>
    %554 = arith.mulf %543, %553 : vector<2x128xf32>
    %555 = arith.addf %552, %554 : vector<2x128xf32>
    %556 = math.tanh %555 : vector<2x128xf32>
    %cst_169 = arith.constant 1.000000e+00 : f32
    %557 = vector.broadcast %cst_169 : f32 to vector<2x128xf32>
    %558 = arith.subf %557, %551 : vector<2x128xf32>
    %559 = arith.mulf %558, %556 : vector<2x128xf32>
    %560 = arith.mulf %551, %497 : vector<2x128xf32>
    %561 = arith.addf %559, %560 : vector<2x128xf32>
    %562 = vector.extract_strided_slice %170 {offsets = [0, 6, 0], sizes = [2, 1, 384], strides = [1, 1, 1]} : vector<2x8x384xf32> to vector<2x1x384xf32>
    %563 = vector.shape_cast %562 : vector<2x1x384xf32> to vector<2x384xf32>
    %564 = vector.extract_strided_slice %529 {offsets = [0, 0], sizes = [2, 10], strides = [1, 1]} : vector<2x128xf32> to vector<2x10xf32>
    %cst_170 = arith.constant dense<0.000000e+00> : vector<2x384xf32>
    %565 = tpu.matmul %564, %172, %cst_170 {dimension_numbers = #tpu.dot_dimension_numbers<[1], [0], [0], [1], [0, 0, 1, 1], [], []>} : vector<2x10xf32>, vector<10x384xf32>, vector<2x384xf32> -> vector<2x384xf32>
    %566 = vector.broadcast %173 : vector<1x384xf32> to vector<2x384xf32>
    %567 = arith.addf %565, %566 : vector<2x384xf32>
    %568 = vector.extract_strided_slice %563 {offsets = [0, 0], sizes = [2, 128], strides = [1, 1]} : vector<2x384xf32> to vector<2x128xf32>
    %569 = vector.extract_strided_slice %567 {offsets = [0, 0], sizes = [2, 128], strides = [1, 1]} : vector<2x384xf32> to vector<2x128xf32>
    %570 = arith.addf %568, %569 : vector<2x128xf32>
    %571 = arith.negf %570 : vector<2x128xf32>
    %572 = math.exp %571 : vector<2x128xf32>
    %cst_171 = arith.constant 1.000000e+00 : f32
    %573 = vector.broadcast %cst_171 : f32 to vector<2x128xf32>
    %574 = arith.addf %573, %572 : vector<2x128xf32>
    %575 = arith.divf %573, %574 : vector<2x128xf32>
    %576 = vector.extract_strided_slice %563 {offsets = [0, 128], sizes = [2, 128], strides = [1, 1]} : vector<2x384xf32> to vector<2x128xf32>
    %577 = vector.extract_strided_slice %567 {offsets = [0, 128], sizes = [2, 128], strides = [1, 1]} : vector<2x384xf32> to vector<2x128xf32>
    %578 = arith.addf %576, %577 : vector<2x128xf32>
    %579 = arith.negf %578 : vector<2x128xf32>
    %580 = math.exp %579 : vector<2x128xf32>
    %cst_172 = arith.constant 1.000000e+00 : f32
    %581 = vector.broadcast %cst_172 : f32 to vector<2x128xf32>
    %582 = arith.addf %581, %580 : vector<2x128xf32>
    %583 = arith.divf %581, %582 : vector<2x128xf32>
    %584 = vector.extract_strided_slice %563 {offsets = [0, 256], sizes = [2, 128], strides = [1, 1]} : vector<2x384xf32> to vector<2x128xf32>
    %585 = vector.extract_strided_slice %567 {offsets = [0, 256], sizes = [2, 128], strides = [1, 1]} : vector<2x384xf32> to vector<2x128xf32>
    %586 = arith.mulf %575, %585 : vector<2x128xf32>
    %587 = arith.addf %584, %586 : vector<2x128xf32>
    %588 = math.tanh %587 : vector<2x128xf32>
    %cst_173 = arith.constant 1.000000e+00 : f32
    %589 = vector.broadcast %cst_173 : f32 to vector<2x128xf32>
    %590 = arith.subf %589, %583 : vector<2x128xf32>
    %591 = arith.mulf %590, %588 : vector<2x128xf32>
    %592 = arith.mulf %583, %529 : vector<2x128xf32>
    %593 = arith.addf %591, %592 : vector<2x128xf32>
    %594 = vector.extract_strided_slice %170 {offsets = [0, 7, 0], sizes = [2, 1, 384], strides = [1, 1, 1]} : vector<2x8x384xf32> to vector<2x1x384xf32>
    %595 = vector.shape_cast %594 : vector<2x1x384xf32> to vector<2x384xf32>
    %596 = vector.extract_strided_slice %593 {offsets = [0, 0], sizes = [2, 10], strides = [1, 1]} : vector<2x128xf32> to vector<2x10xf32>
    %cst_174 = arith.constant dense<0.000000e+00> : vector<2x384xf32>
    %597 = tpu.matmul %596, %172, %cst_174 {dimension_numbers = #tpu.dot_dimension_numbers<[1], [0], [0], [1], [0, 0, 1, 1], [], []>} : vector<2x10xf32>, vector<10x384xf32>, vector<2x384xf32> -> vector<2x384xf32>
    %598 = vector.broadcast %173 : vector<1x384xf32> to vector<2x384xf32>
    %599 = arith.addf %597, %598 : vector<2x384xf32>
    %600 = vector.extract_strided_slice %595 {offsets = [0, 0], sizes = [2, 128], strides = [1, 1]} : vector<2x384xf32> to vector<2x128xf32>
    %601 = vector.extract_strided_slice %599 {offsets = [0, 0], sizes = [2, 128], strides = [1, 1]} : vector<2x384xf32> to vector<2x128xf32>
    %602 = arith.addf %600, %601 : vector<2x128xf32>
    %603 = arith.negf %602 : vector<2x128xf32>
    %604 = math.exp %603 : vector<2x128xf32>
    %cst_175 = arith.constant 1.000000e+00 : f32
    %605 = vector.broadcast %cst_175 : f32 to vector<2x128xf32>
    %606 = arith.addf %605, %604 : vector<2x128xf32>
    %607 = arith.divf %605, %606 : vector<2x128xf32>
    %608 = vector.extract_strided_slice %595 {offsets = [0, 128], sizes = [2, 128], strides = [1, 1]} : vector<2x384xf32> to vector<2x128xf32>
    %609 = vector.extract_strided_slice %599 {offsets = [0, 128], sizes = [2, 128], strides = [1, 1]} : vector<2x384xf32> to vector<2x128xf32>
    %610 = arith.addf %608, %609 : vector<2x128xf32>
    %611 = arith.negf %610 : vector<2x128xf32>
    %612 = math.exp %611 : vector<2x128xf32>
    %cst_176 = arith.constant 1.000000e+00 : f32
    %613 = vector.broadcast %cst_176 : f32 to vector<2x128xf32>
    %614 = arith.addf %613, %612 : vector<2x128xf32>
    %615 = arith.divf %613, %614 : vector<2x128xf32>
    %616 = vector.extract_strided_slice %595 {offsets = [0, 256], sizes = [2, 128], strides = [1, 1]} : vector<2x384xf32> to vector<2x128xf32>
    %617 = vector.extract_strided_slice %599 {offsets = [0, 256], sizes = [2, 128], strides = [1, 1]} : vector<2x384xf32> to vector<2x128xf32>
    %618 = arith.mulf %607, %617 : vector<2x128xf32>
    %619 = arith.addf %616, %618 : vector<2x128xf32>
    %620 = math.tanh %619 : vector<2x128xf32>
    %cst_177 = arith.constant 1.000000e+00 : f32
    %621 = vector.broadcast %cst_177 : f32 to vector<2x128xf32>
    %622 = arith.subf %621, %615 : vector<2x128xf32>
    %623 = arith.mulf %622, %620 : vector<2x128xf32>
    %624 = arith.mulf %615, %593 : vector<2x128xf32>
    %625 = arith.addf %623, %624 : vector<2x128xf32>
    %c0_178 = arith.constant 0 : index
    %c0_179 = arith.constant 0 : index
    %626 = vector.load %arg3[%c0_178, %c0_179] : memref<2x6xf32, #tpu.memory_space<vmem>>, vector<2x6xf32>
    %c0_180 = arith.constant 0 : index
    %c0_181 = arith.constant 0 : index
    %627 = vector.load %arg18[%c0_180, %c0_181] : memref<6x1408xf32, #tpu.memory_space<vmem>>, vector<6x1408xf32>
    %cst_182 = arith.constant dense<0.000000e+00> : vector<2x1408xf32>
    %628 = tpu.matmul %626, %627, %cst_182 {dimension_numbers = #tpu.dot_dimension_numbers<[1], [0], [0], [1], [0, 0, 1, 1], [], []>} : vector<2x6xf32>, vector<6x1408xf32>, vector<2x1408xf32> -> vector<2x1408xf32>
    %c0_183 = arith.constant 0 : index
    %c0_184 = arith.constant 0 : index
    %629 = vector.load %arg19[%c0_183, %c0_184] : memref<1x1408xf32, #tpu.memory_space<vmem>>, vector<1x1408xf32>
    %630 = vector.broadcast %629 : vector<1x1408xf32> to vector<2x1408xf32>
    %631 = arith.addf %628, %630 : vector<2x1408xf32>
    %c0_185 = arith.constant 0 : index
    %c0_186 = arith.constant 0 : index
    %632 = vector.load %arg27[%c0_185, %c0_186] : memref<2x1408xf32, #tpu.memory_space<vmem>>, vector<2x1408xf32>
    %633 = arith.addf %632, %631 : vector<2x1408xf32>
    %cst_187 = arith.constant 0.000000e+00 : f32
    %634 = vector.broadcast %cst_187 : f32 to vector<2x1408xf32>
    %635 = arith.maximumf %633, %634 : vector<2x1408xf32>
    %636 = tpu.concatenate %561, %625 in 1 : vector<2x128xf32>, vector<2x128xf32> -> vector<2x256xf32>
    %c0_188 = arith.constant 0 : index
    %c0_189 = arith.constant 0 : index
    %637 = vector.load %arg20[%c0_188, %c0_189] : memref<6x256xf32, #tpu.memory_space<vmem>>, vector<6x256xf32>
    %cst_190 = arith.constant dense<0.000000e+00> : vector<2x256xf32>
    %638 = tpu.matmul %626, %637, %cst_190 {dimension_numbers = #tpu.dot_dimension_numbers<[1], [0], [0], [1], [0, 0, 1, 1], [], []>} : vector<2x6xf32>, vector<6x256xf32>, vector<2x256xf32> -> vector<2x256xf32>
    %c0_191 = arith.constant 0 : index
    %c0_192 = arith.constant 0 : index
    %639 = vector.load %arg21[%c0_191, %c0_192] : memref<1x256xf32, #tpu.memory_space<vmem>>, vector<1x256xf32>
    %640 = vector.broadcast %639 : vector<1x256xf32> to vector<2x256xf32>
    %641 = arith.addf %638, %640 : vector<2x256xf32>
    %642 = arith.addf %636, %641 : vector<2x256xf32>
    %cst_193 = arith.constant 0.000000e+00 : f32
    %643 = vector.broadcast %cst_193 : f32 to vector<2x256xf32>
    %644 = arith.maximumf %642, %643 : vector<2x256xf32>
    %c0_194 = arith.constant 0 : index
    %c0_195 = arith.constant 0 : index
    %645 = vector.load %arg22[%c0_194, %c0_195] : memref<1408x3xf32, #tpu.memory_space<vmem>>, vector<1408x3xf32>
    %cst_196 = arith.constant dense<0.000000e+00> : vector<2x3xf32>
    %646 = tpu.matmul %635, %645, %cst_196 {dimension_numbers = #tpu.dot_dimension_numbers<[1], [0], [0], [1], [0, 0, 1, 1], [], []>} : vector<2x1408xf32>, vector<1408x3xf32>, vector<2x3xf32> -> vector<2x3xf32>
    %c0_197 = arith.constant 0 : index
    %c0_198 = arith.constant 0 : index
    %647 = vector.load %arg23[%c0_197, %c0_198] : memref<256x3xf32, #tpu.memory_space<vmem>>, vector<256x3xf32>
    %cst_199 = arith.constant dense<0.000000e+00> : vector<2x3xf32>
    %648 = tpu.matmul %644, %647, %cst_199 {dimension_numbers = #tpu.dot_dimension_numbers<[1], [0], [0], [1], [0, 0, 1, 1], [], []>} : vector<2x256xf32>, vector<256x3xf32>, vector<2x3xf32> -> vector<2x3xf32>
    %649 = arith.addf %646, %648 : vector<2x3xf32>
    %c0_200 = arith.constant 0 : index
    %c0_201 = arith.constant 0 : index
    %650 = vector.load %arg24[%c0_200, %c0_201] : memref<1x3xf32, #tpu.memory_space<vmem>>, vector<1x3xf32>
    %651 = vector.broadcast %650 : vector<1x3xf32> to vector<2x3xf32>
    %652 = arith.addf %649, %651 : vector<2x3xf32>
    %c0_202 = arith.constant 0 : index
    %c0_203 = arith.constant 0 : index
    %653 = vector.load %arg25[%c0_202, %c0_203] : memref<2x3xf32, #tpu.memory_space<vmem>>, vector<2x3xf32>
    tpu.vector_store %arg25[%c0_202, %c0_203], %652 {strides = array<i32>} : memref<2x3xf32, #tpu.memory_space<vmem>>, vector<2x3xf32>,
    return
  }
}

</mosaic_0001>

<bundles_post_ra>
// kernel: tpu_custom_call.1
= control target key start
LH: loop header
LB: loop body
LE: loop exit
PB: predicated region body
PF: predicated region fallthrough
CT: control target
= control target key end

     0   :  { %s9781_s0 = inlined_call_operand.vmem [shape: f32[2,16,8], index: 0, kind: input, shape index: {}]   ;;  %s9782_s1 = inlined_call_operand.vmem [shape: f32[2,8,4], index: 1, kind: input, shape index: {}]   ;;  %s9783_s2 = inlined_call_operand.vmem [shape: f32[2,6,3], index: 2, kind: input, shape index: {}]   ;;  %s9784_s3 = inlined_call_operand.vmem [shape: f32[2,6], index: 3, kind: input, shape index: {}]   ;;  %s9785_s4 = inlined_call_operand.vmem [shape: f32[8,384], index: 4, kind: input, shape index: {}]   ;;  %s9786_s5 = inlined_call_operand.vmem [shape: f32[1,128], index: 5, kind: input, shape index: {}]   ;;  %s9787_s6 = inlined_call_operand.vmem [shape: f32[4,768], index: 6, kind: input, shape index: {}]   ;;  %s9788_s7 = inlined_call_operand.vmem [shape: f32[1,128], index: 7, kind: input, shape index: {}]   ;;  %s9789_s8 = inlined_call_operand.vmem [shape: f32[2,384], index: 8, kind: input, shape index: {}]   ;;  %s9790_s9 = inlined_call_operand.vmem [shape: f32[1,128], index: 9, kind: input, shape index: {}]   ;;  %s9791_s10 = inlined_call_operand.vmem [shape: f32[4,384], index: 10, kind: input, shape index: {}]   ;;  %s9792_s11 = inlined_call_operand.vmem [shape: f32[10,384], index: 11, kind: input, shape index: {}]   ;;  %s9793_s12 = inlined_call_operand.vmem [shape: f32[1,384], index: 12, kind: input, shape index: {}]   ;;  %s9794_s13 = inlined_call_operand.vmem [shape: f32[1,384], index: 13, kind: input, shape index: {}]   ;;  %s9795_s14 = inlined_call_operand.vmem [shape: f32[3,384], index: 14, kind: input, shape index: {}]   ;;  %s9796_s15 = inlined_call_operand.vmem [shape: f32[5,384], index: 15, kind: input, shape index: {}]   ;;  %s9797_s16 = inlined_call_operand.vmem [shape: f32[1,384], index: 16, kind: input, shape index: {}]   ;;  %s9798_s17 = inlined_call_operand.vmem [shape: f32[1,384], index: 17, kind: input, shape index: {}]   ;;  %s9799_s18 = inlined_call_operand.vmem [shape: f32[6,1408], index: 18, kind: input, shape index: {}]   ;;  %s9800_s19 = inlined_call_operand.vmem [shape: f32[1,1408], index: 19, kind: input, shape index: {}]   ;;  %s9801_s20 = inlined_call_operand.vmem [shape: f32[6,256], index: 20, kind: input, shape index: {}]   ;;  %s9802_s21 = inlined_call_operand.vmem [shape: f32[1,256], index: 21, kind: input, shape index: {}]   ;;  %s9803_s22 = inlined_call_operand.vmem [shape: f32[1408,3], index: 22, kind: input, shape index: {}]   ;;  %s9804_s23 = inlined_call_operand.vmem [shape: f32[256,3], index: 23, kind: input, shape index: {}]   ;;  %s9805_s24 = inlined_call_operand.vmem [shape: f32[1,3], index: 24, kind: input, shape index: {}]   ;;  %s9806_s25 = inlined_call_operand.hbm [shape: f32[2,3], index: 25, kind: output, shape index: {}]  }
   0x1   :  { %9812 = sst [smem:[#allocation9_spill]] %s9781_s0 }
   0x2   :  { %9813 = sst [smem:[#allocation10_spill]] %s9782_s1 }
   0x3   :  { %9814 = sst [smem:[#allocation11_spill]] %s9783_s2 }
   0x4   :  { %9815 = sst [smem:[#allocation12_spill]] %s9784_s3 }
   0x5   :  { %9816 = sst [smem:[#allocation13_spill]] %s9785_s4 }
   0x6   :  { %9817 = sst [smem:[#allocation14_spill]] %s9786_s5 }
   0x7   :  { %9818 = sst [smem:[#allocation15_spill]] %s9787_s6 }
   0x8   :  { %9819 = sst [smem:[#allocation16_spill]] %s9788_s7 }
   0x9   :  { %9820 = sst [smem:[#allocation17_spill]] %s9789_s8 }
   0xa   :  { %9821 = sst [smem:[#allocation18_spill]] %s9790_s9 }
   0xb   :  { %s9822_s6 = sld [smem:[#allocation13_spill]]  ;;  %vm81_vm0 = vcmask 64512   ;;  %vm84_vm1 = vcmask 60416   ;;  %v7844_v3 = vmov 0.0  }
   0xc   :  { %s9823_s1 = sld [smem:[#allocation9_spill]]  ;;  %183 = vmatprep.mubr.f32.mxu0 %v7844_v3  ;;  %82 = vst.msk [vmem:[#allocation2] sm:$0xff] %vm81_vm0, %v7844_v3  ;;  %83 = vst.msk [vmem:[#allocation2 + $0x8] sm:$0xff] %vm81_vm0, %v7844_v3 }
   0xd   :  { %86 = vst.msk [vmem:[#allocation2 + $0x18] sm:$0xff] %vm81_vm0, %v7844_v3  ;;  %87 = vst.msk [vmem:[#allocation2 + $0x20] sm:$0xff] %vm81_vm0, %v7844_v3 }
   0xe   :  { %85 = vst.msk [vmem:[#allocation2 + $0x10] sm:$0xf] %vm84_vm1, %v7844_v3  ;;  %88 = vst.msk [vmem:[#allocation2 + $0x28] sm:$0xf] %vm84_vm1, %v7844_v3 }
  0x11   :  { %v7981_v0 = vld [vmem:[%s9822_s6 + $0x8] sm:$0xff]  ;;  %v7986_v1 = vld [vmem:[%s9822_s6] sm:$0xff] }
  0x12   :  { %v89_v2 = vld [vmem:[%s9823_s1] sm:$0xff]  ;;  %149 = vmatprep.subr.mxu0 %v7981_v0  ;;  %v90_v4 = vld [vmem:[%s9823_s1 + $0x8] sm:$0xff] }
  0x13   :  { %30 = vsyncpa [#allocation7], 0  ;;  %150 = vmatpush1.msra.mxu0 %v7986_v1  ;;  %93 = vst.msk [vmem:[#allocation2 + $0x2] sm:$0xff] %vm81_vm0, %v89_v2  ;;  %498 = vmatprep.mubr.f32.mxu1 %v7844_v3  ;;  %v8014_v5 = vld [vmem:[%s9822_s6 + $0x10] sm:$0xff]  ;;  %vm7845_vm2 = vmmov 0   ;;  %s9824_s0 = sld [smem:[#allocation15_spill]]  ;;  %v666_v50 = vlaneseq }
  0x14   :  { %94 = vst.msk [vmem:[#allocation2 + $0xa] sm:$0xff] %vm81_vm0, %v90_v4  ;;  %7339 = vmatprep.subr.mxu0 %v7844_v3  ;;  %vm340_vm3 = vcmask 1043456   ;;  %vm285_vm4 = vcmask 1046528   ;;  %vm300_vm5 = vcmask 1045504   ;;  %s9825_s26 = sld [smem:[#allocation14_spill]]  ;;  %vm330_vm6 = vcmask 31744  }
  0x15   :  { %v7846_v51 = vmov 1983009808   ;;  %v8105_v53 = vshrl.u32 %v666_v50, 7  ;;  %v91_v55 = vld [vmem:[%s9823_s1 + $0x10] sm:$0xff]  ;;  %s9826_s9 = sld [smem:[#allocation17_spill]]  ;;  %v92_v59 = vld [vmem:[%s9823_s1 + $0x18] sm:$0xff] }
  0x16   :  { %v664_v52 = vunpack.c.l.s4 %v7846_v51  ;;  %95 = vst.msk [vmem:[#allocation2 + $0x1a] sm:$0xff] %vm81_vm0, %v91_v55  ;;  %vm685_vm7 = vcmask 1041408   ;;  %96 = vst.msk [vmem:[#allocation2 + $0x22] sm:$0xff] %vm81_vm0, %v92_v59  ;;  %vm618_vm8 = vcmask 1044480   ;;  %vm641_vm9 = vcmask 1042432   ;;  %s9827_s2 = sld [smem:[#allocation16_spill]] }
  0x17   :  { %vm678_vm10 = vcmask 15360   ;;  %s9828_s7 = sld [smem:[#allocation18_spill]]  ;;  %vm1884_vm11 = vcmask 23552   ;;  %vm2377_vm12 = vcmask 80896   ;;  %vm2811_vm13 = vcmask 1041409  }
  0x18   :  { %v665_v54 = vunpack.c.0.s8 %v664_v52  ;;  %s9830_s1 = sld [smem:[#allocation11_spill]]  ;;  %vm2601_vm14 = vcmask 39936   ;;  %vm5914_vm15 = vcmask 1046534   ;;  %vm6800_vm1 = vcmask 17408  }
  0x19   :  { %v8035_v9 = vld [vmem:[%s9824_s0] sm:$0xff]  ;;  %v8048_v11 = vld [vmem:[%s9824_s0 + $0x8] sm:$0xff]  ;;  %v8061_v13 = vld [vmem:[%s9824_s0 + $0x10] sm:$0xff] }
  0x1a   :  { %v107_v6 = vld [vmem:[#allocation2] sm:$0xff]  ;;  %v8039_v10 = vcombine.high %v8035_v9, %v8035_v9  ;;  %v8052_v12 = vcombine.high %v8048_v11, %v8048_v11  ;;  %v8065_v14 = vcombine.high %v8061_v13, %v8061_v13  ;;  %v8115_v57 = vsub.s32 %v665_v54, %v8105_v53 }
  0x1b   :  { %6816 = vmatmul.mubr.msk.f32.vlgmr.msra.gmra.mxu0 %vm81_vm0, %v107_v6  ;;  %v108_v7 = vld [vmem:[#allocation2 + $0x8] sm:$0xff]  ;;  %v109_v8 = vld [vmem:[#allocation2 + $0x10] sm:$0xf]  ;;  %v8074_v33 = vld [vmem:[%s9825_s26] ss:$0 sm:$0xff] }
  0x1c   :  { %7340 = vmatpush3.msra.mxu0 %v8014_v5  ;;  %189 = vmatprep.mubr.f32.mxu0 %v7844_v3  ;;  %v105_v56 = vld [vmem:[%s9826_s9] sm:$0x3f]  ;;  %s9829_s9 = sld [smem:[#allocation10_spill]] }
  0x1d   :  { %6823 = vmatprep.subr.msk.mxu0 %vm340_vm3, %v8039_v10  ;;  %6828 = vmatprep.subr.msk.mxu1 %vm340_vm3, %v8052_v12  ;;  %v8118_v58 = vrot.slane %v105_v56, %v8115_v57  ;;  %v662_v61 = vcombine.high %v105_v56, %v105_v56  ;;  %v8130_v62 = vld [vmem:[#allocation2 + $0x18] sm:$0xff] }
  0x1e   :  { %6829 = vmatpush1.msk.msra.mxu1 %vm340_vm3, %v8048_v11 }
  0x1f   :  { %6817 = vmatmul.mubr.msk.f32.gmra.mxu0 %vm81_vm0, %v108_v7  ;;  %v8126_v60 = vcombine.high %v8118_v58, %v8118_v58  ;;  %v8137_v63 = vrot.slane %v662_v61, %v8115_v57 }
  0x20   :  { %195 = vmatprep.mubr.f32.mxu0 %v7844_v3 }
  0x21   :  { %6839 = vmatprep.subr.msk.mxu1 %vm685_vm7, %v8126_v60 }
  0x23   :  { %6818 = vmatmul.mubr.msk.f32.gmra.mxu0 %vm81_vm0, %v109_v8 }
  0x24   :  { %7341 = vmatprep.mubr.msk.f32.mxu0 %vm7845_vm2, %v7844_v3 }
  0x27   :  { %7342 = vmatmul.mubr.msk.f32.vlgmr.msra.gmra.mxu0 %vm81_vm0, %v107_v6 }
  0x28   :  { %7344 = vmatprep.mubr.msk.f32.mxu0 %vm7845_vm2, %v7844_v3  ;;  %6824 = vmatpush1.msk.msra.mxu0 %vm340_vm3, %v8035_v9 }
  0x29   :  { %6833 = vmatprep.subr.msk.mxu0 %vm340_vm3, %v8065_v14 }
  0x2b   :  { %7345 = vmatmul.mubr.msk.f32.gmra.mxu0 %vm81_vm0, %v108_v7 }
  0x2c   :  { %7347 = vmatprep.mubr.msk.f32.mxu0 %vm7845_vm2, %v7844_v3 }
  0x2f   :  { %7348 = vmatmul.mubr.msk.f32.gmra.mxu0 %vm81_vm0, %v109_v8 }
  0x30   :  { %417 = vmatprep.mubr.f32.mxu0 %v7844_v3 }
  0xdb   :  { %v185_v15 = vpop.f32.mrf.mxu0 }
  0xdd   :  { %v187_v16 = vpop.f32.mrf.mxu0 }
  0xde   :  { %v286_v23 = vrot.slane %v187_v16, 1 }
  0xdf   :  { %v191_v17 = vpop.f32.mrf.mxu0 }
  0xe1   :  { %v193_v18 = vpop.f32.mrf.mxu0 }
  0xe2   :  { %v287_v21 = vrot.slane %v193_v18, 1 }
  0xe3   :  { %v197_v19 = vpop.f32.mrf.mxu0 }
  0xe4   :  { %v288_v25 = vsel %vm285_vm4, %v286_v23, %v287_v21 }
  0xe5   :  { %v199_v20 = vpop.f32.mrf.mxu0  ;;  %v294_v30 = vadd.f32 %v288_v25, %v185_v15 }
  0xe6   :  { %v289_v26 = vrot.slane %v199_v20, 1 }
  0xe7   :  { %v268_v22 = vpop.f32.mrf.mxu0 }
  0xe8   :  { %v301_v28 = vrot.slane %v268_v22, 2  ;;  %v290_v32 = vsel %vm285_vm4, %v287_v21, %v289_v26  ;;  %v296_v39 = vadd.f32 %v289_v26, %v197_v19 }
  0xe9   :  { %v7343_v24 = vpop.f32.mrf.mxu0  ;;  %v295_v38 = vadd.f32 %v290_v32, %v191_v17 }
  0xeb   :  { %v273_v27 = vpop.f32.mrf.mxu0 }
  0xec   :  { %v302_v29 = vrot.slane %v273_v27, 2 }
  0xed   :  { %v7346_v31 = vpop.f32.mrf.mxu0 }
  0xee   :  { %v303_v34 = vsel %vm300_vm5, %v301_v28, %v302_v29 }
  0xef   :  { %v309_v35 = vadd.f32 %v303_v34, %v294_v30  ;;  %v278_v36 = vpop.f32.mrf.mxu0 }
  0xf0   :  { %v304_v37 = vrot.slane %v278_v36, 2 }
  0xf1   :  { %v318_v40 = vadd.f32 %v8074_v33, %v309_v35  ;;  %v7349_v41 = vpop.f32.mrf.mxu0 }
  0xf2   :  { %v305_v42 = vsel %vm300_vm5, %v302_v29, %v304_v37  ;;  %v311_v45 = vadd.f32 %v304_v37, %v296_v39 }
  0xf3   :  { %v321_v43 = vmax.f32 %v318_v40, 0.0  ;;  %v310_v44 = vadd.f32 %v305_v42, %v295_v38 }
  0xf4   :  { %v320_v47 = vadd.f32 %v8074_v33, %v311_v45  ;;  %v8163_v45 = vld [vmem:[%s9827_s2] ss:$0 sm:$0xff] }
  0xf5   :  { %6825 = vmatmul.mubr.msk.f32.vlgmr.msra.gmra.mxu0 %vm330_vm6, %v321_v43  ;;  %6830 = vmatmul.mubr.msk.f32.vlgmr.msra.gmra.mxu1 %vm330_vm6, %v321_v43  ;;  %v319_v46 = vadd.f32 %v8074_v33, %v310_v44 }
  0xf6   :  { %6834 = vmatpush1.msk.msra.mxu0 %vm340_vm3, %v8061_v13  ;;  %423 = vmatprep.mubr.f32.mxu0 %v7844_v3  ;;  %v323_v49 = vmax.f32 %v320_v47, 0.0 }
  0xf7   :  { %504 = vmatprep.mubr.f32.mxu1 %v7844_v3  ;;  %v322_v48 = vmax.f32 %v319_v46, 0.0  ;;  %972 = vmatprep.subr.mxu0 %v7981_v0  ;;  %v8146_v0 = vld [vmem:[#allocation2 + $0x20] sm:$0xff] }
  0xf8   :  { %6840 = vmatpush1.msk.msra.mxu1 %vm685_vm7, %v8118_v58 }
  0xf9   :  { %6826 = vmatmul.mubr.msk.f32.gmra.mxu0 %vm330_vm6, %v322_v48  ;;  %6831 = vmatmul.mubr.msk.f32.gmra.mxu1 %vm330_vm6, %v322_v48 }
  0xfa   :  { %429 = vmatprep.mubr.f32.mxu0 %v7844_v3  ;;  %510 = vmatprep.mubr.f32.mxu1 %v7844_v3 }
  0xfb   :  { %7350 = vmatprep.subr.msk.mxu1 %vm685_vm7, %v8137_v63 }
  0xfd   :  { %6827 = vmatmul.mubr.msk.f32.gmra.mxu0 %vm330_vm6, %v323_v49  ;;  %6832 = vmatmul.mubr.msk.f32.gmra.mxu1 %vm330_vm6, %v323_v49 }
  0xfe   :  { %579 = vmatprep.mubr.f32.mxu0 %v7844_v3  ;;  %756 = vmatprep.mubr.f32.mxu1 %v7844_v3 }
 0x101   :  { %6835 = vmatmul.mubr.msk.f32.vlgmr.msra.gmra.mxu0 %vm330_vm6, %v321_v43 }
 0x102   :  { %585 = vmatprep.mubr.f32.mxu0 %v7844_v3  ;;  %973 = vmatpush1.msra.mxu0 %v7986_v1  ;;  %v8151_v1 = vld [vmem:[#allocation2 + $0x28] sm:$0xf] }
 0x103   :  { %6859 = vmatprep.subr.msk.mxu0 %vm340_vm3, %v8039_v10 }
 0x105   :  { %6836 = vmatmul.mubr.msk.f32.gmra.mxu0 %vm330_vm6, %v322_v48 }
 0x106   :  { %591 = vmatprep.mubr.f32.mxu0 %v7844_v3 }
 0x109   :  { %6837 = vmatmul.mubr.msk.f32.gmra.mxu0 %vm330_vm6, %v323_v49 }
 0x10a   :  { %1006 = vmatprep.mubr.f32.mxu0 %v7844_v3 }
 0x10d   :  { %6853 = vmatmul.mubr.msk.f32.vlgmr.msra.gmra.mxu0 %vm81_vm0, %v8130_v62 }
 0x10e   :  { %1012 = vmatprep.mubr.f32.mxu0 %v7844_v3  ;;  %6860 = vmatpush1.msk.msra.mxu0 %vm340_vm3, %v8035_v9 }
 0x10f   :  { %6869 = vmatprep.subr.msk.mxu0 %vm340_vm3, %v8065_v14 }
 0x111   :  { %6854 = vmatmul.mubr.msk.f32.gmra.mxu0 %vm81_vm0, %v8146_v0 }
 0x112   :  { %1018 = vmatprep.mubr.f32.mxu0 %v7844_v3 }
 0x115   :  { %6855 = vmatmul.mubr.msk.f32.gmra.mxu0 %vm81_vm0, %v8151_v1 }
 0x116   :  { %1212 = vmatprep.mubr.f32.mxu0 %v7844_v3 }
 0x1b5   :  { %v419_v2 = vpop.f32.mrf.mxu0  ;;  %v500_v4 = vpop.f32.mrf.mxu1 }
 0x1b6   :  { %v609_v24 = vrot.slane %v500_v4, 2 }
 0x1b7   :  { %v421_v6 = vpop.f32.mrf.mxu0  ;;  %v502_v7 = vpop.f32.mrf.mxu1 }
 0x1b8   :  { %v600_v15 = vrot.slane %v421_v6, 1  ;;  %v619_v31 = vrot.slane %v502_v7, 3 }
 0x1b9   :  { %v425_v8 = vpop.f32.mrf.mxu0  ;;  %v506_v9 = vpop.f32.mrf.mxu1 }
 0x1ba   :  { %v610_v19 = vrot.slane %v506_v9, 2 }
 0x1bb   :  { %v427_v10 = vpop.f32.mrf.mxu0  ;;  %v508_v14 = vpop.f32.mrf.mxu1 }
 0x1bc   :  { %v601_v16 = vrot.slane %v427_v10, 1  ;;  %v611_v26 = vsel %vm300_vm5, %v609_v24, %v610_v19  ;;  %v620_v27 = vrot.slane %v508_v14, 3 }
 0x1bd   :  { %v431_v17 = vpop.f32.mrf.mxu0  ;;  %v512_v18 = vpop.f32.mrf.mxu1 }
 0x1be   :  { %v602_v20 = vsel %vm285_vm4, %v600_v15, %v601_v16  ;;  %v606_v28 = vadd.f32 %v601_v16, %v425_v8  ;;  %v621_v34 = vsel %vm618_vm8, %v619_v31, %v620_v27 }
 0x1bf   :  { %v605_v21 = vadd.f32 %v602_v20, %v419_v2  ;;  %v432_v22 = vpop.f32.mrf.mxu0  ;;  %v513_v23 = vpop.f32.mrf.mxu1 }
 0x1c0   :  { %v615_v37 = vadd.f32 %v610_v19, %v606_v28 }
 0x1c1   :  { %v581_v25 = vpop.f32.mrf.mxu0  ;;  %v614_v29 = vadd.f32 %v611_v26, %v605_v21 }
 0x1c2   :  { %v629_v35 = vrot.slane %v581_v25, 4  ;;  %v625_v48 = vadd.f32 %v620_v27, %v615_v37 }
 0x1c3   :  { %v583_v30 = vpop.f32.mrf.mxu0  ;;  %v624_v38 = vadd.f32 %v621_v34, %v614_v29 }
 0x1c4   :  { %v642_v40 = vrot.slane %v583_v30, 5 }
 0x1c5   :  { %v587_v32 = vpop.f32.mrf.mxu0 }
 0x1c6   :  { %v630_v36 = vrot.slane %v587_v32, 4 }
 0x1c7   :  { %v589_v39 = vpop.f32.mrf.mxu0 }
 0x1c8   :  { %v631_v41 = vsel %vm340_vm3, %v629_v35, %v630_v36  ;;  %v643_v42 = vrot.slane %v589_v39, 5 }
 0x1c9   :  { %v636_v43 = vadd.f32 %v631_v41, %v624_v38  ;;  %v593_v44 = vpop.f32.mrf.mxu0 }
 0x1ca   :  { %v644_v46 = vsel %vm641_vm9, %v642_v40, %v643_v42  ;;  %v632_v47 = vrot.slane %v593_v44, 4 }
 0x1cb   :  { %v649_v49 = vadd.f32 %v644_v46, %v636_v43  ;;  %v595_v50 = vpop.f32.mrf.mxu0 }
 0x1cc   :  { %v633_v51 = vsel %vm340_vm3, %v630_v36, %v632_v47  ;;  %v645_v52 = vrot.slane %v595_v50, 5 }
 0x1cd   :  { %v657_v54 = vadd.f32 %v8163_v45, %v649_v49  ;;  %v637_v55 = vadd.f32 %v633_v51, %v625_v48  ;;  %v8215_v51 = vld [vmem:[%s9791_s10] sm:$0xff] }
 0x1ce   :  { %v646_v56 = vsel %vm641_vm9, %v643_v42, %v645_v52 }
 0x1cf   :  { %v659_v59 = vmax.f32 %v657_v54, 0.0  ;;  %v650_v61 = vadd.f32 %v646_v56, %v637_v55 }
 0x1d1   :  { %6841 = vmatmul.mubr.msk.f32.vlgmr.msra.gmra.mxu1 %vm678_vm10, %v659_v59  ;;  %v658_v2 = vadd.f32 %v8163_v45, %v650_v61 }
 0x1d2   :  { %7351 = vmatpush3.msk.msra.mxu1 %vm685_vm7, %v8137_v63  ;;  %762 = vmatprep.mubr.f32.mxu1 %v7844_v3 }
 0x1d3   :  { %v660_v4 = vmax.f32 %v658_v2, 0.0  ;;  %7355 = vmatprep.subr.mxu1 %v7844_v3 }
 0x1d5   :  { %6842 = vmatmul.mubr.msk.f32.gmra.mxu1 %vm678_vm10, %v660_v4 }
 0x1d6   :  { %7352 = vmatprep.mubr.msk.f32.mxu1 %vm678_vm10, %v659_v59 }
 0x1d9   :  { %7353 = vmatmul.mubr.msk.f32.vlgmr.msra.gmra.mxu1 %vm678_vm10, %v660_v4 }
 0x1da   :  { %7356 = vmatpush3.msra.mxu1 %v8014_v5  ;;  %7357 = vmatprep.mubr.msk.f32.mxu1 %vm7845_vm2, %v7844_v3  ;;  %v1008_v5 = vpop.f32.mrf.mxu0 }
 0x1db   :  { %6864 = vmatprep.subr.msk.mxu1 %vm340_vm3, %v8052_v12 }
 0x1dc   :  { %v1010_v12 = vpop.f32.mrf.mxu0 }
 0x1dd   :  { %7358 = vmatmul.mubr.msk.f32.vlgmr.msra.gmra.mxu1 %vm81_vm0, %v8130_v62  ;;  %v1108_v19 = vrot.slane %v1010_v12, 1  ;;  %v1710_v12 = vcombine.high %v8215_v51, %v8215_v51 }
 0x1de   :  { %7360 = vmatprep.mubr.msk.f32.mxu1 %vm7845_vm2, %v7844_v3  ;;  %6865 = vmatpush1.msk.msra.mxu1 %vm340_vm3, %v8048_v11  ;;  %v1014_v6 = vpop.f32.mrf.mxu0 }
 0x1df   :  { %6874 = vmatprep.subr.msk.mxu1 %vm685_vm7, %v8126_v60 }
 0x1e0   :  { %v1016_v8 = vpop.f32.mrf.mxu0 }
 0x1e1   :  { %7361 = vmatmul.mubr.msk.f32.gmra.mxu1 %vm81_vm0, %v8146_v0  ;;  %v1109_v20 = vrot.slane %v1016_v8, 1 }
 0x1e2   :  { %7363 = vmatprep.mubr.msk.f32.mxu1 %vm7845_vm2, %v7844_v3  ;;  %v1020_v16 = vpop.f32.mrf.mxu0 }
 0x1e3   :  { %v1110_v30 = vsel %vm285_vm4, %v1108_v19, %v1109_v20  ;;  %v8293_v19 = vld [vmem:[%s9792_s11 + $0x20] sm:$0x3] }
 0x1e4   :  { %v1022_v26 = vpop.f32.mrf.mxu0  ;;  %v1116_v39 = vadd.f32 %v1110_v30, %v1008_v5 }
 0x1e5   :  { %7364 = vmatmul.mubr.msk.f32.gmra.mxu1 %vm81_vm0, %v8151_v1  ;;  %v8202_v1 = vld [vmem:[%s9828_s7] ss:$0 sm:$0xff]  ;;  %v1111_v32 = vrot.slane %v1022_v26, 1  ;;  %vm5376_vm0 = vcmask 48128  }
 0x1e6   :  { %1293 = vmatprep.mubr.f32.mxu1 %v7844_v3 }
 0x1e7   :  { %v1112_v46 = vsel %vm285_vm4, %v1109_v20, %v1111_v32  ;;  %v1118_v4 = vadd.f32 %v1111_v32, %v1020_v16  ;;  %v8267_v16 = vld [vmem:[%s9830_s1] sm:$0x3f]  ;;  %v8302_v20 = vld [vmem:[%s9792_s11 + $0x18] sm:$0x3] }
 0x1e8   :  { %v1117_v2 = vadd.f32 %v1112_v46, %v1014_v6 }
 0x291   :  { %v758_v62 = vpop.f32.mrf.mxu1 }
 0x293   :  { %v760_v7 = vpop.f32.mrf.mxu1 }
 0x294   :  { %v846_v60 = vrot.slane %v760_v7, 1 }
 0x295   :  { %v764_v11 = vpop.f32.mrf.mxu1 }
 0x297   :  { %v766_v9 = vpop.f32.mrf.mxu1 }
 0x298   :  { %v847_v10 = vrot.slane %v766_v9, 1 }
 0x299   :  { %v7354_v14 = vpop.f32.mrf.mxu1 }
 0x29a   :  { %v848_v0 = vsel %vm285_vm4, %v846_v60, %v847_v10  ;;  %v852_v15 = vadd.f32 %v847_v10, %v764_v11  ;;  %v856_v17 = vrot.slane %v7354_v14, 2 }
 0x29b   :  { %v835_v18 = vpop.f32.mrf.mxu1  ;;  %v851_v23 = vadd.f32 %v848_v0, %v758_v62 }
 0x29c   :  { %v861_v21 = vadd.f32 %v856_v17, %v852_v15  ;;  %v855_v22 = vrot.slane %v835_v18, 2  ;;  %v8258_v15 = vld [vmem:[%s9829_s9] sm:$0xff]  ;;  %v8288_v18 = vld [vmem:[%s9830_s1 + $0x8] sm:$0x3f] }
 0x29d   :  { %v1091_v24 = vpop.f32.mrf.mxu1 }
 0x29e   :  { %v869_v25 = vadd.f32 %v8202_v1, %v861_v21  ;;  %v857_v27 = vsel %vm300_vm5, %v855_v22, %v856_v17  ;;  %v1122_v37 = vrot.slane %v1091_v24, 2  ;;  %v8278_v17 = vld [vmem:[%s9829_s9 + $0x8] sm:$0xff]  ;;  %v8316_v22 = vld [vmem:[%s9792_s11] sm:$0xff] }
 0x29f   :  { %v860_v28 = vadd.f32 %v857_v27, %v851_v23  ;;  %v7359_v29 = vpop.f32.mrf.mxu1  ;;  %v8309_v21 = vld [vmem:[%s9792_s11 + $0x8] sm:$0xff]  ;;  %v8331_v24 = vld [vmem:[%s9796_s15] sm:$0x1f] }
 0x2a0   :  { %v871_v31 = vmax.f32 %v869_v25, 0.0  ;;  %v8324_v23 = vld [vmem:[%s9796_s15 + $0x8] sm:$0x1f] }
 0x2a1   :  { %v868_v34 = vadd.f32 %v8202_v1, %v860_v28  ;;  %v1096_v35 = vpop.f32.mrf.mxu1 }
 0x2a2   :  { %913 = vst [vmem:[#allocation3 + $0x10] sm:$0x1] %v871_v31  ;;  %v921_v36 = vrot.slane %v871_v31, %v8115_v57  ;;  %v1123_v38 = vrot.slane %v1096_v35, 2 }
 0x2a3   :  { %v870_v40 = vmax.f32 %v868_v34, 0.0  ;;  %v7362_v41 = vpop.f32.mrf.mxu1 }
 0x2a4   :  { %v6852_v42 = vrot.slane %v921_v36, 9  ;;  %v926_v43 = vcombine.high %v921_v36, %v921_v36  ;;  %v1124_v44 = vsel %vm300_vm5, %v1122_v37, %v1123_v38 }
 0x2a5   :  { %872 = vst [vmem:[#allocation3] sm:$0x1] %v870_v40  ;;  %v880_v47 = vrot.slane %v870_v40, %v8115_v57  ;;  %v892_v48 = vcombine.high %v870_v40, %v870_v40  ;;  %v1130_v49 = vadd.f32 %v1124_v44, %v1116_v39  ;;  %v1101_v50 = vpop.f32.mrf.mxu1 }
 0x2a6   :  { %925 = vst [vmem:[#allocation3 + $0x12] sm:$0x1] %v6852_v42  ;;  %928 = vst [vmem:[#allocation3 + $0x14] sm:$0x1] %v926_v43  ;;  %v1125_v52 = vrot.slane %v1101_v50, 2 }
 0x2a7   :  { %v6847_v54 = vrot.slane %v880_v47, 9  ;;  %v885_v55 = vcombine.high %v880_v47, %v880_v47  ;;  %v899_v56 = vrot.slane %v892_v48, %v8115_v57  ;;  %6849 = vst.sshfl [vmem:[#allocation3 + $0x8] sm:$0x1 pattern:$0x76325410] %v892_v48  ;;  %v1133_v59 = vadd.f32 %v8074_v33, %v1130_v49  ;;  %v7365_v61 = vpop.f32.mrf.mxu1 }
 0x2a8   :  { %v1126_v5 = vsel %vm300_vm5, %v1123_v38, %v1125_v52  ;;  %v1132_v60 = vadd.f32 %v1125_v52, %v1118_v4 }
 0x2a9   :  { %884 = vst [vmem:[#allocation3 + $0x2] sm:$0x1] %v6847_v54  ;;  %887 = vst [vmem:[#allocation3 + $0x4] sm:$0x1] %v885_v55  ;;  %v6848_v62 = vrot.slane %v885_v55, 9  ;;  %v6850_v7 = vrot.slane %v899_v56, 9  ;;  %v906_v11 = vcombine.high %v899_v56, %v899_v56  ;;  %v1131_v9 = vadd.f32 %v1126_v5, %v1117_v2 }
 0x2aa   :  { %v1136_v8 = vmax.f32 %v1133_v59, 0.0  ;;  %v1135_v14 = vadd.f32 %v8074_v33, %v1132_v60 }
 0x2ab   :  { %891 = vst [vmem:[#allocation3 + $0x6] sm:$0x1] %v6848_v62  ;;  %905 = vst [vmem:[#allocation3 + $0xa] sm:$0x1] %v6850_v7  ;;  %v6851_v10 = vrot.slane %v906_v11, 9  ;;  %v1134_v6 = vadd.f32 %v8074_v33, %v1131_v9 }
 0x2ac   :  { %908 = vst [vmem:[#allocation3 + $0xc] sm:$0x1] %v906_v11  ;;  %6861 = vmatmul.mubr.msk.f32.vlgmr.msra.gmra.mxu0 %vm330_vm6, %v1136_v8  ;;  %6866 = vmatmul.mubr.msk.f32.vlgmr.msra.gmra.mxu1 %vm330_vm6, %v1136_v8  ;;  %v1688_v33 = vld [vmem:[%s9795_s14] sm:$0x77] }
 0x2ad   :  { %6870 = vmatpush1.msk.msra.mxu0 %vm340_vm3, %v8061_v13  ;;  %1218 = vmatprep.mubr.f32.mxu0 %v7844_v3  ;;  %912 = vst [vmem:[#allocation3 + $0xe] sm:$0x1] %v6851_v10  ;;  %v1137_v0 = vmax.f32 %v1134_v6, 0.0  ;;  %v1138_v13 = vmax.f32 %v1135_v14, 0.0  ;;  %v8353_v6 = vld [vmem:[%s9797_s16] sm:$0x7] }
 0x2ae   :  { %1299 = vmatprep.mubr.f32.mxu1 %v7844_v3  ;;  %6887 = vmatprep.subr.msk.mxu0 %vm340_vm3, %v1710_v12 }
 0x2af   :  { %6875 = vmatpush1.msk.msra.mxu1 %vm685_vm7, %v8118_v58  ;;  %v1883_v58 = vcombine.high %v1688_v33, %v1688_v33 }
 0x2b0   :  { %7366 = vmatprep.subr.msk.mxu1 %vm685_vm7, %v8137_v63  ;;  %6862 = vmatmul.mubr.msk.f32.gmra.mxu0 %vm330_vm6, %v1137_v0 }
 0x2b1   :  { %6867 = vmatmul.mubr.msk.f32.gmra.mxu1 %vm330_vm6, %v1137_v0  ;;  %1224 = vmatprep.mubr.f32.mxu0 %v7844_v3 }
 0x2b2   :  { %1305 = vmatprep.mubr.f32.mxu1 %v7844_v3 }
 0x2b4   :  { %6863 = vmatmul.mubr.msk.f32.gmra.mxu0 %vm330_vm6, %v1138_v13 }
 0x2b5   :  { %6868 = vmatmul.mubr.msk.f32.gmra.mxu1 %vm330_vm6, %v1138_v13  ;;  %1374 = vmatprep.mubr.f32.mxu0 %v7844_v3 }
 0x2b6   :  { %1518 = vmatprep.mubr.f32.mxu1 %v7844_v3 }
 0x2b8   :  { %6871 = vmatmul.mubr.msk.f32.vlgmr.msra.gmra.mxu0 %vm330_vm6, %v1136_v8 }
 0x2b9   :  { %1380 = vmatprep.mubr.f32.mxu0 %v7844_v3  ;;  %6888 = vmatpush1.msk.msra.mxu0 %vm340_vm3, %v8215_v51 }
 0x2ba   :  { %6892 = vmatprep.subr.msk.mxu0 %vm641_vm9, %v1883_v58 }
 0x2bc   :  { %6872 = vmatmul.mubr.msk.f32.gmra.mxu0 %vm330_vm6, %v1137_v0 }
 0x2bd   :  { %1386 = vmatprep.mubr.f32.mxu0 %v7844_v3 }
 0x2c0   :  { %6873 = vmatmul.mubr.msk.f32.gmra.mxu0 %vm330_vm6, %v1138_v13  ;;  %v8357_v13 = vsub.s32 0, %v8105_v53 }
 0x2c1   :  { %1784 = vmatprep.mubr.f32.mxu0 %v7844_v3 }
 0x2c4   :  { %6889 = vmatmul.mubr.msk.f32.vlgmr.msra.gmra.mxu0 %vm330_vm6, %v8258_v15 }
 0x2c5   :  { %6893 = vmatpush1.msk.msra.mxu0 %vm641_vm9, %v1688_v33  ;;  %1958 = vmatprep.mubr.f32.mxu0 %v7844_v3 }
 0x2c6   :  { %6898 = vmatprep.subr.msk.mxu0 %vm340_vm3, %v1710_v12 }
 0x2c8   :  { %6894 = vmatmul.mubr.msk.f32.vlgmr.msra.gmra.mxu0 %vm1884_vm11, %v8267_v16 }
 0x2c9   :  { %6899 = vmatpush1.msk.msra.mxu0 %vm340_vm3, %v8215_v51  ;;  %2107 = vmatprep.mubr.f32.mxu0 %v7844_v3 }
 0x2ca   :  { %6904 = vmatprep.subr.msk.mxu0 %vm641_vm9, %v1883_v58 }
 0x2cc   :  { %6900 = vmatmul.mubr.msk.f32.vlgmr.msra.gmra.mxu0 %vm330_vm6, %v8278_v17 }
 0x2cd   :  { %6905 = vmatpush1.msk.msra.mxu0 %vm641_vm9, %v1688_v33  ;;  %2257 = vmatprep.mubr.f32.mxu0 %v7844_v3 }
 0x2ce   :  { %6909 = vmatprep.subr.msk.mxu0 %vm685_vm7, %v8293_v19 }
 0x2d0   :  { %6906 = vmatmul.mubr.msk.f32.vlgmr.msra.gmra.mxu0 %vm1884_vm11, %v8288_v18 }
 0x2d1   :  { %6910 = vmatpush1.msk.msra.mxu0 %vm685_vm7, %v8302_v20  ;;  %2454 = vmatprep.mubr.f32.mxu0 %v7844_v3 }
 0x2d2   :  { %2420 = vmatprep.subr.mxu0 %v8309_v21 }
 0x2d3   :  { %2421 = vmatpush1.msra.mxu0 %v8316_v22 }
 0x2d4   :  { %2455 = vmatmul.mubr.f32.vlgmr.msra.gmra.mxu0 %v7844_v3  ;;  %6916 = vmatprep.subr.msk.mxu0 %vm618_vm8, %v8324_v23 }
 0x2d5   :  { %2677 = vmatprep.mubr.f32.mxu0 %v7844_v3  ;;  %6917 = vmatpush1.msk.msra.mxu0 %vm618_vm8, %v8331_v24 }
 0x2d6   :  { %6923 = vmatprep.subr.msk.mxu0 %vm685_vm7, %v8293_v19 }
 0x2d8   :  { %2678 = vmatmul.mubr.f32.vlgmr.msra.gmra.mxu0 %v7844_v3 }
 0x2d9   :  { %6924 = vmatpush1.msk.msra.mxu0 %vm685_vm7, %v8302_v20  ;;  %2879 = vmatprep.mubr.f32.mxu0 %v7844_v3 }
 0x2da   :  { %2845 = vmatprep.subr.mxu0 %v8309_v21 }
 0x2db   :  { %2846 = vmatpush1.msra.mxu0 %v8316_v22 }
 0x2dc   :  { %6932 = vmatprep.subr.msk.mxu0 %vm618_vm8, %v8324_v23 }
 0x36c   :  { %v1214_v25 = vpop.f32.mrf.mxu0  ;;  %v1295_v26 = vpop.f32.mrf.mxu1 }
 0x36d   :  { %v1404_v43 = vrot.slane %v1295_v26, 2 }
 0x36e   :  { %v1216_v27 = vpop.f32.mrf.mxu0  ;;  %v1297_v28 = vpop.f32.mrf.mxu1 }
 0x36f   :  { %v1395_v34 = vrot.slane %v1216_v27, 1  ;;  %v1413_v51 = vrot.slane %v1297_v28, 3  ;;  %v8364_v27 = vsub.s32 1, %v8105_v53  ;;  %v1869_v28 = vrot.slane %v8353_v6, %v8357_v13 }
 0x370   :  { %v1220_v29 = vpop.f32.mrf.mxu0 }
 0x371   :  { %v1301_v30 = vpop.f32.mrf.mxu1 }
 0x372   :  { %v1222_v31 = vpop.f32.mrf.mxu0  ;;  %v1405_v38 = vrot.slane %v1301_v30, 2 }
 0x373   :  { %v1303_v32 = vpop.f32.mrf.mxu1  ;;  %v1396_v35 = vrot.slane %v1222_v31, 1 }
 0x374   :  { %v1226_v36 = vpop.f32.mrf.mxu0  ;;  %v1406_v46 = vsel %vm300_vm5, %v1404_v43, %v1405_v38  ;;  %v1414_v47 = vrot.slane %v1303_v32, 3  ;;  %v1873_v32 = vrot.slane %v8353_v6, %v8364_v27 }
 0x375   :  { %v1307_v37 = vpop.f32.mrf.mxu1  ;;  %v1397_v39 = vsel %vm285_vm4, %v1395_v34, %v1396_v35  ;;  %v1401_v48 = vadd.f32 %v1396_v35, %v1220_v29 }
 0x376   :  { %v1400_v40 = vadd.f32 %v1397_v39, %v1214_v25  ;;  %v1227_v41 = vpop.f32.mrf.mxu0  ;;  %v1415_v54 = vsel %vm618_vm8, %v1413_v51, %v1414_v47  ;;  %v8466_v51 = vld [vmem:[%s9798_s17] sm:$0x7] }
 0x377   :  { %v1308_v42 = vpop.f32.mrf.mxu1  ;;  %v1410_v59 = vadd.f32 %v1405_v38, %v1401_v48 }
 0x378   :  { %v1376_v44 = vpop.f32.mrf.mxu0  ;;  %v1409_v49 = vadd.f32 %v1406_v46, %v1400_v40  ;;  %v8450_v46 = vld [vmem:[%s9793_s12] sm:$0x7] }
 0x379   :  { %v1423_v55 = vrot.slane %v1376_v44, 4  ;;  %v1419_v9 = vadd.f32 %v1414_v47, %v1410_v59  ;;  %v8455_v47 = vld [vmem:[%s9794_s13] sm:$0x7]  ;;  %v1696_v48 = vrot.slane %v8450_v46, %v8357_v13 }
 0x37a   :  { %v1378_v50 = vpop.f32.mrf.mxu0  ;;  %v1418_v61 = vadd.f32 %v1415_v54, %v1409_v49  ;;  %v8461_v49 = vrot.slane %v8455_v47, %v8357_v13 }
 0x37b   :  { %v1435_v4 = vrot.slane %v1378_v50, 5 }
 0x37c   :  { %v1382_v52 = vpop.f32.mrf.mxu0 }
 0x37d   :  { %v1424_v56 = vrot.slane %v1382_v52, 4 }
 0x37e   :  { %v1384_v2 = vpop.f32.mrf.mxu0 }
 0x37f   :  { %v1425_v5 = vsel %vm340_vm3, %v1423_v55, %v1424_v56  ;;  %v1436_v12 = vrot.slane %v1384_v2, 5  ;;  %v8474_v55 = vrot.slane %v8466_v51, %v8357_v13 }
 0x380   :  { %v1430_v62 = vadd.f32 %v1425_v5, %v1418_v61  ;;  %v1388_v7 = vpop.f32.mrf.mxu0 }
 0x381   :  { %v1437_v11 = vsel %vm641_vm9, %v1435_v4, %v1436_v12  ;;  %v1426_v8 = vrot.slane %v1388_v7, 4 }
 0x382   :  { %v1442_v60 = vadd.f32 %v1437_v11, %v1430_v62  ;;  %v1390_v10 = vpop.f32.mrf.mxu0 }
 0x383   :  { %v1427_v14 = vsel %vm340_vm3, %v1424_v56, %v1426_v8  ;;  %v1438_v0 = vrot.slane %v1390_v10, 5  ;;  %v1700_v10 = vrot.slane %v8450_v46, %v8364_v27 }
 0x384   :  { %v1444_v33 = vadd.f32 %v8163_v45, %v1442_v60  ;;  %v1431_v58 = vadd.f32 %v1427_v14, %v1419_v9  ;;  %v8360_v25 = vpop.f32.mrf.mxu0  ;;  %v8488_v60 = vrot.slane %v8455_v47, %v8364_v27 }
 0x385   :  { %v1439_v26 = vsel %vm641_vm9, %v1436_v12, %v1438_v0  ;;  %v8469_v52 = vadd.f32 %v8360_v25, %v1696_v48  ;;  %v8496_v25 = vrot.slane %v8466_v51, %v8364_v27 }
 0x386   :  { %v1446_v29 = vmax.f32 %v1444_v33, 0.0  ;;  %v1443_v30 = vadd.f32 %v1439_v26, %v1431_v58  ;;  %v8368_v31 = vpop.f32.mrf.mxu0 }
 0x387   :  { %v8499_v26 = vadd.f32 %v8368_v31, %v1700_v10 }
 0x388   :  { %6876 = vmatmul.mubr.msk.f32.vlgmr.msra.gmra.mxu1 %vm678_vm10, %v1446_v29  ;;  %v1445_v34 = vadd.f32 %v8163_v45, %v1443_v30  ;;  %v1960_v35 = vpop.f32.mrf.mxu0  ;;  %v1686_v45 = vld [vmem:[%s9791_s10 + $0x8] sm:$0xf]  ;;  %s9831_s10 = sld [smem:[#allocation12_spill]] }
 0x389   :  { %7367 = vmatpush3.msk.msra.mxu1 %vm685_vm7, %v8137_v63  ;;  %1524 = vmatprep.mubr.f32.mxu1 %v7844_v3  ;;  %v1961_v36 = vadd.f32 %v1960_v35, %v1869_v28  ;;  %v1689_v63 = vld [vmem:[%s9795_s14 + $0x8] sm:$0x7] }
 0x38a   :  { %v1447_v37 = vmax.f32 %v1445_v34, 0.0  ;;  %7371 = vmatprep.subr.mxu1 %v7844_v3  ;;  %v1962_v38 = vpop.f32.mrf.mxu0 }
 0x38b   :  { %2035 = vst [vmem:[#allocation5 + $0x28] sm:$0x3f] %v1961_v36  ;;  %v1963_v39 = vadd.f32 %v1962_v38, %v1873_v32 }
 0x38c   :  { %6877 = vmatmul.mubr.msk.f32.gmra.mxu1 %vm678_vm10, %v1447_v37 }
 0x38d   :  { %7368 = vmatprep.mubr.msk.f32.mxu1 %vm678_vm10, %v1446_v29  ;;  %2036 = vst [vmem:[#allocation5 + $0x10] sm:$0x3f] %v1963_v39 }
 0x390   :  { %7369 = vmatmul.mubr.msk.f32.vlgmr.msra.gmra.mxu1 %vm678_vm10, %v1447_v37 }
 0x391   :  { %7372 = vmatpush3.msk.msra.mxu1 %vm340_vm3, %v1686_v45  ;;  %7373 = vmatprep.mubr.msk.f32.mxu1 %vm7845_vm2, %v7844_v3 }
 0x392   :  { %7376 = vmatprep.subr.mxu1 %v7844_v3  ;;  %v8480_v12 = vld [vmem:[#allocation5 + $0x28] sm:$0x3f] }
 0x394   :  { %7374 = vmatmul.mubr.msk.f32.vlgmr.msra.gmra.mxu1 %vm330_vm6, %v8258_v15  ;;  %v8412_v15 = vld [vmem:[%s9792_s11 + $0x28] sm:$0x3]  ;;  %v8505_v38 = vld [vmem:[#allocation5 + $0x10] sm:$0x3f] }
 0x395   :  { %7377 = vmatpush3.msk.msra.mxu1 %vm641_vm9, %v1689_v63  ;;  %7378 = vmatprep.mubr.msk.f32.mxu1 %vm7845_vm2, %v7844_v3 }
 0x396   :  { %7381 = vmatprep.subr.mxu1 %v7844_v3 }
 0x398   :  { %7379 = vmatmul.mubr.msk.f32.vlgmr.msra.gmra.mxu1 %vm1884_vm11, %v8267_v16  ;;  %v8419_v16 = vld [vmem:[%s9792_s11 + $0x10] sm:$0xff] }
 0x399   :  { %7382 = vmatpush3.msk.msra.mxu1 %vm340_vm3, %v1686_v45  ;;  %7383 = vmatprep.mubr.msk.f32.mxu1 %vm7845_vm2, %v7844_v3 }
 0x39a   :  { %7386 = vmatprep.subr.mxu1 %v7844_v3 }
 0x39c   :  { %7384 = vmatmul.mubr.msk.f32.vlgmr.msra.gmra.mxu1 %vm330_vm6, %v8278_v17  ;;  %v8429_v17 = vld [vmem:[%s9796_s15 + $0x10] sm:$0x1f] }
 0x39d   :  { %7387 = vmatpush3.msk.msra.mxu1 %vm641_vm9, %v1689_v63  ;;  %7388 = vmatprep.mubr.msk.f32.mxu1 %vm7845_vm2, %v7844_v3 }
 0x39e   :  { %7391 = vmatprep.subr.mxu1 %v7844_v3 }
 0x3a0   :  { %7389 = vmatmul.mubr.msk.f32.vlgmr.msra.gmra.mxu1 %vm1884_vm11, %v8288_v18  ;;  %v2109_v18 = vpop.f32.mrf.mxu0 }
 0x3a1   :  { %7392 = vmatpush3.msk.msra.mxu1 %vm685_vm7, %v8412_v15  ;;  %7395 = vmatprep.mubr.msk.f32.mxu1 %vm7845_vm2, %v7844_v3  ;;  %v8476_v59 = vadd.f32 %v2109_v18, %v1696_v48 }
 0x3a2   :  { %7393 = vmatprep.subr.mxu1 %v7844_v3  ;;  %v2111_v40 = vpop.f32.mrf.mxu0 }
 0x3a3   :  { %7394 = vmatpush3.msra.mxu1 %v8419_v16  ;;  %v8501_v30 = vadd.f32 %v2111_v40, %v1700_v10 }
 0x3a4   :  { %7396 = vmatmul.mubr.f32.vlgmr.msra.gmra.mxu1 %v7844_v3  ;;  %7398 = vmatprep.subr.mxu1 %v7844_v3  ;;  %v2259_v41 = vpop.f32.mrf.mxu0 }
 0x3a5   :  { %7399 = vmatpush3.msk.msra.mxu1 %vm618_vm8, %v8429_v17  ;;  %7400 = vmatprep.mubr.msk.f32.mxu1 %vm7845_vm2, %v7844_v3  ;;  %v2260_v42 = vadd.f32 %v2259_v41, %v1869_v28 }
 0x3a6   :  { %7403 = vmatprep.subr.mxu1 %v7844_v3  ;;  %v2261_v43 = vpop.f32.mrf.mxu0 }
 0x3a7   :  { %2335 = vst [vmem:[#allocation5] sm:$0x3f] %v2260_v42  ;;  %v2262_v44 = vadd.f32 %v2261_v43, %v1873_v32 }
 0x3a8   :  { %7401 = vmatmul.mubr.f32.vlgmr.msra.gmra.mxu1 %v7844_v3  ;;  %v2456_v50 = vpop.f32.mrf.mxu0 }
 0x3a9   :  { %7404 = vmatpush3.msk.msra.mxu1 %vm685_vm7, %v8412_v15  ;;  %7407 = vmatprep.mubr.msk.f32.mxu1 %vm7845_vm2, %v7844_v3  ;;  %2336 = vst [vmem:[#allocation5 + $0x18] sm:$0x3f] %v2262_v44  ;;  %v2457_v54 = vadd.f32 %v2456_v50, %v8461_v49 }
 0x3aa   :  { %7405 = vmatprep.subr.mxu1 %v7844_v3  ;;  %v2458_v56 = vpop.f32.mrf.mxu0 }
 0x3ab   :  { %7406 = vmatpush3.msra.mxu1 %v8419_v16  ;;  %v2532_v61 = vrot.slane %v2457_v54, 1  ;;  %v2535_v4 = vadd.f32 %v2457_v54, %v8469_v52  ;;  %v2459_v58 = vadd.f32 %v2458_v56, %v8488_v60 }
 0x3ac   :  { %7410 = vmatprep.subr.mxu1 %v7844_v3  ;;  %v2679_v2 = vpop.f32.mrf.mxu0 }
 0x3ad   :  { %v2680_v5 = vadd.f32 %v2679_v2, %v8474_v55  ;;  %v2536_v62 = vadd.f32 %v2532_v61, %v8476_v59  ;;  %v6912_v8 = vmul.f32 -1.442695, %v2535_v4  ;;  %v2550_v32 = vrot.slane %v2459_v58, 1 }
 0x3ae   :  { %v8483_v11 = vld [vmem:[#allocation5] sm:$0x3f]  ;;  %v2681_v29 = vpop.f32.mrf.mxu0  ;;  %v2553_v37 = vadd.f32 %v2459_v58, %v8499_v26 }
 0x3af   :  { %v2755_v7 = vrot.slane %v2680_v5, 1  ;;  %v2758_v9 = vadd.f32 %v2680_v5, %v8480_v12  ;;  %v6913_v14 = vmul.f32 -1.442695, %v2536_v62  ;;  %7527 = vpow2.f32 %v6912_v8 }
 0x3b0   :  { %v2682_v35 = vadd.f32 %v2681_v29, %v8496_v25  ;;  %v2554_v39 = vadd.f32 %v2550_v32, %v8501_v30  ;;  %v8508_v63 = vld [vmem:[#allocation5 + $0x18] sm:$0x3f]  ;;  %v6914_v41 = vmul.f32 -1.442695, %v2553_v37  ;;  %v8514_v8 = vsub.s32 2, %v8105_v53 }
 0x3b1   :  { %v2759_v0 = vadd.f32 %v2755_v7, %v8483_v11  ;;  %v6919_v33 = vmul.f32 -1.442695, %v2758_v9  ;;  %7529 = vpow2.f32 %v6913_v14 }
 0x3b2   :  { %v2773_v31 = vrot.slane %v2682_v35, 1  ;;  %v2776_v18 = vadd.f32 %v2682_v35, %v8505_v38  ;;  %v6915_v44 = vmul.f32 -1.442695, %v2554_v39  ;;  %v1877_v29 = vrot.slane %v8353_v6, %v8514_v8 }
 0x3b3   :  { %v6920_v28 = vmul.f32 -1.442695, %v2759_v0  ;;  %7531 = vpow2.f32 %v6919_v33 }
 0x3b4   :  { %v2777_v48 = vadd.f32 %v2773_v31, %v8508_v63  ;;  %v6921_v4 = vmul.f32 -1.442695, %v2776_v18 }
 0x3b5   :  { %7533 = vpow2.f32 %v6920_v28 }
 0x3b6   :  { %7535 = vpow2.f32 %v6914_v41  ;;  %v6922_v10 = vmul.f32 -1.442695, %v2777_v48 }
 0x3b7   :  { %7537 = vpow2.f32 %v6915_v44 }
 0x3b8   :  { %7539 = vpow2.f32 %v6921_v4 }
 0x3b9   :  { %7541 = vpow2.f32 %v6922_v10 }
 0x3bc   :  { %v7528_v2 = vpop.eup %7527 }
 0x3bd   :  { %v2543_v33 = vadd.f32 1.0, %v7528_v2 }
 0x3be   :  { %v7530_v9 = vpop.eup %7529 }
 0x3bf   :  { %v2544_v37 = vadd.f32 1.0, %v7530_v9  ;;  %7543 = vrcp.f32 %v2543_v33 }
 0x3c0   :  { %v7532_v32 = vpop.eup %7531 }
 0x3c1   :  { %v2766_v18 = vadd.f32 1.0, %v7532_v32  ;;  %7545 = vrcp.f32 %v2544_v37  ;;  %v1704_v37 = vrot.slane %v8450_v46, %v8514_v8 }
 0x3c2   :  { %v7534_v31 = vpop.eup %7533 }
 0x3c3   :  { %v2767_v6 = vadd.f32 1.0, %v7534_v31  ;;  %7547 = vrcp.f32 %v2766_v18 }
 0x3c5   :  { %7549 = vrcp.f32 %v2767_v6 }
 0x448   :  { %v1520_v34 = vpop.f32.mrf.mxu1 }
 0x44a   :  { %v1522_v36 = vpop.f32.mrf.mxu1 }
 0x44b   :  { %v1608_v42 = vrot.slane %v1522_v36, 1 }
 0x44c   :  { %v1526_v45 = vpop.f32.mrf.mxu1 }
 0x44e   :  { %v1528_v40 = vpop.f32.mrf.mxu1 }
 0x44f   :  { %v1609_v43 = vrot.slane %v1528_v40, 1 }
 0x450   :  { %v7370_v50 = vpop.f32.mrf.mxu1 }
 0x451   :  { %v1610_v54 = vsel %vm285_vm4, %v1608_v42, %v1609_v43  ;;  %v1614_v56 = vadd.f32 %v1609_v43, %v1526_v45  ;;  %v1618_v61 = vrot.slane %v7370_v50, 2 }
 0x452   :  { %v1597_v5 = vpop.f32.mrf.mxu1  ;;  %v1613_v14 = vadd.f32 %v1610_v54, %v1520_v34 }
 0x453   :  { %v1623_v62 = vadd.f32 %v1618_v61, %v1614_v56  ;;  %v1617_v7 = vrot.slane %v1597_v5, 2  ;;  %v7536_v5 = vpop.eup %7535 }
 0x454   :  { %v8516_v0 = vpop.f32.mrf.mxu1 }
 0x455   :  { %v1625_v58 = vadd.f32 %v8202_v1, %v1623_v62  ;;  %v1619_v28 = vsel %vm300_vm5, %v1617_v7, %v1618_v61 }
 0x456   :  { %v1622_v35 = vadd.f32 %v1619_v28, %v1613_v14  ;;  %v7375_v36 = vpop.f32.mrf.mxu1  ;;  %v7538_v14 = vpop.eup %7537 }
 0x457   :  { %v1627_v39 = vmax.f32 %v1625_v58, 0.0  ;;  %v8528_v58 = vrot.slane %v8455_v47, %v8514_v8  ;;  %v2561_v36 = vadd.f32 1.0, %v7536_v5  ;;  %v8535_v47 = vrot.slane %v8466_v51, %v8514_v8 }
 0x458   :  { %v1624_v34 = vadd.f32 %v8202_v1, %v1622_v35  ;;  %v2031_v45 = vpop.f32.mrf.mxu1  ;;  %v7540_v35 = vpop.eup %7539 }
 0x459   :  { %1669 = vst [vmem:[#allocation3 + $0x11] sm:$0x1] %v1627_v39  ;;  %v1677_v40 = vrot.slane %v1627_v39, %v8115_v57  ;;  %v2032_v41 = vadd.f32 %v2031_v45, %v1877_v29  ;;  %v2562_v39 = vadd.f32 1.0, %v7538_v14  ;;  %v2784_v18 = vadd.f32 1.0, %v7540_v35 }
 0x45a   :  { %v1626_v42 = vmax.f32 %v1624_v34, 0.0  ;;  %v7380_v43 = vpop.f32.mrf.mxu1  ;;  %v7542_v34 = vpop.eup %7541  ;;  %7551 = vrcp.f32 %v2561_v36 }
 0x45b   :  { %v6886_v44 = vrot.slane %v1677_v40, 9  ;;  %v1682_v48 = vcombine.high %v1677_v40, %v1677_v40  ;;  %2037 = vst [vmem:[#allocation5 + $0x8] sm:$0x3f] %v2032_v41  ;;  %v7544_v45 = vpop.eup %7543  ;;  %v8538_v41 = vadd.f32 %v8516_v0, %v1704_v37  ;;  %7553 = vrcp.f32 %v2562_v39 }
 0x45c   :  { %1628 = vst [vmem:[#allocation3 + $0x1] sm:$0x1] %v1626_v42  ;;  %v1636_v50 = vrot.slane %v1626_v42, %v8115_v57  ;;  %v1648_v54 = vcombine.high %v1626_v42, %v1626_v42  ;;  %v2180_v56 = vpop.f32.mrf.mxu1  ;;  %v7546_v43 = vpop.eup %7545  ;;  %v2785_v6 = vadd.f32 1.0, %v7542_v34  ;;  %7555 = vrcp.f32 %v2784_v18 }
 0x45d   :  { %1681 = vst [vmem:[#allocation3 + $0x13] sm:$0x1] %v6886_v44  ;;  %1684 = vst [vmem:[#allocation3 + $0x15] sm:$0x1] %v1682_v48  ;;  %v8540_v48 = vadd.f32 %v2180_v56, %v1704_v37 }
 0x45e   :  { %v6881_v1 = vrot.slane %v1636_v50, 9  ;;  %v1641_v61 = vcombine.high %v1636_v50, %v1636_v50  ;;  %v1655_v2 = vrot.slane %v1648_v54, %v8115_v57  ;;  %6883 = vst.sshfl [vmem:[#allocation3 + $0x9] sm:$0x1 pattern:$0x76325410] %v1648_v54  ;;  %v7385_v4 = vpop.f32.mrf.mxu1 }
 0x460   :  { %1640 = vst [vmem:[#allocation3 + $0x3] sm:$0x1] %v6881_v1  ;;  %1643 = vst [vmem:[#allocation3 + $0x5] sm:$0x1] %v1641_v61  ;;  %v6882_v62 = vrot.slane %v1641_v61, 9  ;;  %v6884_v7 = vrot.slane %v1655_v2, 9  ;;  %v1662_v9 = vcombine.high %v1655_v2, %v1655_v2  ;;  %v2330_v10 = vpop.f32.mrf.mxu1  ;;  %v7548_v1 = vpop.eup %7547 }
 0x461   :  { %v2331_v33 = vadd.f32 %v2330_v10, %v1877_v29  ;;  %v7550_v5 = vpop.eup %7549 }
 0x462   :  { %1647 = vst [vmem:[#allocation3 + $0x7] sm:$0x1] %v6882_v62  ;;  %1661 = vst [vmem:[#allocation3 + $0xb] sm:$0x1] %v6884_v7  ;;  %v6885_v28 = vrot.slane %v1662_v9, 9  ;;  %v7390_v32 = vpop.f32.mrf.mxu1 }
 0x463   :  { %1664 = vst [vmem:[#allocation3 + $0xd] sm:$0x1] %v1662_v9  ;;  %2337 = vst [vmem:[#allocation5 + $0x20] sm:$0x3f] %v2331_v33  ;;  %v8545_v62 = vld [vmem:[#allocation5 + $0x8] sm:$0x3f] }
 0x464   :  { %1668 = vst [vmem:[#allocation3 + $0xf] sm:$0x1] %v6885_v28  ;;  %v2527_v31 = vpop.f32.mrf.mxu1 }
 0x465   :  { %v2528_v29 = vadd.f32 %v2527_v31, %v8528_v58 }
 0x466   :  { %v7397_v40 = vpop.f32.mrf.mxu1 }
 0x467   :  { %v2568_v42 = vrot.slane %v2528_v29, 1  ;;  %v2571_v46 = vmul.f32 %v7544_v45, %v2528_v29  ;;  %v7552_v14 = vpop.eup %7551 }
 0x468   :  { %v2750_v44 = vpop.f32.mrf.mxu1  ;;  %v7554_v33 = vpop.eup %7553  ;;  %v2577_v36 = vsub.f32 1.0, %v7552_v14  ;;  %v2581_v18 = vmul.f32 0.0, %v7552_v14 }
 0x469   :  { %v2572_v50 = vmul.f32 %v7546_v43, %v2568_v42  ;;  %v2573_v54 = vadd.f32 %v2571_v46, %v8538_v41  ;;  %v2751_v51 = vadd.f32 %v2750_v44, %v8535_v47  ;;  %v7556_v28 = vpop.eup %7555  ;;  %v2578_v37 = vsub.f32 1.0, %v7554_v33 }
 0x46a   :  { %v7402_v61 = vpop.f32.mrf.mxu1  ;;  %v8548_v9 = vld [vmem:[#allocation5 + $0x20] sm:$0x3f]  ;;  %v2582_v29 = vmul.f32 0.0, %v7554_v33  ;;  %v2800_v42 = vsub.f32 1.0, %v7556_v28 }
 0x46b   :  { %v2574_v2 = vadd.f32 %v2572_v50, %v8540_v48  ;;  %7557 = vtanh.f32 %v2573_v54  ;;  %v2791_v0 = vrot.slane %v2751_v51, 1  ;;  %v2794_v4 = vmul.f32 %v7548_v1, %v2751_v51 }
 0x46c   :  { %7559 = vrcp.f32 %v2785_v6  ;;  %v2804_v61 = vmul.f32 0.0, %v7556_v28 }
 0x46d   :  { %7561 = vtanh.f32 %v2574_v2  ;;  %v2795_v56 = vmul.f32 %v7550_v5, %v2791_v0  ;;  %v2796_v7 = vadd.f32 %v2794_v4, %v8545_v62 }
 0x46f   :  { %v2797_v10 = vadd.f32 %v2795_v56, %v8548_v9  ;;  %7563 = vtanh.f32 %v2796_v7 }
 0x471   :  { %7565 = vtanh.f32 %v2797_v10 }
 0x478   :  { %v7558_v32 = vpop.eup %7557 }
 0x479   :  { %v7560_v35 = vpop.eup %7559  ;;  %v2579_v31 = vmul.f32 %v7558_v32, %v2577_v36 }
 0x47a   :  { %v7562_v39 = vpop.eup %7561  ;;  %v2801_v46 = vsub.f32 1.0, %v7560_v35  ;;  %v2805_v6 = vmul.f32 0.0, %v7560_v35 }
 0x47b   :  { %v2580_v34 = vmul.f32 %v7562_v39, %v2578_v37  ;;  %v8553_v44 = vadd.f32 %v2581_v18, %v2579_v31 }
 0x47c   :  { %v7564_v45 = vpop.eup %7563 }
 0x47d   :  { %v8551_v40 = vadd.f32 %v2582_v29, %v2580_v34  ;;  %v2802_v54 = vmul.f32 %v7564_v45, %v2800_v42 }
 0x47e   :  { %v7566_v43 = vpop.eup %7565 }
 0x47f   :  { %v2810_v50 = vrot.slane %v8551_v40, 7  ;;  %v2803_v51 = vmul.f32 %v7566_v43, %v2801_v46  ;;  %v8567_v0 = vadd.f32 %v2804_v61, %v2802_v54 }
 0x481   :  { %v2812_v1 = vsel %vm2811_vm13, %v2810_v50, %v8553_v44  ;;  %v8560_v2 = vadd.f32 %v2805_v6, %v2803_v51 }
 0x482   :  { %6925 = vmatmul.mubr.msk.f32.vlgmr.msra.gmra.mxu0 %vm2377_vm12, %v2812_v1  ;;  %7408 = vmatmul.mubr.msk.f32.vlgmr.msra.gmra.mxu1 %vm2377_vm12, %v2812_v1 }
 0x483   :  { %6933 = vmatpush1.msk.msra.mxu0 %vm618_vm8, %v8331_v24  ;;  %3083 = vmatprep.mubr.f32.mxu0 %v7844_v3  ;;  %v3015_v4 = vrot.slane %v8560_v2, 7 }
 0x484   :  { %7411 = vmatpush3.msk.msra.mxu1 %vm618_vm8, %v8429_v17  ;;  %7412 = vmatprep.mubr.msk.f32.mxu1 %vm7845_vm2, %v7844_v3 }
 0x485   :  { %v3016_v5 = vsel %vm2811_vm13, %v3015_v4, %v8567_v0  ;;  %6941 = vmatprep.subr.msk.mxu0 %vm685_vm7, %v8293_v19  ;;  %7415 = vmatprep.subr.mxu1 %v7844_v3 }
 0x486   :  { %6934 = vmatmul.mubr.msk.f32.vlgmr.msra.gmra.mxu0 %vm2601_vm14, %v3016_v5  ;;  %7413 = vmatmul.mubr.msk.f32.vlgmr.msra.gmra.mxu1 %vm2601_vm14, %v3016_v5 }
 0x487   :  { %6942 = vmatpush1.msk.msra.mxu0 %vm685_vm7, %v8302_v20  ;;  %7416 = vmatpush3.msk.msra.mxu1 %vm685_vm7, %v8412_v15 }
 0x488   :  { %3253 = vmatprep.subr.mxu0 %v8309_v21  ;;  %7417 = vmatprep.subr.mxu1 %v7844_v3 }
 0x489   :  { %3254 = vmatpush1.msra.mxu0 %v8316_v22  ;;  %3287 = vmatprep.mubr.f32.mxu0 %v7844_v3 }
 0x48a   :  { %7418 = vmatpush3.msra.mxu1 %v8419_v16  ;;  %7419 = vmatprep.mubr.msk.f32.mxu1 %vm7845_vm2, %v7844_v3 }
 0x48b   :  { %6950 = vmatprep.subr.msk.mxu0 %vm618_vm8, %v8324_v23  ;;  %7422 = vmatprep.subr.mxu1 %v7844_v3 }
 0x542   :  { %v2881_v56 = vpop.f32.mrf.mxu0  ;;  %v2952_v7 = vpop.f32.mrf.mxu1 }
 0x543   :  { %v2882_v10 = vadd.f32 %v2881_v56, %v8461_v49 }
 0x544   :  { %v2883_v14 = vpop.f32.mrf.mxu0  ;;  %v7409_v33 = vpop.f32.mrf.mxu1 }
 0x545   :  { %v2957_v28 = vrot.slane %v2882_v10, 7  ;;  %v2961_v32 = vadd.f32 %v2882_v10, %v8476_v59  ;;  %v2884_v35 = vadd.f32 %v2883_v14, %v8488_v60 }
 0x546   :  { %v3085_v36 = vpop.f32.mrf.mxu0  ;;  %v3156_v37 = vpop.f32.mrf.mxu1 }
 0x547   :  { %v2960_v39 = vadd.f32 %v2957_v28, %v8469_v52  ;;  %v6929_v31 = vmul.f32 -1.442695, %v2961_v32  ;;  %v3086_v34 = vadd.f32 %v3085_v36, %v8474_v55  ;;  %v2975_v42 = vrot.slane %v2884_v35, 7 }
 0x548   :  { %v3087_v29 = vpop.f32.mrf.mxu0  ;;  %v7414_v45 = vpop.f32.mrf.mxu1  ;;  %v2979_v54 = vadd.f32 %v2884_v35, %v8501_v30 }
 0x549   :  { %v6928_v18 = vmul.f32 -1.442695, %v2960_v39  ;;  %7567 = vpow2.f32 %v6929_v31  ;;  %v3161_v46 = vrot.slane %v3086_v34, 7  ;;  %v3165_v43 = vadd.f32 %v3086_v34, %v8483_v11 }
 0x54a   :  { %v3088_v6 = vadd.f32 %v3087_v29, %v8496_v25  ;;  %v2978_v61 = vadd.f32 %v2975_v42, %v8499_v26  ;;  %v6931_v10 = vmul.f32 -1.442695, %v2979_v54 }
 0x54b   :  { %7569 = vpow2.f32 %v6928_v18  ;;  %v3164_v51 = vadd.f32 %v3161_v46, %v8480_v12  ;;  %v6938_v1 = vmul.f32 -1.442695, %v3165_v43 }
 0x54c   :  { %v3179_v56 = vrot.slane %v3088_v6, 7  ;;  %v3183_v14 = vadd.f32 %v3088_v6, %v8508_v63  ;;  %v6930_v33 = vmul.f32 -1.442695, %v2978_v61  ;;  %v2953_v6 = vadd.f32 %v2952_v7, %v8528_v58 }
 0x54d   :  { %v6937_v5 = vmul.f32 -1.442695, %v3164_v51  ;;  %7571 = vpow2.f32 %v6938_v1 }
 0x54e   :  { %v3182_v28 = vadd.f32 %v3179_v56, %v8505_v38  ;;  %v6940_v32 = vmul.f32 -1.442695, %v3183_v14  ;;  %v2993_v56 = vrot.slane %v2953_v6, 7 }
 0x54f   :  { %7573 = vpow2.f32 %v6937_v5 }
 0x550   :  { %7575 = vpow2.f32 %v6931_v10  ;;  %v6939_v35 = vmul.f32 -1.442695, %v3182_v28 }
 0x551   :  { %7577 = vpow2.f32 %v6930_v33  ;;  %v3157_v33 = vadd.f32 %v3156_v37, %v8535_v47 }
 0x552   :  { %7579 = vpow2.f32 %v6940_v32 }
 0x556   :  { %v7568_v36 = vpop.eup %7567 }
 0x557   :  { %v2969_v39 = vadd.f32 1.0, %v7568_v36 }
 0x558   :  { %v7570_v31 = vpop.eup %7569 }
 0x559   :  { %v2968_v34 = vadd.f32 1.0, %v7570_v31  ;;  %7581 = vrcp.f32 %v2969_v39  ;;  %v3197_v31 = vrot.slane %v3157_v33, 7 }
 0x55a   :  { %7583 = vpow2.f32 %v6939_v35  ;;  %v7572_v29 = vpop.eup %7571 }
 0x55b   :  { %7585 = vrcp.f32 %v2968_v34  ;;  %v3173_v45 = vadd.f32 1.0, %v7572_v29 }
 0x55c   :  { %v7574_v18 = vpop.eup %7573 }
 0x55d   :  { %v3172_v42 = vadd.f32 1.0, %v7574_v18  ;;  %7587 = vrcp.f32 %v3173_v45  ;;  %v7576_v46 = vpop.eup %7575 }
 0x55e   :  { %v7578_v43 = vpop.eup %7577  ;;  %v2987_v54 = vadd.f32 1.0, %v7576_v46 }
 0x55f   :  { %7589 = vrcp.f32 %v3172_v42  ;;  %v7580_v51 = vpop.eup %7579  ;;  %v2986_v1 = vadd.f32 1.0, %v7578_v43 }
 0x560   :  { %7591 = vrcp.f32 %v2987_v54  ;;  %v3191_v28 = vadd.f32 1.0, %v7580_v51  ;;  %v3006_v54 = vrot.slane %v8553_v44, 7 }
 0x561   :  { %7593 = vrcp.f32 %v2986_v1 }
 0x566   :  { %v7582_v61 = vpop.eup %7581 }
 0x567   :  { %v7584_v5 = vpop.eup %7583  ;;  %v2997_v10 = vmul.f32 %v7582_v61, %v2953_v6 }
 0x568   :  { %v7586_v14 = vpop.eup %7585  ;;  %v3190_v35 = vadd.f32 1.0, %v7584_v5 }
 0x569   :  { %v2996_v32 = vmul.f32 %v7586_v14, %v2993_v56  ;;  %v2999_v36 = vadd.f32 %v2997_v10, %v8540_v48 }
 0x56a   :  { %v7588_v39 = vpop.eup %7587 }
 0x56b   :  { %v2998_v7 = vadd.f32 %v2996_v32, %v8538_v41  ;;  %7595 = vtanh.f32 %v2999_v36  ;;  %v3201_v34 = vmul.f32 %v7588_v39, %v3157_v33  ;;  %v3210_v36 = vrot.slane %v8567_v0, 7 }
 0x56c   :  { %7597 = vrcp.f32 %v3191_v28  ;;  %v7590_v29 = vpop.eup %7589 }
 0x56d   :  { %7599 = vtanh.f32 %v2998_v7  ;;  %v3200_v45 = vmul.f32 %v7590_v29, %v3197_v31  ;;  %v3203_v18 = vadd.f32 %v3201_v34, %v8548_v9  ;;  %v7592_v42 = vpop.eup %7591 }
 0x56e   :  { %7601 = vrcp.f32 %v3190_v35  ;;  %v7594_v46 = vpop.eup %7593  ;;  %v3003_v1 = vsub.f32 1.0, %v7592_v42  ;;  %v3010_v28 = vmul.f32 %v7592_v42, %v2810_v50 }
 0x56f   :  { %v3202_v37 = vadd.f32 %v3200_v45, %v8545_v62  ;;  %7603 = vtanh.f32 %v3203_v18  ;;  %v3002_v51 = vsub.f32 1.0, %v7594_v46  ;;  %v3009_v14 = vmul.f32 %v7594_v46, %v3006_v54 }
 0x571   :  { %7605 = vtanh.f32 %v3202_v37 }
 0x578   :  { %v7596_v43 = vpop.eup %7595 }
 0x579   :  { %v7598_v6 = vpop.eup %7597  ;;  %v3005_v10 = vmul.f32 %v7596_v43, %v3003_v1 }
 0x57a   :  { %v7600_v61 = vpop.eup %7599  ;;  %v3207_v39 = vsub.f32 1.0, %v7598_v6  ;;  %v3214_v40 = vmul.f32 %v7598_v6, %v3015_v4 }
 0x57b   :  { %v7602_v5 = vpop.eup %7601  ;;  %v3004_v56 = vmul.f32 %v7600_v61, %v3002_v51  ;;  %v8621_v31 = vadd.f32 %v3010_v28, %v3005_v10 }
 0x57c   :  { %v7604_v33 = vpop.eup %7603  ;;  %v3206_v35 = vsub.f32 1.0, %v7602_v5  ;;  %v3213_v45 = vmul.f32 %v7602_v5, %v3210_v36 }
 0x57d   :  { %v8618_v32 = vadd.f32 %v3009_v14, %v3004_v56  ;;  %v3209_v29 = vmul.f32 %v7604_v33, %v3207_v39 }
 0x57e   :  { %v7606_v7 = vpop.eup %7605 }
 0x57f   :  { %v3219_v44 = vrot.slane %v8618_v32, 1  ;;  %v3208_v34 = vmul.f32 %v7606_v7, %v3206_v35  ;;  %v8639_v0 = vadd.f32 %v3214_v40, %v3209_v29 }
 0x581   :  { %v3220_v18 = vsel %vm2811_vm13, %v8621_v31, %v3219_v44  ;;  %v8630_v50 = vadd.f32 %v3213_v45, %v3208_v34 }
 0x582   :  { %6943 = vmatmul.mubr.msk.f32.vlgmr.msra.gmra.mxu0 %vm2377_vm12, %v3220_v18  ;;  %7420 = vmatmul.mubr.msk.f32.vlgmr.msra.gmra.mxu1 %vm2377_vm12, %v3220_v18 }
 0x583   :  { %6951 = vmatpush1.msk.msra.mxu0 %vm618_vm8, %v8331_v24  ;;  %3495 = vmatprep.mubr.f32.mxu0 %v7844_v3  ;;  %v3427_v37 = vrot.slane %v8630_v50, 1 }
 0x584   :  { %7423 = vmatpush3.msk.msra.mxu1 %vm618_vm8, %v8429_v17  ;;  %7424 = vmatprep.mubr.msk.f32.mxu1 %vm7845_vm2, %v7844_v3 }
 0x585   :  { %6959 = vmatprep.subr.msk.mxu0 %vm685_vm7, %v8293_v19  ;;  %7427 = vmatprep.subr.mxu1 %v7844_v3  ;;  %v3428_v24 = vsel %vm2811_vm13, %v8639_v0, %v3427_v37 }
 0x586   :  { %6952 = vmatmul.mubr.msk.f32.vlgmr.msra.gmra.mxu0 %vm2601_vm14, %v3428_v24  ;;  %7425 = vmatmul.mubr.msk.f32.vlgmr.msra.gmra.mxu1 %vm2601_vm14, %v3428_v24 }
 0x587   :  { %6960 = vmatpush1.msk.msra.mxu0 %vm685_vm7, %v8302_v20  ;;  %7428 = vmatpush3.msk.msra.mxu1 %vm685_vm7, %v8412_v15 }
 0x588   :  { %3670 = vmatprep.subr.mxu0 %v8309_v21  ;;  %7429 = vmatprep.subr.mxu1 %v7844_v3 }
 0x589   :  { %3671 = vmatpush1.msra.mxu0 %v8316_v22  ;;  %3704 = vmatprep.mubr.f32.mxu0 %v7844_v3 }
 0x58a   :  { %7430 = vmatpush3.msra.mxu1 %v8419_v16  ;;  %7431 = vmatprep.mubr.msk.f32.mxu1 %vm7845_vm2, %v7844_v3 }
 0x58b   :  { %6968 = vmatprep.subr.msk.mxu0 %vm618_vm8, %v8324_v23  ;;  %7434 = vmatprep.subr.mxu1 %v7844_v3 }
 0x642   :  { %v3289_v19 = vpop.f32.mrf.mxu0  ;;  %v3360_v20 = vpop.f32.mrf.mxu1 }
 0x643   :  { %v3290_v21 = vadd.f32 %v3289_v19, %v8461_v49 }
 0x644   :  { %v3291_v15 = vpop.f32.mrf.mxu0  ;;  %v7421_v2 = vpop.f32.mrf.mxu1 }
 0x645   :  { %v3365_v4 = vrot.slane %v3290_v21, 6  ;;  %v3366_v22 = vrot.slane %v3290_v21, 7  ;;  %v3292_v42 = vadd.f32 %v3291_v15, %v8488_v60 }
 0x646   :  { %v3497_v43 = vpop.f32.mrf.mxu0  ;;  %v3568_v6 = vpop.f32.mrf.mxu1 }
 0x647   :  { %v3369_v16 = vadd.f32 %v3365_v4, %v8469_v52  ;;  %v3370_v46 = vadd.f32 %v3366_v22, %v8476_v59  ;;  %v3498_v23 = vadd.f32 %v3497_v43, %v8474_v55  ;;  %v3384_v1 = vrot.slane %v3292_v42, 6 }
 0x648   :  { %v3499_v61 = vpop.f32.mrf.mxu0  ;;  %v7426_v5 = vpop.f32.mrf.mxu1  ;;  %v3385_v56 = vrot.slane %v3292_v42, 7 }
 0x649   :  { %v6946_v54 = vmul.f32 -1.442695, %v3369_v16  ;;  %v6947_v51 = vmul.f32 -1.442695, %v3370_v46  ;;  %v3573_v10 = vrot.slane %v3498_v23, 6  ;;  %v3574_v14 = vrot.slane %v3498_v23, 7 }
 0x64a   :  { %v3500_v33 = vadd.f32 %v3499_v61, %v8496_v25  ;;  %v3388_v36 = vadd.f32 %v3384_v1, %v8499_v26  ;;  %v3389_v7 = vadd.f32 %v3385_v56, %v8501_v30 }
 0x64b   :  { %7607 = vpow2.f32 %v6946_v54  ;;  %v3577_v28 = vadd.f32 %v3573_v10, %v8480_v12  ;;  %v3578_v35 = vadd.f32 %v3574_v14, %v8483_v11  ;;  %v3361_v54 = vadd.f32 %v3360_v20, %v8528_v58 }
 0x64c   :  { %7609 = vpow2.f32 %v6947_v51  ;;  %v3592_v39 = vrot.slane %v3500_v33, 6  ;;  %v3593_v34 = vrot.slane %v3500_v33, 7  ;;  %v6948_v18 = vmul.f32 -1.442695, %v3388_v36 }
 0x64d   :  { %v6955_v44 = vmul.f32 -1.442695, %v3577_v28  ;;  %v6956_v29 = vmul.f32 -1.442695, %v3578_v35  ;;  %v6949_v40 = vmul.f32 -1.442695, %v3389_v7  ;;  %v3569_v33 = vadd.f32 %v3568_v6, %v8535_v47 }
 0x64e   :  { %v3596_v45 = vadd.f32 %v3592_v39, %v8505_v38  ;;  %v3597_v37 = vadd.f32 %v3593_v34, %v8508_v63  ;;  %v3403_v56 = vrot.slane %v3361_v54, 6  ;;  %v3404_v14 = vrot.slane %v3361_v54, 7 }
 0x64f   :  { %7611 = vpow2.f32 %v6955_v44  ;;  %v3611_v34 = vrot.slane %v3569_v33, 6 }
 0x650   :  { %7613 = vpow2.f32 %v6956_v29  ;;  %v6957_v24 = vmul.f32 -1.442695, %v3596_v45  ;;  %v6958_v19 = vmul.f32 -1.442695, %v3597_v37  ;;  %v3612_v45 = vrot.slane %v3569_v33, 7 }
 0x651   :  { %7615 = vpow2.f32 %v6948_v18 }
 0x652   :  { %7617 = vpow2.f32 %v6949_v40 }
 0x653   :  { %7619 = vpow2.f32 %v6957_v24 }
 0x654   :  { %7621 = vpow2.f32 %v6958_v19 }
 0x658   :  { %v7608_v21 = vpop.eup %7607 }
 0x659   :  { %v7610_v15 = vpop.eup %7609  ;;  %v3377_v2 = vadd.f32 1.0, %v7608_v21 }
 0x65a   :  { %v3378_v4 = vadd.f32 1.0, %v7610_v15 }
 0x65b   :  { %7623 = vrcp.f32 %v3377_v2  ;;  %v3417_v2 = vrot.slane %v8618_v32, 7  ;;  %v3626_v32 = vrot.slane %v8639_v0, 7  ;;  %v8701_v0 = vld [vmem:[%s9796_s15] sm:$0x1f] }
 0x65c   :  { %7625 = vrcp.f32 %v3378_v4  ;;  %v7612_v22 = vpop.eup %7611 }
 0x65d   :  { %v7614_v42 = vpop.eup %7613  ;;  %v3585_v16 = vadd.f32 1.0, %v7612_v22 }
 0x65e   :  { %v3586_v46 = vadd.f32 1.0, %v7614_v42  ;;  %v7616_v43 = vpop.eup %7615  ;;  %v3418_v42 = vrot.slane %v8621_v31, 7 }
 0x65f   :  { %7627 = vrcp.f32 %v3585_v16  ;;  %v7618_v23 = vpop.eup %7617  ;;  %v3396_v1 = vadd.f32 1.0, %v7616_v43 }
 0x660   :  { %7629 = vrcp.f32 %v3586_v46  ;;  %v7620_v51 = vpop.eup %7619  ;;  %v3397_v61 = vadd.f32 1.0, %v7618_v23 }
 0x661   :  { %v7622_v5 = vpop.eup %7621  ;;  %v3604_v28 = vadd.f32 1.0, %v7620_v51  ;;  %7631 = vrcp.f32 %v3396_v1 }
 0x662   :  { %7633 = vrcp.f32 %v3397_v61  ;;  %v3605_v44 = vadd.f32 1.0, %v7622_v5  ;;  %v3625_v5 = vrot.slane %v8630_v50, 7 }
 0x663   :  { %7635 = vrcp.f32 %v3604_v28 }
 0x668   :  { %v7624_v10 = vpop.eup %7623 }
 0x669   :  { %v7626_v36 = vpop.eup %7625  ;;  %v3407_v35 = vmul.f32 %v7624_v10, %v3403_v56 }
 0x66a   :  { %v3408_v39 = vmul.f32 %v7626_v36, %v3404_v14 }
 0x66b   :  { %v3409_v7 = vadd.f32 %v3407_v35, %v8538_v41 }
 0x66c   :  { %v3410_v20 = vadd.f32 %v3408_v39, %v8540_v48  ;;  %v7628_v29 = vpop.eup %7627 }
 0x66d   :  { %7637 = vtanh.f32 %v3409_v7  ;;  %v7630_v18 = vpop.eup %7629  ;;  %v3615_v40 = vmul.f32 %v7628_v29, %v3611_v34 }
 0x66e   :  { %7639 = vtanh.f32 %v3410_v20  ;;  %v3616_v6 = vmul.f32 %v7630_v18, %v3612_v45  ;;  %v7632_v19 = vpop.eup %7631  ;;  %v8715_v18 = vld [vmem:[%s9792_s11 + $0x20] sm:$0x3] }
 0x66f   :  { %7641 = vrcp.f32 %v3605_v44  ;;  %v3617_v37 = vadd.f32 %v3615_v40, %v8545_v62  ;;  %v7634_v21 = vpop.eup %7633  ;;  %v3413_v4 = vsub.f32 1.0, %v7632_v19  ;;  %v3421_v23 = vmul.f32 %v7632_v19, %v3417_v2  ;;  %v8754_v19 = vld [vmem:[%s9792_s11 + $0x10] sm:$0xff] }
 0x670   :  { %v3618_v24 = vadd.f32 %v3616_v6, %v8548_v9  ;;  %v7636_v15 = vpop.eup %7635  ;;  %v3414_v16 = vsub.f32 1.0, %v7634_v21  ;;  %v3422_v1 = vmul.f32 %v7634_v21, %v3418_v42  ;;  %v8733_v6 = vld [vmem:[%s9792_s11 + $0x28] sm:$0x3] }
 0x671   :  { %7643 = vtanh.f32 %v3617_v37  ;;  %v3621_v10 = vsub.f32 1.0, %v7636_v15  ;;  %v3629_v39 = vmul.f32 %v7636_v15, %v3625_v5  ;;  %v8740_v37 = vld [vmem:[%s9792_s11 + $0x8] sm:$0xff] }
 0x672   :  { %7645 = vtanh.f32 %v3618_v24  ;;  %v8747_v24 = vld [vmem:[%s9792_s11] sm:$0xff]  ;;  %v8762_v21 = vld [vmem:[%s9796_s15 + $0x8] sm:$0x1f] }
 0x67a   :  { %v7638_v22 = vpop.eup %7637 }
 0x67b   :  { %v7640_v46 = vpop.eup %7639  ;;  %v3415_v43 = vmul.f32 %v7638_v22, %v3413_v4 }
 0x67c   :  { %v7642_v54 = vpop.eup %7641  ;;  %v3416_v51 = vmul.f32 %v7640_v46, %v3414_v16 }
 0x67d   :  { %v8683_v61 = vadd.f32 %v3421_v23, %v3415_v43  ;;  %v3622_v31 = vsub.f32 1.0, %v7642_v54  ;;  %v3630_v44 = vmul.f32 %v7642_v54, %v3626_v32 }
 0x67e   :  { %v8686_v56 = vadd.f32 %v3422_v1, %v3416_v51  ;;  %v7644_v14 = vpop.eup %7643 }
 0x67f   :  { %v3635_v33 = vrot.slane %v8683_v61, 2  ;;  %v7646_v28 = vpop.eup %7645  ;;  %v3623_v35 = vmul.f32 %v7644_v14, %v3621_v10 }
 0x680   :  { %v3636_v36 = vrot.slane %v8686_v56, 1  ;;  %v3624_v7 = vmul.f32 %v7646_v28, %v3622_v31 }
 0x681   :  { %v8692_v34 = vadd.f32 %v3629_v39, %v3623_v35 }
 0x682   :  { %v3637_v20 = vsel %vm2811_vm13, %v3636_v36, %v3635_v33  ;;  %v8696_v50 = vadd.f32 %v3630_v44, %v3624_v7 }
 0x683   :  { %6961 = vmatmul.mubr.msk.f32.vlgmr.msra.gmra.mxu0 %vm2377_vm12, %v3637_v20  ;;  %7432 = vmatmul.mubr.msk.f32.vlgmr.msra.gmra.mxu1 %vm2377_vm12, %v3637_v20  ;;  %v3844_v29 = vrot.slane %v8692_v34, 2 }
 0x684   :  { %6969 = vmatpush1.msk.msra.mxu0 %vm618_vm8, %v8701_v0  ;;  %3913 = vmatprep.mubr.f32.mxu0 %v7844_v3  ;;  %v3845_v45 = vrot.slane %v8696_v50, 1 }
 0x685   :  { %7435 = vmatpush3.msk.msra.mxu1 %vm618_vm8, %v8429_v17  ;;  %7436 = vmatprep.mubr.msk.f32.mxu1 %vm7845_vm2, %v7844_v3  ;;  %v8726_v17 = vld [vmem:[%s9792_s11 + $0x18] sm:$0x3]  ;;  %s7847_s11 = smov [#allocation6]  }
 0x686   :  { %6977 = vmatprep.subr.msk.mxu0 %vm685_vm7, %v8715_v18  ;;  %7439 = vmatprep.subr.mxu1 %v7844_v3  ;;  %v3846_v40 = vsel %vm2811_vm13, %v3845_v45, %v3844_v29  ;;  %s6808_s9 = sshll.u32 %s7847_s11, 4  ;;  %s6809_s9 = int_to_ptr.vmem [resolvable:$true] %s6808_s9 }
 0x687   :  { %6970 = vmatmul.mubr.msk.f32.vlgmr.msra.gmra.mxu0 %vm2601_vm14, %v3846_v40  ;;  %7437 = vmatmul.mubr.msk.f32.vlgmr.msra.gmra.mxu1 %vm2601_vm14, %v3846_v40  ;;  %p7827_p1 = scmp.lt.s32.totalorder %s6809_s9, %s6809_s9 }
 0x688   :  { %6978 = vmatpush1.msk.msra.mxu0 %vm685_vm7, %v8726_v17  ;;  %7440 = vmatpush3.msk.msra.mxu1 %vm685_vm7, %v8733_v6 }
 0x689   :  { %4088 = vmatprep.subr.mxu0 %v8740_v37  ;;  %7441 = vmatprep.subr.mxu1 %v7844_v3 }
 0x68a   :  { %4089 = vmatpush1.msra.mxu0 %v8747_v24  ;;  %4122 = vmatprep.mubr.f32.mxu0 %v7844_v3 }
 0x68b   :  { %7442 = vmatpush3.msra.mxu1 %v8754_v19  ;;  %7443 = vmatprep.mubr.msk.f32.mxu1 %vm7845_vm2, %v7844_v3 }
 0x68c   :  { %6986 = vmatprep.subr.msk.mxu0 %vm618_vm8, %v8762_v21  ;;  %7446 = vmatprep.subr.mxu1 %v7844_v3 }
 0x743   :  { %v3706_v15 = vpop.f32.mrf.mxu0  ;;  %v3777_v2 = vpop.f32.mrf.mxu1 }
 0x744   :  { %v3707_v4 = vadd.f32 %v3706_v15, %v8461_v49 }
 0x745   :  { %v3708_v22 = vpop.f32.mrf.mxu0  ;;  %v7433_v42 = vpop.f32.mrf.mxu1 }
 0x746   :  { %v3782_v16 = vrot.slane %v3707_v4, 5  ;;  %v3783_v46 = vrot.slane %v3707_v4, 6  ;;  %v3709_v43 = vadd.f32 %v3708_v22, %v8488_v60 }
 0x747   :  { %v3915_v51 = vpop.f32.mrf.mxu0  ;;  %v3986_v1 = vpop.f32.mrf.mxu1 }
 0x748   :  { %v3786_v23 = vadd.f32 %v3782_v16, %v8469_v52  ;;  %v3787_v54 = vadd.f32 %v3783_v46, %v8476_v59  ;;  %v3916_v5 = vadd.f32 %v3915_v51, %v8474_v55  ;;  %v3801_v32 = vrot.slane %v3709_v43, 5 }
 0x749   :  { %v3917_v33 = vpop.f32.mrf.mxu0  ;;  %v7438_v31 = vpop.f32.mrf.mxu1  ;;  %v3802_v28 = vrot.slane %v3709_v43, 6 }
 0x74a   :  { %v6964_v10 = vmul.f32 -1.442695, %v3786_v23  ;;  %v6965_v14 = vmul.f32 -1.442695, %v3787_v54  ;;  %v3991_v36 = vrot.slane %v3916_v5, 5  ;;  %v3992_v35 = vrot.slane %v3916_v5, 6 }
 0x74b   :  { %v3918_v39 = vadd.f32 %v3917_v33, %v8496_v25  ;;  %v3805_v44 = vadd.f32 %v3801_v32, %v8499_v26  ;;  %v3806_v45 = vadd.f32 %v3802_v28, %v8501_v30  ;;  %v3778_v33 = vadd.f32 %v3777_v2, %v8528_v58 }
 0x74c   :  { %7647 = vpow2.f32 %v6964_v10  ;;  %v3995_v7 = vadd.f32 %v3991_v36, %v8480_v12  ;;  %v3996_v20 = vadd.f32 %v3992_v35, %v8483_v11 }
 0x74d   :  { %7649 = vpow2.f32 %v6965_v14  ;;  %v4010_v29 = vrot.slane %v3918_v39, 5  ;;  %v4011_v15 = vrot.slane %v3918_v39, 6  ;;  %v6966_v42 = vmul.f32 -1.442695, %v3805_v44 }
 0x74e   :  { %v6973_v40 = vmul.f32 -1.442695, %v3995_v7  ;;  %v6974_v4 = vmul.f32 -1.442695, %v3996_v20  ;;  %v6967_v16 = vmul.f32 -1.442695, %v3806_v45  ;;  %v3987_v20 = vadd.f32 %v3986_v1, %v8535_v47 }
 0x74f   :  { %v4014_v22 = vadd.f32 %v4010_v29, %v8505_v38  ;;  %v4015_v46 = vadd.f32 %v4011_v15, %v8508_v63  ;;  %v3820_v39 = vrot.slane %v3778_v33, 5  ;;  %v3821_v44 = vrot.slane %v3778_v33, 6 }
 0x750   :  { %7651 = vpow2.f32 %v6973_v40 }
 0x751   :  { %7653 = vpow2.f32 %v6974_v4  ;;  %v6975_v43 = vmul.f32 -1.442695, %v4014_v22  ;;  %v6976_v12 = vmul.f32 -1.442695, %v4015_v46  ;;  %v4030_v46 = vrot.slane %v3987_v20, 6 }
 0x752   :  { %7655 = vpow2.f32 %v6966_v42  ;;  %v4029_v42 = vrot.slane %v3987_v20, 5 }
 0x753   :  { %7657 = vpow2.f32 %v6967_v16 }
 0x754   :  { %7659 = vpow2.f32 %v6975_v43 }
 0x755   :  { %7661 = vpow2.f32 %v6976_v12 }
 0x759   :  { %v7648_v23 = vpop.eup %7647 }
 0x75a   :  { %v7650_v11 = vpop.eup %7649  ;;  %v3794_v54 = vadd.f32 1.0, %v7648_v23 }
 0x75b   :  { %v3795_v51 = vadd.f32 1.0, %v7650_v11 }
 0x75c   :  { %7663 = vrcp.f32 %v3794_v54 }
 0x75d   :  { %7665 = vrcp.f32 %v3795_v51  ;;  %v7652_v5 = vpop.eup %7651 }
 0x75e   :  { %v7654_v10 = vpop.eup %7653  ;;  %v4003_v38 = vadd.f32 1.0, %v7652_v5 }
 0x75f   :  { %v4004_v14 = vadd.f32 1.0, %v7654_v10  ;;  %v7656_v32 = vpop.eup %7655  ;;  %v3834_v10 = vrot.slane %v8683_v61, 7  ;;  %v4044_v61 = vrot.slane %v8696_v50, 7 }
 0x760   :  { %7667 = vrcp.f32 %v4003_v38  ;;  %v7658_v63 = vpop.eup %7657  ;;  %v3813_v28 = vadd.f32 1.0, %v7656_v32  ;;  %v3835_v32 = vrot.slane %v8686_v56, 7 }
 0x761   :  { %7669 = vrcp.f32 %v4004_v14  ;;  %v7660_v31 = vpop.eup %7659  ;;  %v3814_v36 = vadd.f32 1.0, %v7658_v63 }
 0x762   :  { %v7662_v35 = vpop.eup %7661  ;;  %v4022_v29 = vadd.f32 1.0, %v7660_v31  ;;  %7671 = vrcp.f32 %v3813_v28 }
 0x763   :  { %7673 = vrcp.f32 %v3814_v36  ;;  %v4023_v22 = vadd.f32 1.0, %v7662_v35 }
 0x764   :  { %7675 = vrcp.f32 %v4022_v29 }
 0x769   :  { %v7664_v7 = vpop.eup %7663 }
 0x76a   :  { %v7666_v45 = vpop.eup %7665  ;;  %v3824_v40 = vmul.f32 %v7664_v7, %v3820_v39 }
 0x76b   :  { %v3825_v15 = vmul.f32 %v7666_v45, %v3821_v44 }
 0x76c   :  { %v3826_v4 = vadd.f32 %v3824_v40, %v8538_v41 }
 0x76d   :  { %v3827_v2 = vadd.f32 %v3825_v15, %v8540_v48  ;;  %v7668_v16 = vpop.eup %7667 }
 0x76e   :  { %7677 = vtanh.f32 %v3826_v4  ;;  %v7670_v43 = vpop.eup %7669  ;;  %v4033_v12 = vmul.f32 %v7668_v16, %v4029_v42 }
 0x76f   :  { %7679 = vtanh.f32 %v3827_v2  ;;  %v4034_v1 = vmul.f32 %v7670_v43, %v4030_v46  ;;  %v7672_v54 = vpop.eup %7671  ;;  %v8809_v46 = vld [vmem:[%s9796_s15 + $0x10] sm:$0x1f]  ;;  %s7822_s15 = scalar_lea.vmem %s6809_s9, 32 }
 0x770   :  { %7681 = vrcp.f32 %v4023_v22  ;;  %v4035_v23 = vadd.f32 %v4033_v12, %v8545_v62  ;;  %v7674_v51 = vpop.eup %7673  ;;  %v3830_v38 = vsub.f32 1.0, %v7672_v54  ;;  %v3838_v28 = vmul.f32 %v7672_v54, %v3834_v10  ;;  %p7823_p0 = scmp.ne.s32.totalorder %s6809_s9, %s7822_s15  ;;  %p7828_p2 = scmp.lt.s32.totalorder %s7822_s15, %s7822_s15 }
 0x771   :  { %v4036_v11 = vadd.f32 %v4034_v1, %v8548_v9  ;;  %v7676_v5 = vpop.eup %7675  ;;  %v3831_v63 = vsub.f32 1.0, %v7674_v51  ;;  %v3839_v62 = vmul.f32 %v7674_v51, %v3835_v32  ;;  %v4043_v9 = vrot.slane %v8692_v34, 7 }
 0x772   :  { %7683 = vtanh.f32 %v4035_v23  ;;  %v4039_v44 = vsub.f32 1.0, %v7676_v5  ;;  %p7829_p3 = por %p7828_p2, %p7827_p1 }
 0x773   :  { %7685 = vtanh.f32 %v4036_v11  ;;  %v4047_v4 = vmul.f32 %v7676_v5, %v4043_v9 }
 0x774   :  { %p7830_p4 = pnand %p7829_p3, %p7823_p0 }
 0x77b   :  { %v7678_v14 = vpop.eup %7677 }
 0x77c   :  { %v7680_v33 = vpop.eup %7679  ;;  %v3832_v31 = vmul.f32 %v7678_v14, %v3830_v38 }
 0x77d   :  { %v7682_v36 = vpop.eup %7681  ;;  %v3833_v35 = vmul.f32 %v7680_v33, %v3831_v63 }
 0x77e   :  { %v8787_v39 = vadd.f32 %v3838_v28, %v3832_v31  ;;  %v4040_v56 = vsub.f32 1.0, %v7682_v36  ;;  %v4048_v2 = vmul.f32 %v7682_v36, %v4044_v61 }
 0x77f   :  { %v8790_v7 = vadd.f32 %v3839_v62, %v3833_v35  ;;  %v7684_v20 = vpop.eup %7683 }
 0x780   :  { %v4053_v29 = vrot.slane %v8787_v39, 3  ;;  %v7686_v45 = vpop.eup %7685  ;;  %v4041_v15 = vmul.f32 %v7684_v20, %v4039_v44 }
 0x781   :  { %v4054_v40 = vrot.slane %v8790_v7, 2  ;;  %v4042_v22 = vmul.f32 %v7686_v45, %v4040_v56 }
 0x782   :  { %v8796_v16 = vadd.f32 %v4047_v4, %v4041_v15 }
 0x783   :  { %v4055_v42 = vsel %vm2811_vm13, %v4054_v40, %v4053_v29  ;;  %v8800_v34 = vadd.f32 %v4048_v2, %v4042_v22  ;;  %v8842_v29 = vld [vmem:[#allocation5 + $0x28] sm:$0x3f]  ;;  %v8846_v40 = vld [vmem:[#allocation5] sm:$0x3f] }
 0x784   :  { %6979 = vmatmul.mubr.msk.f32.vlgmr.msra.gmra.mxu0 %vm2377_vm12, %v4055_v42  ;;  %7444 = vmatmul.mubr.msk.f32.vlgmr.msra.gmra.mxu1 %vm2377_vm12, %v4055_v42  ;;  %v4262_v50 = vrot.slane %v8796_v16, 3 }
 0x785   :  { %6987 = vmatpush1.msk.msra.mxu0 %vm618_vm8, %v8701_v0  ;;  %4331 = vmatprep.mubr.f32.mxu0 %v7844_v3  ;;  %v4263_v43 = vrot.slane %v8800_v34, 2 }
 0x786   :  { %7447 = vmatpush3.msk.msra.mxu1 %vm618_vm8, %v8809_v46  ;;  %7448 = vmatprep.mubr.msk.f32.mxu1 %vm7845_vm2, %v7844_v3 }
 0x787   :  { %6995 = vmatprep.subr.msk.mxu0 %vm685_vm7, %v8715_v18  ;;  %7451 = vmatprep.subr.mxu1 %v7844_v3  ;;  %v4264_v12 = vsel %vm2811_vm13, %v4263_v43, %v4262_v50  ;;  %v8850_v43 = vld [vmem:[#allocation5 + $0x10] sm:$0x3f] }
 0x788   :  { %6988 = vmatmul.mubr.msk.f32.vlgmr.msra.gmra.mxu0 %vm2601_vm14, %v4264_v12  ;;  %7449 = vmatmul.mubr.msk.f32.vlgmr.msra.gmra.mxu1 %vm2601_vm14, %v4264_v12 }
 0x789   :  { %6996 = vmatpush1.msk.msra.mxu0 %vm685_vm7, %v8726_v17  ;;  %7452 = vmatpush3.msk.msra.mxu1 %vm685_vm7, %v8733_v6 }
 0x78a   :  { %4506 = vmatprep.subr.mxu0 %v8740_v37  ;;  %7453 = vmatprep.subr.mxu1 %v7844_v3 }
 0x78b   :  { %4507 = vmatpush1.msra.mxu0 %v8747_v24  ;;  %4540 = vmatprep.mubr.f32.mxu0 %v7844_v3 }
 0x78c   :  { %7454 = vmatpush3.msra.mxu1 %v8754_v19  ;;  %7455 = vmatprep.mubr.msk.f32.mxu1 %vm7845_vm2, %v7844_v3 }
 0x78d   :  { %7004 = vmatprep.subr.msk.mxu0 %vm618_vm8, %v8762_v21  ;;  %7458 = vmatprep.subr.mxu1 %v7844_v3 }
 0x844   :  { %v4124_v1 = vpop.f32.mrf.mxu0  ;;  %v4195_v23 = vpop.f32.mrf.mxu1 }
 0x845   :  { %v4125_v11 = vadd.f32 %v4124_v1, %v8461_v49 }
 0x846   :  { %v4126_v54 = vpop.f32.mrf.mxu0  ;;  %v7445_v51 = vpop.f32.mrf.mxu1 }
 0x847   :  { %v4200_v5 = vrot.slane %v4125_v11, 4  ;;  %v4201_v10 = vrot.slane %v4125_v11, 5  ;;  %v4127_v38 = vadd.f32 %v4126_v54, %v8488_v60  ;;  %v8853_v54 = vld [vmem:[#allocation5 + $0x18] sm:$0x3f] }
 0x848   :  { %v4333_v63 = vpop.f32.mrf.mxu0  ;;  %v4404_v33 = vpop.f32.mrf.mxu1 }
 0x849   :  { %v4204_v14 = vadd.f32 %v4200_v5, %v8469_v52  ;;  %v4205_v32 = vadd.f32 %v4201_v10, %v8476_v59  ;;  %v4334_v21 = vadd.f32 %v4333_v63, %v8474_v55  ;;  %v4219_v36 = vrot.slane %v4127_v38, 4 }
 0x84a   :  { %v4335_v35 = vpop.f32.mrf.mxu0  ;;  %v7450_v62 = vpop.f32.mrf.mxu1  ;;  %v4220_v9 = vrot.slane %v4127_v38, 5 }
 0x84b   :  { %v6982_v31 = vmul.f32 -1.442695, %v4204_v14  ;;  %v6983_v28 = vmul.f32 -1.442695, %v4205_v32  ;;  %v4409_v44 = vrot.slane %v4334_v21, 4  ;;  %v4410_v20 = vrot.slane %v4334_v21, 5 }
 0x84c   :  { %v4336_v61 = vadd.f32 %v4335_v35, %v8496_v25  ;;  %v4223_v45 = vadd.f32 %v4219_v36, %v8499_v26  ;;  %v4224_v22 = vadd.f32 %v4220_v9, %v8501_v30  ;;  %v4196_v9 = vadd.f32 %v4195_v23, %v8528_v58 }
 0x84d   :  { %7687 = vpow2.f32 %v6982_v31  ;;  %v4413_v56 = vadd.f32 %v8842_v29, %v4409_v44  ;;  %v4414_v15 = vadd.f32 %v8846_v40, %v4410_v20 }
 0x84e   :  { %7689 = vpow2.f32 %v6983_v28  ;;  %v4428_v4 = vrot.slane %v4336_v61, 4  ;;  %v4429_v42 = vrot.slane %v4336_v61, 5  ;;  %v6984_v1 = vmul.f32 -1.442695, %v4223_v45 }
 0x84f   :  { %v6991_v2 = vmul.f32 -1.442695, %v4413_v56  ;;  %v6992_v50 = vmul.f32 -1.442695, %v4414_v15  ;;  %v6985_v11 = vmul.f32 -1.442695, %v4224_v22  ;;  %v4405_v22 = vadd.f32 %v4404_v33, %v8535_v47 }
 0x850   :  { %v4432_v12 = vadd.f32 %v8850_v43, %v4428_v4  ;;  %v4433_v51 = vadd.f32 %v8853_v54, %v4429_v42  ;;  %v4238_v45 = vrot.slane %v4196_v9, 4  ;;  %v4239_v4 = vrot.slane %v4196_v9, 5 }
 0x851   :  { %7691 = vpow2.f32 %v6991_v2 }
 0x852   :  { %7693 = vpow2.f32 %v6992_v50  ;;  %v6993_v5 = vmul.f32 -1.442695, %v4432_v12  ;;  %v6994_v10 = vmul.f32 -1.442695, %v4433_v51  ;;  %v4447_v51 = vrot.slane %v4405_v22, 4 }
 0x853   :  { %7695 = vpow2.f32 %v6984_v1 }
 0x854   :  { %7697 = vpow2.f32 %v6985_v11 }
 0x855   :  { %7699 = vpow2.f32 %v6993_v5 }
 0x856   :  { %7701 = vpow2.f32 %v6994_v10  ;;  %v4448_v10 = vrot.slane %v4405_v22, 5 }
 0x85a   :  { %v7688_v38 = vpop.eup %7687 }
 0x85b   :  { %v7690_v14 = vpop.eup %7689  ;;  %v4212_v32 = vadd.f32 1.0, %v7688_v38 }
 0x85c   :  { %v4213_v63 = vadd.f32 1.0, %v7690_v14 }
 0x85d   :  { %7703 = vrcp.f32 %v4212_v32  ;;  %v8860_v32 = vld [vmem:[#allocation5 + $0x8] sm:$0x3f] }
 0x85e   :  { %7705 = vrcp.f32 %v4213_v63  ;;  %v7692_v21 = vpop.eup %7691 }
 0x85f   :  { %v7694_v31 = vpop.eup %7693  ;;  %v4421_v28 = vadd.f32 1.0, %v7692_v21  ;;  %v8863_v21 = vld [vmem:[#allocation5 + $0x20] sm:$0x3f] }
 0x860   :  { %v4422_v36 = vadd.f32 1.0, %v7694_v31  ;;  %v7696_v35 = vpop.eup %7695 }
 0x861   :  { %7707 = vrcp.f32 %v4421_v28  ;;  %v7698_v62 = vpop.eup %7697  ;;  %v4231_v20 = vadd.f32 1.0, %v7696_v35 }
 0x862   :  { %7709 = vrcp.f32 %v4422_v36  ;;  %v7700_v44 = vpop.eup %7699  ;;  %v4232_v61 = vadd.f32 1.0, %v7698_v62  ;;  %v4252_v62 = vrot.slane %v8787_v39, 7  ;;  %v4462_v39 = vrot.slane %v8800_v34, 7 }
 0x863   :  { %v7702_v56 = vpop.eup %7701  ;;  %v4440_v2 = vadd.f32 1.0, %v7700_v44  ;;  %7711 = vrcp.f32 %v4231_v20  ;;  %v4253_v20 = vrot.slane %v8790_v7, 7 }
 0x864   :  { %7713 = vrcp.f32 %v4232_v61  ;;  %v4441_v11 = vadd.f32 1.0, %v7702_v56 }
 0x865   :  { %7715 = vrcp.f32 %v4440_v2 }
 0x86a   :  { %v7704_v15 = vpop.eup %7703 }
 0x86b   :  { %v7706_v42 = vpop.eup %7705  ;;  %v4242_v50 = vmul.f32 %v7704_v15, %v4238_v45 }
 0x86c   :  { %v4243_v12 = vmul.f32 %v7706_v42, %v4239_v4 }
 0x86d   :  { %v4244_v1 = vadd.f32 %v4242_v50, %v8538_v41  ;;  %v4461_v50 = vrot.slane %v8796_v16, 7 }
 0x86e   :  { %v4245_v23 = vadd.f32 %v4243_v12, %v8540_v48  ;;  %v7708_v5 = vpop.eup %7707 }
 0x86f   :  { %7717 = vtanh.f32 %v4244_v1  ;;  %v7710_v38 = vpop.eup %7709  ;;  %v4451_v14 = vmul.f32 %v7708_v5, %v4447_v51 }
 0x870   :  { %7719 = vtanh.f32 %v4245_v23  ;;  %v4452_v33 = vmul.f32 %v7710_v38, %v4448_v10  ;;  %v7712_v28 = vpop.eup %7711 }
 0x871   :  { %7721 = vrcp.f32 %v4441_v11  ;;  %v4453_v63 = vadd.f32 %v8860_v32, %v4451_v14  ;;  %v7714_v36 = vpop.eup %7713  ;;  %v4248_v9 = vsub.f32 1.0, %v7712_v28  ;;  %v4256_v15 = vmul.f32 %v7712_v28, %v4252_v62 }
 0x872   :  { %v4454_v31 = vadd.f32 %v8863_v21, %v4452_v33  ;;  %v7716_v35 = vpop.eup %7715  ;;  %v4249_v61 = vsub.f32 1.0, %v7714_v36  ;;  %v4257_v2 = vmul.f32 %v7714_v36, %v4253_v20 }
 0x873   :  { %7723 = vtanh.f32 %v4453_v63  ;;  %v4457_v1 = vsub.f32 1.0, %v7716_v35  ;;  %v4465_v38 = vmul.f32 %v7716_v35, %v4461_v50 }
 0x874   :  { %7725 = vtanh.f32 %v4454_v31 }
 0x87c   :  { %v7718_v44 = vpop.eup %7717 }
 0x87d   :  { %v7720_v56 = vpop.eup %7719  ;;  %v4250_v45 = vmul.f32 %v7718_v44, %v4248_v9 }
 0x87e   :  { %v7722_v4 = vpop.eup %7721  ;;  %v4251_v22 = vmul.f32 %v7720_v56, %v4249_v61 }
 0x87f   :  { %v8868_v42 = vadd.f32 %v4256_v15, %v4250_v45  ;;  %v4458_v7 = vsub.f32 1.0, %v7722_v4  ;;  %v4466_v33 = vmul.f32 %v7722_v4, %v4462_v39 }
 0x880   :  { %v8871_v12 = vadd.f32 %v4257_v2, %v4251_v22  ;;  %v7724_v11 = vpop.eup %7723 }
 0x881   :  { %v4471_v23 = vrot.slane %v8868_v42, 4  ;;  %v7726_v51 = vpop.eup %7725  ;;  %v4459_v10 = vmul.f32 %v7724_v11, %v4457_v1 }
 0x882   :  { %v4472_v5 = vrot.slane %v8871_v12, 3  ;;  %v4460_v14 = vmul.f32 %v7726_v51, %v4458_v7 }
 0x883   :  { %v8877_v31 = vadd.f32 %v4465_v38, %v4459_v10 }
 0x884   :  { %v4473_v63 = vsel %vm2811_vm13, %v4472_v5, %v4471_v23  ;;  %v8881_v16 = vadd.f32 %v4466_v33, %v4460_v14 }
 0x885   :  { %6997 = vmatmul.mubr.msk.f32.vlgmr.msra.gmra.mxu0 %vm2377_vm12, %v4473_v63  ;;  %7456 = vmatmul.mubr.msk.f32.vlgmr.msra.gmra.mxu1 %vm2377_vm12, %v4473_v63  ;;  %v4680_v34 = vrot.slane %v8877_v31, 4 }
 0x886   :  { %7005 = vmatpush1.msk.msra.mxu0 %vm618_vm8, %v8701_v0  ;;  %4749 = vmatprep.mubr.f32.mxu0 %v7844_v3  ;;  %v4681_v28 = vrot.slane %v8881_v16, 3 }
 0x887   :  { %7459 = vmatpush3.msk.msra.mxu1 %vm618_vm8, %v8809_v46  ;;  %7460 = vmatprep.mubr.msk.f32.mxu1 %vm7845_vm2, %v7844_v3 }
 0x888   :  { %7013 = vmatprep.subr.msk.mxu0 %vm685_vm7, %v8715_v18  ;;  %7463 = vmatprep.subr.mxu1 %v7844_v3  ;;  %v4682_v36 = vsel %vm2811_vm13, %v4681_v28, %v4680_v34 }
 0x889   :  { %7006 = vmatmul.mubr.msk.f32.vlgmr.msra.gmra.mxu0 %vm2601_vm14, %v4682_v36  ;;  %7461 = vmatmul.mubr.msk.f32.vlgmr.msra.gmra.mxu1 %vm2601_vm14, %v4682_v36 }
 0x88a   :  { %7014 = vmatpush1.msk.msra.mxu0 %vm685_vm7, %v8726_v17  ;;  %7464 = vmatpush3.msk.msra.mxu1 %vm685_vm7, %v8733_v6 }
 0x88b   :  { %4924 = vmatprep.subr.mxu0 %v8740_v37  ;;  %7465 = vmatprep.subr.mxu1 %v7844_v3 }
 0x88c   :  { %4925 = vmatpush1.msra.mxu0 %v8747_v24  ;;  %4958 = vmatprep.mubr.f32.mxu0 %v7844_v3 }
 0x88d   :  { %7466 = vmatpush3.msra.mxu1 %v8754_v19  ;;  %7467 = vmatprep.mubr.msk.f32.mxu1 %vm7845_vm2, %v7844_v3 }
 0x88e   :  { %7022 = vmatprep.subr.msk.mxu0 %vm685_vm7, %v8715_v18  ;;  %7470 = vmatprep.subr.mxu1 %v7844_v3 }
 0x945   :  { %v4542_v0 = vpop.f32.mrf.mxu0  ;;  %v4613_v46 = vpop.f32.mrf.mxu1 }
 0x946   :  { %v4543_v35 = vadd.f32 %v4542_v0, %v8461_v49 }
 0x947   :  { %v4544_v62 = vpop.f32.mrf.mxu0  ;;  %v7457_v9 = vpop.f32.mrf.mxu1 }
 0x948   :  { %v4618_v44 = vrot.slane %v4543_v35, 3  ;;  %v4619_v20 = vrot.slane %v4543_v35, 4  ;;  %v4545_v61 = vadd.f32 %v4544_v62, %v8488_v60 }
 0x949   :  { %v4751_v15 = vpop.f32.mrf.mxu0  ;;  %v4822_v4 = vpop.f32.mrf.mxu1 }
 0x94a   :  { %v4622_v56 = vadd.f32 %v4618_v44, %v8469_v52  ;;  %v4623_v45 = vadd.f32 %v4619_v20, %v8476_v59  ;;  %v4752_v18 = vadd.f32 %v4751_v15, %v8474_v55  ;;  %v4637_v50 = vrot.slane %v4545_v61, 3 }
 0x94b   :  { %v4753_v1 = vpop.f32.mrf.mxu0  ;;  %v7462_v11 = vpop.f32.mrf.mxu1  ;;  %v4638_v39 = vrot.slane %v4545_v61, 4  ;;  %v4614_v15 = vadd.f32 %v4613_v46, %v8528_v58 }
 0x94c   :  { %v7000_v22 = vmul.f32 -1.442695, %v4622_v56  ;;  %v7001_v2 = vmul.f32 -1.442695, %v4623_v45  ;;  %v4827_v23 = vrot.slane %v4752_v18, 3  ;;  %v4828_v7 = vrot.slane %v4752_v18, 4 }
 0x94d   :  { %v4754_v51 = vadd.f32 %v4753_v1, %v8496_v25  ;;  %v4641_v10 = vadd.f32 %v4637_v50, %v8499_v26  ;;  %v4642_v55 = vadd.f32 %v4638_v39, %v8501_v30  ;;  %v4656_v1 = vrot.slane %v4614_v15, 3 }
 0x94e   :  { %7727 = vpow2.f32 %v7000_v22  ;;  %v4831_v5 = vadd.f32 %v8842_v29, %v4827_v23  ;;  %v4832_v38 = vadd.f32 %v8846_v40, %v4828_v7  ;;  %v4657_v39 = vrot.slane %v4614_v15, 4 }
 0x94f   :  { %7729 = vpow2.f32 %v7001_v2  ;;  %v4846_v14 = vrot.slane %v4754_v51, 3  ;;  %v4847_v63 = vrot.slane %v4754_v51, 4  ;;  %v7002_v36 = vmul.f32 -1.442695, %v4641_v10 }
 0x950   :  { %v7009_v33 = vmul.f32 -1.442695, %v4831_v5  ;;  %v7010_v34 = vmul.f32 -1.442695, %v4832_v38  ;;  %v7003_v0 = vmul.f32 -1.442695, %v4642_v55  ;;  %v4823_v23 = vadd.f32 %v4822_v4, %v8535_v47 }
 0x951   :  { %v4850_v28 = vadd.f32 %v8850_v43, %v4846_v14  ;;  %v4851_v25 = vadd.f32 %v8853_v54, %v4847_v63 }
 0x952   :  { %7731 = vpow2.f32 %v7009_v33  ;;  %v4865_v55 = vrot.slane %v4823_v23, 3  ;;  %v4866_v63 = vrot.slane %v4823_v23, 4 }
 0x953   :  { %7733 = vpow2.f32 %v7010_v34  ;;  %v7011_v35 = vmul.f32 -1.442695, %v4850_v28  ;;  %v7012_v29 = vmul.f32 -1.442695, %v4851_v25 }
 0x954   :  { %7735 = vpow2.f32 %v7002_v36 }
 0x955   :  { %7737 = vpow2.f32 %v7003_v0 }
 0x956   :  { %7739 = vpow2.f32 %v7011_v35 }
 0x957   :  { %7741 = vpow2.f32 %v7012_v29  ;;  %v4670_v29 = vrot.slane %v8868_v42, 7 }
 0x95b   :  { %v7728_v62 = vpop.eup %7727 }
 0x95c   :  { %v7730_v40 = vpop.eup %7729  ;;  %v4630_v9 = vadd.f32 1.0, %v7728_v62 }
 0x95d   :  { %v4631_v44 = vadd.f32 1.0, %v7730_v40 }
 0x95e   :  { %7743 = vrcp.f32 %v4630_v9  ;;  %v4671_v9 = vrot.slane %v8871_v12, 7  ;;  %v4880_v12 = vrot.slane %v8881_v16, 7 }
 0x95f   :  { %7745 = vrcp.f32 %v4631_v44  ;;  %v7732_v20 = vpop.eup %7731 }
 0x960   :  { %v7734_v61 = vpop.eup %7733  ;;  %v4839_v43 = vadd.f32 1.0, %v7732_v20 }
 0x961   :  { %v4840_v56 = vadd.f32 1.0, %v7734_v61  ;;  %v7736_v45 = vpop.eup %7735 }
 0x962   :  { %7747 = vrcp.f32 %v4839_v43  ;;  %v7738_v54 = vpop.eup %7737  ;;  %v4649_v22 = vadd.f32 1.0, %v7736_v45 }
 0x963   :  { %7749 = vrcp.f32 %v4840_v56  ;;  %v7740_v18 = vpop.eup %7739  ;;  %v4650_v2 = vadd.f32 1.0, %v7738_v54 }
 0x964   :  { %v7742_v50 = vpop.eup %7741  ;;  %v4858_v7 = vadd.f32 1.0, %v7740_v18  ;;  %7751 = vrcp.f32 %v4649_v22  ;;  %v4879_v18 = vrot.slane %v8877_v31, 7 }
 0x965   :  { %7753 = vrcp.f32 %v4650_v2  ;;  %v4859_v14 = vadd.f32 1.0, %v7742_v50 }
 0x966   :  { %7755 = vrcp.f32 %v4858_v7 }
 0x96b   :  { %v7744_v11 = vpop.eup %7743 }
 0x96c   :  { %v7746_v51 = vpop.eup %7745  ;;  %v4660_v5 = vmul.f32 %v7744_v11, %v4656_v1 }
 0x96d   :  { %v4661_v10 = vmul.f32 %v7746_v51, %v4657_v39 }
 0x96e   :  { %v4662_v38 = vadd.f32 %v4660_v5, %v8538_v41 }
 0x96f   :  { %v4663_v46 = vadd.f32 %v4661_v10, %v8540_v48  ;;  %v7748_v33 = vpop.eup %7747 }
 0x970   :  { %7757 = vtanh.f32 %v4662_v38  ;;  %v7750_v34 = vpop.eup %7749  ;;  %v4869_v28 = vmul.f32 %v7748_v33, %v4865_v55 }
 0x971   :  { %7759 = vtanh.f32 %v4663_v46  ;;  %v4870_v47 = vmul.f32 %v7750_v34, %v4866_v63  ;;  %v7752_v0 = vpop.eup %7751 }
 0x972   :  { %7761 = vrcp.f32 %v4859_v14  ;;  %v4871_v4 = vadd.f32 %v8860_v32, %v4869_v28  ;;  %v7754_v25 = vpop.eup %7753  ;;  %v4666_v62 = vsub.f32 1.0, %v7752_v0  ;;  %v4674_v43 = vmul.f32 %v7752_v0, %v4670_v29 }
 0x973   :  { %v4872_v36 = vadd.f32 %v8863_v21, %v4870_v47  ;;  %v7756_v35 = vpop.eup %7755  ;;  %v4667_v44 = vsub.f32 1.0, %v7754_v25  ;;  %v4675_v32 = vmul.f32 %v7754_v25, %v4671_v9 }
 0x974   :  { %7763 = vtanh.f32 %v4871_v4  ;;  %v4875_v15 = vsub.f32 1.0, %v7756_v35  ;;  %v4883_v39 = vmul.f32 %v7756_v35, %v4879_v18 }
 0x975   :  { %7765 = vtanh.f32 %v4872_v36 }
 0x97d   :  { %v7758_v40 = vpop.eup %7757 }
 0x97e   :  { %v7760_v20 = vpop.eup %7759  ;;  %v4668_v61 = vmul.f32 %v7758_v40, %v4666_v62 }
 0x97f   :  { %v7762_v56 = vpop.eup %7761  ;;  %v4669_v45 = vmul.f32 %v7760_v20, %v4667_v44 }
 0x980   :  { %v8932_v54 = vadd.f32 %v4674_v43, %v4668_v61  ;;  %v4876_v2 = vsub.f32 1.0, %v7762_v56  ;;  %v4884_v7 = vmul.f32 %v7762_v56, %v4880_v12 }
 0x981   :  { %v8934_v21 = vadd.f32 %v4675_v32, %v4669_v45  ;;  %v7764_v22 = vpop.eup %7763 }
 0x982   :  { %v4889_v42 = vrot.slane %v8932_v54, 5  ;;  %v7766_v50 = vpop.eup %7765  ;;  %v4877_v11 = vmul.f32 %v7764_v22, %v4875_v15 }
 0x983   :  { %v4890_v1 = vrot.slane %v8934_v21, 4  ;;  %v4878_v23 = vmul.f32 %v7766_v50, %v4876_v2 }
 0x984   :  { %v4885_v5 = vadd.f32 %v4883_v39, %v4877_v11  ;;  %v5088_v39 = vrot.slane %v8932_v54, 7  ;;  %v5306_v54 = vld [vmem:[%s9799_s18] sm:$0x3f] }
 0x985   :  { %v4891_v51 = vsel %vm2811_vm13, %v4890_v1, %v4889_v42  ;;  %v4886_v31 = vadd.f32 %v4884_v7, %v4878_v23 }
 0x986   :  { %7015 = vmatmul.mubr.msk.f32.vlgmr.msra.gmra.mxu0 %vm2377_vm12, %v4891_v51  ;;  %7468 = vmatmul.mubr.msk.f32.vlgmr.msra.gmra.mxu1 %vm2377_vm12, %v4891_v51  ;;  %v5089_v51 = vrot.slane %v8934_v21, 7 }
 0x987   :  { %7023 = vmatpush1.msk.msra.mxu0 %vm685_vm7, %v8726_v17  ;;  %7471 = vmatpush3.msk.msra.mxu1 %vm685_vm7, %v8733_v6  ;;  %v5913_v16 = vrot.slane %v4886_v31, 7  ;;  %v5307_v6 = vld [vmem:[%s9799_s18 + $0x8] sm:$0x3f] }
 0x988   :  { %5133 = vmatprep.subr.mxu0 %v8740_v37  ;;  %7472 = vmatprep.subr.mxu1 %v7844_v3  ;;  %v5309_v37 = vld [vmem:[%s9799_s18 + $0x18] sm:$0x3f] }
 0x989   :  { %5134 = vmatpush1.msra.mxu0 %v8747_v24  ;;  %5167 = vmatprep.mubr.f32.mxu0 %v7844_v3  ;;  %v8955_v17 = vsel %vm5914_vm15, %v5913_v16, %v4885_v5 }
 0x98a   :  { %7473 = vmatpush3.msra.mxu1 %v8754_v19  ;;  %7474 = vmatprep.mubr.msk.f32.mxu1 %vm7845_vm2, %v7844_v3 }
 0x98b   :  { %7031 = vmatprep.subr.msk.mxu0 %vm300_vm5, %v5307_v6  ;;  %7034 = vmatprep.subr.msk.mxu1 %vm300_vm5, %v5309_v37 }
 0xa46   :  { %v4960_v24 = vpop.f32.mrf.mxu0  ;;  %v5031_v19 = vpop.f32.mrf.mxu1 }
 0xa47   :  { %v4961_v10 = vadd.f32 %v4960_v24, %v8461_v49  ;;  %v5032_v43 = vadd.f32 %v5031_v19, %v8528_v58 }
 0xa48   :  { %v4962_v38 = vpop.f32.mrf.mxu0  ;;  %v7469_v14 = vpop.f32.mrf.mxu1 }
 0xa49   :  { %v5036_v46 = vrot.slane %v4961_v10, 2  ;;  %v5037_v55 = vrot.slane %v4961_v10, 3  ;;  %v4963_v33 = vadd.f32 %v4962_v38, %v8488_v60  ;;  %v5074_v32 = vrot.slane %v5032_v43, 2 }
 0xa4a   :  { %v5075_v18 = vrot.slane %v5032_v43, 3  ;;  %v6051_v43 = vld [vmem:[%s9803_s22 + $0xd8] sm:$0xff] }
 0xa4b   :  { %v5040_v63 = vadd.f32 %v5036_v46, %v8469_v52  ;;  %v5041_v34 = vadd.f32 %v5037_v55, %v8476_v59  ;;  %v5055_v4 = vrot.slane %v4963_v33, 2  ;;  %v5056_v36 = vrot.slane %v4963_v33, 3  ;;  %v5308_v46 = vld [vmem:[%s9799_s18 + $0x10] sm:$0x3f]  ;;  %v5311_v55 = vld [vmem:[%s9799_s18 + $0x28] sm:$0x3f] }
 0xa4c   :  { %v5313_v33 = vld [vmem:[%s9799_s18 + $0x38] sm:$0x3f] }
 0xa4d   :  { %v7018_v28 = vmul.f32 -1.442695, %v5040_v63  ;;  %v7019_v47 = vmul.f32 -1.442695, %v5041_v34  ;;  %v5059_v0 = vadd.f32 %v5055_v4, %v8499_v26  ;;  %v5060_v25 = vadd.f32 %v5056_v36, %v8501_v30  ;;  %v5305_v63 = vld [vmem:[%s9831_s10] sm:$0x3] }
 0xa4e   :  { %v5310_v34 = vld [vmem:[%s9799_s18 + $0x20] sm:$0x3f]  ;;  %v5924_v36 = vld [vmem:[%s9801_s20 + $0x8] sm:$0x3f] }
 0xa4f   :  { %7767 = vpow2.f32 %v7018_v28  ;;  %v7020_v35 = vmul.f32 -1.442695, %v5059_v0  ;;  %v7021_v29 = vmul.f32 -1.442695, %v5060_v25  ;;  %v5312_v28 = vld [vmem:[%s9799_s18 + $0x30] sm:$0x3f] }
 0xa50   :  { %7769 = vpow2.f32 %v7019_v47  ;;  %v5315_v47 = vld [vmem:[%s9799_s18 + $0x48] sm:$0x3f]  ;;  %v5314_v4 = vld [vmem:[%s9799_s18 + $0x40] sm:$0x3f]  ;;  %v5316_v0 = vld [vmem:[%s9799_s18 + $0x50] sm:$0x3f] }
 0xa51   :  { %7771 = vpow2.f32 %v7020_v35  ;;  %v5923_v25 = vld [vmem:[%s9801_s20] sm:$0x3f]  ;;  %v6055_v35 = vld [vmem:[%s9803_s22 + $0xf8] sm:$0xff] }
 0xa52   :  { %7773 = vpow2.f32 %v7021_v29  ;;  %v6039_v29 = vld [vmem:[%s9803_s22 + $0x78] sm:$0xff] }
 0xa5c   :  { %v7768_v62 = vpop.eup %7767 }
 0xa5d   :  { %v7770_v40 = vpop.eup %7769  ;;  %v5048_v9 = vadd.f32 1.0, %v7768_v62  ;;  %v6054_v62 = vld [vmem:[%s9803_s22 + $0xf0] sm:$0xff] }
 0xa5e   :  { %v5049_v44 = vadd.f32 1.0, %v7770_v40  ;;  %v7772_v20 = vpop.eup %7771  ;;  %v6038_v40 = vld [vmem:[%s9803_s22 + $0x70] sm:$0xff] }
 0xa5f   :  { %7775 = vrcp.f32 %v5048_v9  ;;  %v7774_v61 = vpop.eup %7773  ;;  %v5067_v56 = vadd.f32 1.0, %v7772_v20  ;;  %v6053_v9 = vld [vmem:[%s9803_s22 + $0xe8] sm:$0xff]  ;;  %v6052_v20 = vld [vmem:[%s9803_s22 + $0xe0] sm:$0xff] }
 0xa60   :  { %7777 = vrcp.f32 %v5049_v44  ;;  %v5068_v45 = vadd.f32 1.0, %v7774_v61  ;;  %v6037_v44 = vld [vmem:[%s9803_s22 + $0x68] sm:$0xff]  ;;  %v6036_v61 = vld [vmem:[%s9803_s22 + $0x60] sm:$0xff] }
 0xa61   :  { %7779 = vrcp.f32 %v5067_v56  ;;  %v6035_v56 = vld [vmem:[%s9803_s22 + $0x58] sm:$0xff] }
 0xa62   :  { %7781 = vrcp.f32 %v5068_v45  ;;  %v6050_v45 = vld [vmem:[%s9803_s22 + $0xd0] sm:$0xff] }
 0xa6c   :  { %v7776_v15 = vpop.eup %7775 }
 0xa6d   :  { %v7778_v22 = vpop.eup %7777  ;;  %v5078_v42 = vmul.f32 %v7776_v15, %v5074_v32  ;;  %v6034_v32 = vld [vmem:[%s9803_s22 + $0x50] sm:$0xff]  ;;  %v6049_v15 = vld [vmem:[%s9803_s22 + $0xc8] sm:$0xff] }
 0xa6e   :  { %v5079_v2 = vmul.f32 %v7778_v22, %v5075_v18  ;;  %v7780_v1 = vpop.eup %7779  ;;  %v6033_v18 = vld [vmem:[%s9803_s22 + $0x48] sm:$0xff]  ;;  %v6048_v22 = vld [vmem:[%s9803_s22 + $0xc0] sm:$0xff] }
 0xa6f   :  { %v5080_v12 = vadd.f32 %v5078_v42, %v8538_v41  ;;  %v7782_v11 = vpop.eup %7781  ;;  %v5084_v23 = vsub.f32 1.0, %v7780_v1  ;;  %v5092_v6 = vmul.f32 %v7780_v1, %v5088_v39  ;;  %v6032_v42 = vld [vmem:[%s9803_s22 + $0x40] sm:$0xff]  ;;  %v6030_v1 = vld [vmem:[%s9803_s22 + $0x30] sm:$0xff]  ;;  %v6029_v39 = vld [vmem:[%s9803_s22 + $0x28] sm:$0xff] }
 0xa70   :  { %v5081_v50 = vadd.f32 %v5079_v2, %v8540_v48  ;;  %v5085_v5 = vsub.f32 1.0, %v7782_v11  ;;  %v5093_v24 = vmul.f32 %v7782_v11, %v5089_v51  ;;  %v6047_v2 = vld [vmem:[%s9803_s22 + $0xb8] sm:$0xff]  ;;  %v6045_v11 = vld [vmem:[%s9803_s22 + $0xa8] sm:$0xff] }
 0xa71   :  { %7783 = vtanh.f32 %v5080_v12  ;;  %v6031_v12 = vld [vmem:[%s9803_s22 + $0x38] sm:$0xff] }
 0xa72   :  { %7785 = vtanh.f32 %v5081_v50  ;;  %v6046_v50 = vld [vmem:[%s9803_s22 + $0xb0] sm:$0xff]  ;;  %v6043_v51 = vld [vmem:[%s9803_s22 + $0x98] sm:$0xff] }
 0xa7e   :  { %v7784_v7 = vpop.eup %7783 }
 0xa7f   :  { %v7786_v31 = vpop.eup %7785  ;;  %v5086_v16 = vmul.f32 %v7784_v7, %v5084_v23  ;;  %v6044_v23 = vld [vmem:[%s9803_s22 + $0xa0] sm:$0xff] }
 0xa80   :  { %v5087_v37 = vmul.f32 %v7786_v31, %v5085_v5  ;;  %v6028_v7 = vld [vmem:[%s9803_s22 + $0x20] sm:$0xff]  ;;  %v6027_v5 = vld [vmem:[%s9803_s22 + $0x18] sm:$0xff]  ;;  %v6042_v31 = vld [vmem:[%s9803_s22 + $0x90] sm:$0xff] }
 0xa81   :  { %v8976_v19 = vadd.f32 %v5092_v6, %v5086_v16  ;;  %v6026_v16 = vld [vmem:[%s9803_s22 + $0x10] sm:$0xff]  ;;  %v6041_v6 = vld [vmem:[%s9803_s22 + $0x88] sm:$0xff] }
 0xa82   :  { %v8978_v10 = vadd.f32 %v5093_v24, %v5087_v37  ;;  %v6025_v37 = vld [vmem:[%s9803_s22 + $0x8] sm:$0xff]  ;;  %v6040_v24 = vld [vmem:[%s9803_s22 + $0x80] sm:$0xff] }
 0xa83   :  { %v5098_v38 = vrot.slane %v8976_v19, 6 }
 0xa84   :  { %v5099_v14 = vrot.slane %v8978_v10, 5 }
 0xa86   :  { %v5100_v21 = vsel %vm2811_vm13, %v5099_v14, %v5098_v38  ;;  %v6024_v38 = vld [vmem:[%s9803_s22] sm:$0xff]  ;;  %v6119_v14 = vld [vmem:[%s9803_s22 + $0x2f8] sm:$0xff] }
 0xa87   :  { %7024 = vmatmul.mubr.msk.f32.vlgmr.msra.gmra.mxu0 %vm2377_vm12, %v5100_v21  ;;  %7475 = vmatmul.mubr.msk.f32.vlgmr.msra.gmra.mxu1 %vm2377_vm12, %v5100_v21  ;;  %v6215_v21 = vld [vmem:[%s9804_s23 + $0x78] sm:$0xff] }
 0xa88   :  { %7032 = vmatpush1.msk.msra.mxu0 %vm300_vm5, %v5306_v54  ;;  %5477 = vmatprep.mubr.f32.mxu0 %v7844_v3  ;;  %v6231_v54 = vld [vmem:[%s9804_s23 + $0xf8] sm:$0xff] }
 0xa89   :  { %7035 = vmatpush1.msk.msra.mxu1 %vm300_vm5, %v5308_v46  ;;  %5548 = vmatprep.mubr.f32.mxu1 %v7844_v3  ;;  %v6230_v46 = vld [vmem:[%s9804_s23 + $0xf0] sm:$0xff] }
 0xa8a   :  { %7037 = vmatprep.subr.msk.mxu0 %vm300_vm5, %v5311_v55  ;;  %7040 = vmatprep.subr.msk.mxu1 %vm300_vm5, %v5313_v33  ;;  %v6214_v55 = vld [vmem:[%s9804_s23 + $0x70] sm:$0xff]  ;;  %v6229_v33 = vld [vmem:[%s9804_s23 + $0xe8] sm:$0xff] }
 0xa8b   :  { %7033 = vmatmul.mubr.msk.f32.vlgmr.msra.gmra.mxu0 %vm5376_vm0, %v5305_v63  ;;  %7036 = vmatmul.mubr.msk.f32.vlgmr.msra.gmra.mxu1 %vm5376_vm0, %v5305_v63 }
 0xa8c   :  { %7038 = vmatpush1.msk.msra.mxu0 %vm300_vm5, %v5310_v34  ;;  %5619 = vmatprep.mubr.f32.mxu0 %v7844_v3  ;;  %v6228_v34 = vld [vmem:[%s9804_s23 + $0xe0] sm:$0xff] }
 0xa8d   :  { %7041 = vmatpush1.msk.msra.mxu1 %vm300_vm5, %v5312_v28  ;;  %5690 = vmatprep.mubr.f32.mxu1 %v7844_v3  ;;  %v6212_v28 = vld [vmem:[%s9804_s23 + $0x60] sm:$0xff] }
 0xa8e   :  { %7043 = vmatprep.subr.msk.mxu0 %vm300_vm5, %v5315_v47  ;;  %7477 = vmatprep.subr.mxu1 %v7844_v3  ;;  %v6227_v47 = vld [vmem:[%s9804_s23 + $0xd8] sm:$0xff] }
 0xa8f   :  { %7039 = vmatmul.mubr.msk.f32.vlgmr.msra.gmra.mxu0 %vm5376_vm0, %v5305_v63  ;;  %7042 = vmatmul.mubr.msk.f32.vlgmr.msra.gmra.mxu1 %vm5376_vm0, %v5305_v63 }
 0xa90   :  { %7044 = vmatpush1.msk.msra.mxu0 %vm300_vm5, %v5314_v4  ;;  %5761 = vmatprep.mubr.f32.mxu0 %v7844_v3  ;;  %v6211_v4 = vld [vmem:[%s9804_s23 + $0x58] sm:$0xff] }
 0xa91   :  { %7048 = vmatprep.subr.msk.mxu0 %vm300_vm5, %v5924_v36  ;;  %7478 = vmatpush3.msk.msra.mxu1 %vm300_vm5, %v5316_v0  ;;  %v6226_v36 = vld [vmem:[%s9804_s23 + $0xd0] sm:$0xff] }
 0xa92   :  { %7479 = vmatprep.mubr.msk.f32.mxu1 %vm7845_vm2, %v7844_v3  ;;  %7112 = vmatprep.subr.mxu1 %v6231_v54  ;;  %v6210_v0 = vld [vmem:[%s9804_s23 + $0x50] sm:$0xff] }
 0xa93   :  { %7045 = vmatmul.mubr.msk.f32.vlgmr.msra.gmra.mxu0 %vm5376_vm0, %v5305_v63  ;;  %7480 = vmatmul.mubr.msk.f32.vlgmr.msra.gmra.mxu1 %vm5376_vm0, %v5305_v63 }
 0xa94   :  { %7049 = vmatpush1.msk.msra.mxu0 %vm300_vm5, %v5923_v25  ;;  %6007 = vmatprep.mubr.f32.mxu0 %v7844_v3  ;;  %v6225_v25 = vld [vmem:[%s9804_s23 + $0xc8] sm:$0xff] }
 0xa95   :  { %7147 = vmatprep.subr.mxu0 %v6055_v35  ;;  %7113 = vmatpush3.msra.mxu1 %v6215_v21  ;;  %v6209_v35 = vld [vmem:[%s9804_s23 + $0x48] sm:$0xff] }
 0xa96   :  { %7114 = vmatprep.subr.mxu1 %v6230_v46 }
 0xa97   :  { %7050 = vmatmul.mubr.msk.f32.vlgmr.msra.gmra.mxu0 %vm5376_vm0, %v5305_v63  ;;  %7115 = vmatpush3.msra.mxu1 %v6214_v55  ;;  %v6213_v63 = vld [vmem:[%s9804_s23 + $0x68] sm:$0xff] }
 0xa98   :  { %7148 = vmatpush3.msra.mxu0 %v6039_v29  ;;  %7116 = vmatprep.subr.mxu1 %v6229_v33  ;;  %v6224_v29 = vld [vmem:[%s9804_s23 + $0xc0] sm:$0xff] }
 0xa99   :  { %7149 = vmatprep.subr.mxu0 %v6054_v62  ;;  %7117 = vmatpush3.msra.mxu1 %v6213_v63  ;;  %v6208_v62 = vld [vmem:[%s9804_s23 + $0x40] sm:$0xff] }
 0xa9a   :  { %7150 = vmatpush3.msra.mxu0 %v6038_v40  ;;  %7118 = vmatprep.subr.mxu1 %v6228_v34  ;;  %v6223_v40 = vld [vmem:[%s9804_s23 + $0xb8] sm:$0xff] }
 0xa9b   :  { %7151 = vmatprep.subr.mxu0 %v6053_v9  ;;  %7119 = vmatpush3.msra.mxu1 %v6212_v28  ;;  %v6207_v9 = vld [vmem:[%s9804_s23 + $0x38] sm:$0xff] }
 0xa9c   :  { %7152 = vmatpush3.msra.mxu0 %v6037_v44  ;;  %7120 = vmatprep.subr.mxu1 %v6227_v47  ;;  %v6222_v44 = vld [vmem:[%s9804_s23 + $0xb0] sm:$0xff] }
 0xa9d   :  { %7153 = vmatprep.subr.mxu0 %v6052_v20  ;;  %7121 = vmatpush3.msra.mxu1 %v6211_v4  ;;  %v6206_v20 = vld [vmem:[%s9804_s23 + $0x30] sm:$0xff] }
 0xa9e   :  { %7154 = vmatpush3.msra.mxu0 %v6036_v61  ;;  %7122 = vmatprep.subr.mxu1 %v6226_v36  ;;  %v6221_v61 = vld [vmem:[%s9804_s23 + $0xa8] sm:$0xff] }
 0xa9f   :  { %7155 = vmatprep.subr.mxu0 %v6051_v43  ;;  %7123 = vmatpush3.msra.mxu1 %v6210_v0  ;;  %v6205_v43 = vld [vmem:[%s9804_s23 + $0x28] sm:$0xff] }
 0xaa0   :  { %7156 = vmatpush3.msra.mxu0 %v6035_v56  ;;  %7124 = vmatprep.subr.mxu1 %v6225_v25  ;;  %v6220_v56 = vld [vmem:[%s9804_s23 + $0xa0] sm:$0xff] }
 0xaa1   :  { %7157 = vmatprep.subr.mxu0 %v6050_v45  ;;  %7125 = vmatpush3.msra.mxu1 %v6209_v35  ;;  %v6204_v45 = vld [vmem:[%s9804_s23 + $0x20] sm:$0xff] }
 0xaa2   :  { %7158 = vmatpush3.msra.mxu0 %v6034_v32  ;;  %7126 = vmatprep.subr.mxu1 %v6224_v29  ;;  %v6219_v32 = vld [vmem:[%s9804_s23 + $0x98] sm:$0xff] }
 0xaa3   :  { %7159 = vmatprep.subr.mxu0 %v6049_v15  ;;  %7127 = vmatpush3.msra.mxu1 %v6208_v62  ;;  %v6203_v15 = vld [vmem:[%s9804_s23 + $0x18] sm:$0xff] }
 0xaa4   :  { %7160 = vmatpush3.msra.mxu0 %v6033_v18  ;;  %7128 = vmatprep.subr.mxu1 %v6223_v40  ;;  %v6218_v18 = vld [vmem:[%s9804_s23 + $0x90] sm:$0xff] }
 0xaa5   :  { %7161 = vmatprep.subr.mxu0 %v6048_v22  ;;  %7129 = vmatpush3.msra.mxu1 %v6207_v9  ;;  %v6202_v22 = vld [vmem:[%s9804_s23 + $0x10] sm:$0xff] }
 0xaa6   :  { %7162 = vmatpush3.msra.mxu0 %v6032_v42  ;;  %7130 = vmatprep.subr.mxu1 %v6222_v44  ;;  %v6217_v42 = vld [vmem:[%s9804_s23 + $0x88] sm:$0xff] }
 0xaa7   :  { %7163 = vmatprep.subr.mxu0 %v6047_v2  ;;  %7131 = vmatpush3.msra.mxu1 %v6206_v20  ;;  %v6201_v2 = vld [vmem:[%s9804_s23 + $0x8] sm:$0xff] }
 0xaa8   :  { %7164 = vmatpush3.msra.mxu0 %v6031_v12  ;;  %7132 = vmatprep.subr.mxu1 %v6221_v61  ;;  %v6216_v12 = vld [vmem:[%s9804_s23 + $0x80] sm:$0xff] }
 0xaa9   :  { %7165 = vmatprep.subr.mxu0 %v6046_v50  ;;  %7133 = vmatpush3.msra.mxu1 %v6205_v43  ;;  %v6200_v50 = vld [vmem:[%s9804_s23] sm:$0xff] }
 0xaaa   :  { %7166 = vmatpush3.msra.mxu0 %v6030_v1  ;;  %7134 = vmatprep.subr.mxu1 %v6220_v56  ;;  %v6087_v1 = vld [vmem:[%s9803_s22 + $0x1f8] sm:$0xff] }
 0xaab   :  { %7167 = vmatprep.subr.mxu0 %v6045_v11  ;;  %7135 = vmatpush3.msra.mxu1 %v6204_v45  ;;  %v5317_v11 = vld [vmem:[%s9800_s19] sm:$0xff] }
 0xaac   :  { %7168 = vmatpush3.msra.mxu0 %v6029_v39  ;;  %7136 = vmatprep.subr.mxu1 %v6219_v32  ;;  %v5335_v39 = vsub.s32 3, %v8105_v53  ;;  %v5328_v46 = vrot.slane %v5317_v11, %v8364_v27 }
 0xaad   :  { %7169 = vmatprep.subr.mxu0 %v6044_v23  ;;  %7137 = vmatpush3.msra.mxu1 %v6203_v15 }
 0xaae   :  { %7170 = vmatpush3.msra.mxu0 %v6028_v7  ;;  %7138 = vmatprep.subr.mxu1 %v6218_v18  ;;  %v5336_v55 = vrot.slane %v5317_v11, %v5335_v39 }
 0xaaf   :  { %7171 = vmatprep.subr.mxu0 %v6043_v51  ;;  %7139 = vmatpush3.msra.mxu1 %v6202_v22  ;;  %v5339_v51 = vsub.s32 4, %v8105_v53 }
 0xab0   :  { %7172 = vmatpush3.msra.mxu0 %v6027_v5  ;;  %7140 = vmatprep.subr.mxu1 %v6217_v42 }
 0xab1   :  { %7173 = vmatprep.subr.mxu0 %v6042_v31  ;;  %7141 = vmatpush3.msra.mxu1 %v6201_v2  ;;  %v5324_v31 = vrot.slane %v5317_v11, %v8357_v13  ;;  %v5340_v34 = vrot.slane %v5317_v11, %v5339_v51  ;;  %v5838_v51 = vld [vmem:[#allocation3] sm:$0xff] }
 0xab2   :  { %7174 = vmatpush3.msra.mxu0 %v6026_v16  ;;  %7142 = vmatprep.subr.mxu1 %v6216_v12  ;;  %v5332_v16 = vrot.slane %v5317_v11, %v8514_v8 }
 0xab3   :  { %7175 = vmatprep.subr.mxu0 %v6041_v6  ;;  %7143 = vmatpush3.msra.mxu1 %v6200_v50 }
 0xab4   :  { %7176 = vmatpush3.msra.mxu0 %v6025_v37  ;;  %7182 = vmatprep.subr.mxu1 %v6087_v1 }
 0xab5   :  { %7177 = vmatprep.subr.mxu0 %v6040_v24  ;;  %v5347_v24 = vsub.s32 6, %v8105_v53 }
 0xab6   :  { %7178 = vmatpush3.msra.mxu0 %v6024_v38  ;;  %v5343_v38 = vsub.s32 5, %v8105_v53 }
 0xab7   :  { %7217 = vmatprep.subr.mxu0 %v6119_v14  ;;  %v5351_v14 = vsub.s32 7, %v8105_v53  ;;  %v5348_v53 = vrot.slane %v5317_v11, %v5347_v24 }
 0xab8   :  { %v5344_v29 = vrot.slane %v5317_v11, %v5343_v38 }
 0xab9   :  { %v5352_v62 = vrot.slane %v5317_v11, %v5351_v14  ;;  %v5839_v14 = vld [vmem:[#allocation3 + $0x8] sm:$0xff] }
 0xb47   :  { %v5169_v23 = vpop.f32.mrf.mxu0  ;;  %v9250_v7 = vpop.f32.mrf.mxu1 }
 0xb48   :  { %v5170_v5 = vadd.f32 %v5169_v23, %v8461_v49 }
 0xb49   :  { %v5171_v6 = vpop.f32.mrf.mxu0  ;;  %v7476_v37 = vpop.f32.mrf.mxu1 }
 0xb4a   :  { %v5245_v54 = vrot.slane %v5170_v5, 1  ;;  %v5246_v21 = vrot.slane %v5170_v5, 2  ;;  %v5172_v33 = vadd.f32 %v5171_v6, %v8488_v60 }
 0xb4b   :  { %v5479_v49 = vpop.f32.mrf.mxu0  ;;  %v5550_v63 = vpop.f32.mrf.mxu1 }
 0xb4c   :  { %v5249_v28 = vadd.f32 %v5245_v54, %v8469_v52  ;;  %v5250_v47 = vadd.f32 %v5246_v21, %v8476_v59  ;;  %v5480_v4 = vadd.f32 %v5479_v49, %v5324_v31  ;;  %v5551_v36 = vadd.f32 %v5550_v63, %v5332_v16  ;;  %v5318_v21 = vld [vmem:[%s9800_s19 + $0x8] sm:$0x7]  ;;  %v6103_v63 = vld [vmem:[%s9803_s22 + $0x278] sm:$0xff] }
 0xb4d   :  { %v5264_v0 = vrot.slane %v5172_v33, 1  ;;  %v5481_v25 = vpop.f32.mrf.mxu0  ;;  %v5552_v35 = vpop.f32.mrf.mxu1  ;;  %v5265_v60 = vrot.slane %v5172_v33, 2 }
 0xb4e   :  { %v7027_v40 = vmul.f32 -1.442695, %v5249_v28  ;;  %v7028_v9 = vmul.f32 -1.442695, %v5250_v47  ;;  %v5482_v44 = vadd.f32 %v5481_v25, %v5328_v46  ;;  %v5553_v20 = vadd.f32 %v5552_v35, %v5336_v55 }
 0xb4f   :  { %v5621_v61 = vpop.f32.mrf.mxu0  ;;  %v5692_v43 = vpop.f32.mrf.mxu1  ;;  %v5268_v59 = vadd.f32 %v5264_v0, %v8499_v26  ;;  %v5269_v50 = vadd.f32 %v5265_v60, %v8501_v30  ;;  %v5356_v47 = vrot.slane %v5318_v21, %v8357_v13  ;;  %v6116_v60 = vld [vmem:[%s9803_s22 + $0x2e0] sm:$0xff] }
 0xb50   :  { %7787 = vpow2.f32 %v7027_v40  ;;  %v5852_v56 = vcombine.low %v5480_v4, %v5482_v44  ;;  %v5853_v52 = vcombine.low %v5551_v36, %v5553_v20  ;;  %v5622_v45 = vadd.f32 %v5621_v61, %v5340_v34  ;;  %v6118_v36 = vld [vmem:[%s9803_s22 + $0x2f0] sm:$0xff]  ;;  %v6101_v40 = vld [vmem:[%s9803_s22 + $0x268] sm:$0xff]  ;;  %v6100_v61 = vld [vmem:[%s9803_s22 + $0x260] sm:$0xff] }
 0xb51   :  { %7789 = vpow2.f32 %v7028_v9  ;;  %v5693_v32 = vadd.f32 %v5692_v43, %v5348_v53  ;;  %v5623_v15 = vpop.f32.mrf.mxu0  ;;  %v5694_v18 = vpop.f32.mrf.mxu1  ;;  %v7029_v31 = vmul.f32 -1.442695, %v5268_v59  ;;  %v7030_v37 = vmul.f32 -1.442695, %v5269_v50  ;;  %v6102_v53 = vld [vmem:[%s9803_s22 + $0x270] sm:$0xff]  ;;  %v6115_v43 = vld [vmem:[%s9803_s22 + $0x2d8] sm:$0xff] }
 0xb52   :  { %v5860_v22 = vrot.slane %v5852_v56, %v8115_v57  ;;  %v5867_v42 = vrot.slane %v5853_v52, %v8115_v57  ;;  %v5624_v2 = vadd.f32 %v5623_v15, %v5344_v29  ;;  %v5695_v12 = vadd.f32 %v5694_v18, %v5352_v62  ;;  %v6117_v29 = vld [vmem:[%s9803_s22 + $0x2e8] sm:$0xff] }
 0xb53   :  { %v5834_v1 = vpop.f32.mrf.mxu1  ;;  %7791 = vpow2.f32 %v7029_v31  ;;  %v5763_v46 = vpop.f32.mrf.mxu0  ;;  %v5360_v4 = vrot.slane %v5318_v21, %v8364_v27  ;;  %v5364_v20 = vrot.slane %v5318_v21, %v8514_v8  ;;  %v6099_v8 = vld [vmem:[%s9803_s22 + $0x258] sm:$0xff]  ;;  %v5241_v18 = vadd.f32 %v9250_v7, %v8528_v58  ;;  %v6112_v58 = vld [vmem:[%s9803_s22 + $0x2c0] sm:$0xff] }
 0xb54   :  { %v5868_v11 = vcombine.low %v5860_v22, %v5867_v42  ;;  %v5869_v39 = vcombine.low %v5622_v45, %v5624_v2  ;;  %v5870_v23 = vcombine.low %v5693_v32, %v5695_v12  ;;  %7793 = vpow2.f32 %v7030_v37  ;;  %v6114_v45 = vld [vmem:[%s9803_s22 + $0x2d0] sm:$0xff]  ;;  %v6113_v22 = vld [vmem:[%s9803_s22 + $0x2c8] sm:$0xff]  ;;  %v5840_v21 = vld [vmem:[#allocation3 + $0x10] sm:$0x3f] }
 0xb55   :  { %v7481_v5 = vpop.f32.mrf.mxu1  ;;  %v5765_v35 = vpop.f32.mrf.mxu0  ;;  %v5764_v9 = vadd.f32 %v5763_v46, %v5356_v47  ;;  %v5835_v52 = vadd.f32 %v5834_v1, %v5364_v20  ;;  %v6098_v32 = vld [vmem:[%s9803_s22 + $0x250] sm:$0xff]  ;;  %v6097_v42 = vld [vmem:[%s9803_s22 + $0x248] sm:$0xff]  ;;  %v6096_v1 = vld [vmem:[%s9803_s22 + $0x240] sm:$0xff] }
 0xb56   :  { %v5877_v26 = vrot.slane %v5869_v39, %v8115_v57  ;;  %v5884_v16 = vrot.slane %v5870_v23, %v8115_v57  ;;  %v5905_v6 = vadd.f32 %v5868_v11, %v5838_v51  ;;  %v5766_v44 = vadd.f32 %v5765_v35, %v5360_v4  ;;  %v6111_v39 = vld [vmem:[%s9803_s22 + $0x2b8] sm:$0xff]  ;;  %v6093_v46 = vld [vmem:[%s9803_s22 + $0x228] sm:$0xff]  ;;  %v6106_v47 = vld [vmem:[%s9803_s22 + $0x290] sm:$0xff] }
 0xb57   :  { %v5900_v50 = vrot.slane %v5835_v52, %v8115_v57  ;;  %v5283_v11 = vrot.slane %v5241_v18, 1  ;;  %v5284_v51 = vrot.slane %v5241_v18, 2  ;;  %v6095_v5 = vld [vmem:[%s9803_s22 + $0x238] sm:$0xff]  ;;  %v6090_v4 = vld [vmem:[%s9803_s22 + $0x210] sm:$0xff]  ;;  %v6089_v35 = vld [vmem:[%s9803_s22 + $0x208] sm:$0xff] }
 0xb58   :  { %v5885_v24 = vcombine.low %v5877_v26, %v5884_v16  ;;  %v9269_v38 = vmax.f32 %v5905_v6, 0.0  ;;  %v5886_v56 = vcombine.low %v5764_v9, %v5766_v44  ;;  %v6110_v6 = vld [vmem:[%s9803_s22 + $0x2b0] sm:$0xff]  ;;  %v6183_v44 = vld [vmem:[%s9803_s22 + $0x4f8] sm:$0xff] }
 0xb59   :  { %v6182_v52 = vld [vmem:[%s9803_s22 + $0x4f0] sm:$0xff] }
 0xb5a   :  { %v6318_v30 = vrot.slane %v9269_v38, %v8115_v57  ;;  %v5906_v54 = vadd.f32 %v5885_v24, %v5839_v14  ;;  %v5893_v12 = vrot.slane %v5886_v56, %v8115_v57  ;;  %v6094_v24 = vld [vmem:[%s9803_s22 + $0x230] sm:$0xff] }
 0xb5b   :  { %v6166_v18 = vld [vmem:[%s9803_s22 + $0x470] sm:$0xff] }
 0xb5c   :  { %v6326_v55 = vcombine.high %v6318_v30, %v6318_v30  ;;  %v9276_v33 = vmax.f32 %v5906_v54, 0.0  ;;  %v5901_v16 = vcombine.low %v5893_v12, %v5900_v50 }
 0xb5d   :  { %v7788_v49 = vpop.eup %7787 }
 0xb5e   :  { %v7790_v34 = vpop.eup %7789  ;;  %v5257_v28 = vadd.f32 1.0, %v7788_v49  ;;  %6436 = vmatprep.mubr.f32.mxu0 %v6326_v55  ;;  %v9288_v0 = vrot.slane %v9276_v33, %v8115_v57  ;;  %v5907_v55 = vadd.f32 %v5901_v16, %v5840_v21  ;;  %v6092_v49 = vld [vmem:[%s9803_s22 + $0x220] sm:$0xff]  ;;  %v6178_v16 = vld [vmem:[%s9803_s22 + $0x4d0] sm:$0xff] }
 0xb5f   :  { %v5258_v25 = vadd.f32 1.0, %v7790_v34  ;;  %6437 = vmatmul.mubr.f32.vlgmr.msra.gmra.mxu0 %v6318_v30  ;;  %v6109_v30 = vld [vmem:[%s9803_s22 + $0x2a8] sm:$0xff]  ;;  %v6176_v21 = vld [vmem:[%s9803_s22 + $0x4c0] sm:$0xff] }
 0xb60   :  { %7795 = vrcp.f32 %v5257_v28  ;;  %7218 = vmatpush3.msra.mxu0 %v6103_v63  ;;  %v6343_v62 = vcombine.high %v9288_v0, %v9288_v0  ;;  %v7792_v59 = vpop.eup %7791  ;;  %v6091_v63 = vld [vmem:[%s9803_s22 + $0x218] sm:$0xff]  ;;  %v9368_v34 = vmax.f32 %v5907_v55, 0.0  ;;  %v5925_v28 = vld [vmem:[%s9802_s21] sm:$0x3] }
 0xb61   :  { %7797 = vrcp.f32 %v5258_v25  ;;  %7219 = vmatprep.subr.mxu0 %v6118_v36  ;;  %v7794_v15 = vpop.eup %7793  ;;  %v5276_v2 = vadd.f32 1.0, %v7792_v59  ;;  %v6105_v36 = vld [vmem:[%s9803_s22 + $0x288] sm:$0xff]  ;;  %v5930_v25 = vrot.slane %v5925_v28, %v8357_v13  ;;  %v6088_v13 = vld [vmem:[%s9803_s22 + $0x200] sm:$0xff]  ;;  %v5934_v56 = vrot.slane %v5925_v28, %v8364_v27  ;;  %v6086_v28 = vld [vmem:[%s9803_s22 + $0x1f0] sm:$0xff] }
 0xb62   :  { %7220 = vmatpush3.msra.mxu0 %v6102_v53  ;;  %6576 = vmatprep.mubr.f32.mxu0 %v6343_v62  ;;  %v5277_v7 = vadd.f32 1.0, %v7794_v15  ;;  %v6009_v53 = vpop.f32.mrf.mxu0  ;;  %v9391_v62 = vrot.slane %v9368_v34, %v8115_v57  ;;  %v6160_v55 = vld [vmem:[%s9803_s22 + $0x440] sm:$0xff] }
 0xb63   :  { %7221 = vmatprep.subr.mxu0 %v6117_v29  ;;  %7799 = vrcp.f32 %v5276_v2  ;;  %v6104_v29 = vld [vmem:[%s9803_s22 + $0x280] sm:$0xff]  ;;  %v6010_v20 = vadd.f32 %v6009_v53, %v5930_v25  ;;  %v6174_v25 = vld [vmem:[%s9803_s22 + $0x4b0] sm:$0xff] }
 0xb64   :  { %7222 = vmatpush3.msra.mxu0 %v6101_v40  ;;  %7801 = vrcp.f32 %v5277_v7  ;;  %v6011_v15 = vpop.f32.mrf.mxu0  ;;  %v6180_v7 = vld [vmem:[%s9803_s22 + $0x4e0] sm:$0xff]  ;;  %v6158_v53 = vld [vmem:[%s9803_s22 + $0x430] sm:$0xff] }
 0xb65   :  { %7223 = vmatprep.subr.mxu0 %v6116_v60  ;;  %v6167_v60 = vld [vmem:[%s9803_s22 + $0x478] sm:$0xff]  ;;  %v6016_v2 = vrot.slane %v6010_v20, 3  ;;  %v6172_v20 = vld [vmem:[%s9803_s22 + $0x4a0] sm:$0xff] }
 0xb66   :  { %7224 = vmatpush3.msra.mxu0 %v6100_v61  ;;  %v6360_v61 = vcombine.high %v9391_v62, %v9391_v62 }
 0xb67   :  { %7225 = vmatprep.subr.mxu0 %v6115_v43 }
 0xb68   :  { %7226 = vmatpush3.msra.mxu0 %v6099_v8  ;;  %v5297_v8 = vrot.slane %v8976_v19, 7 }
 0xb69   :  { %7227 = vmatprep.subr.mxu0 %v6114_v45 }
 0xb6a   :  { %7228 = vmatpush3.msra.mxu0 %v6098_v32  ;;  %v5298_v32 = vrot.slane %v8978_v10, 7  ;;  %v6165_v10 = vld [vmem:[%s9803_s22 + $0x468] sm:$0xff] }
 0xb6b   :  { %7229 = vmatprep.subr.mxu0 %v6113_v22 }
 0xb6c   :  { %7230 = vmatpush3.msra.mxu0 %v6097_v42  ;;  %v6181_v42 = vld [vmem:[%s9803_s22 + $0x4e8] sm:$0xff] }
 0xb6d   :  { %v7796_v23 = vpop.eup %7795  ;;  %7231 = vmatprep.subr.mxu0 %v6112_v58  ;;  %v6012_v58 = vadd.f32 %v6011_v15, %v5934_v56  ;;  %v6082_v56 = vld [vmem:[%s9803_s22 + $0x1d0] sm:$0xff] }
 0xb6e   :  { %v7798_v31 = vpop.eup %7797  ;;  %v5287_v26 = vmul.f32 %v7796_v23, %v5283_v11  ;;  %7232 = vmatpush3.msra.mxu0 %v6096_v1  ;;  %v6164_v11 = vld [vmem:[%s9803_s22 + $0x460] sm:$0xff]  ;;  %v6179_v23 = vld [vmem:[%s9803_s22 + $0x4d8] sm:$0xff]  ;;  %v6154_v15 = vld [vmem:[%s9803_s22 + $0x410] sm:$0xff] }
 0xb6f   :  { %v5288_v37 = vmul.f32 %v7798_v31, %v5284_v51  ;;  %7233 = vmatprep.subr.mxu0 %v6111_v39  ;;  %v6020_v51 = vadd.f32 %v6016_v2, %v8955_v17  ;;  %v6163_v31 = vld [vmem:[%s9803_s22 + $0x458] sm:$0xff]  ;;  %v6162_v17 = vld [vmem:[%s9803_s22 + $0x450] sm:$0xff]  ;;  %v6168_v2 = vld [vmem:[%s9803_s22 + $0x480] sm:$0xff] }
 0xb70   :  { %v5289_v14 = vadd.f32 %v5287_v26, %v8538_v41  ;;  %7234 = vmatpush3.msra.mxu0 %v6095_v5  ;;  %v6108_v41 = vld [vmem:[%s9803_s22 + $0x2a0] sm:$0xff]  ;;  %v7800_v40 = vpop.eup %7799  ;;  %v6017_v26 = vrot.slane %v6012_v58, 3  ;;  %v6062_v58 = vld [vmem:[%s9803_s22 + $0x130] sm:$0xff] }
 0xb71   :  { %v5290_v54 = vadd.f32 %v5288_v37, %v8540_v48  ;;  %7235 = vmatprep.subr.mxu0 %v6110_v6  ;;  %v6107_v48 = vld [vmem:[%s9803_s22 + $0x298] sm:$0xff]  ;;  %v7802_v9 = vpop.eup %7801  ;;  %v5293_v43 = vsub.f32 1.0, %v7800_v40  ;;  %v5301_v19 = vmul.f32 %v7800_v40, %v5297_v8  ;;  %v6311_v6 = vcombine.high %v9269_v38, %v9269_v38  ;;  %v6173_v40 = vld [vmem:[%s9803_s22 + $0x4a8] sm:$0xff] }
 0xb72   :  { %7803 = vtanh.f32 %v5289_v14  ;;  %7236 = vmatpush3.msra.mxu0 %v6094_v24  ;;  %v5294_v59 = vsub.f32 1.0, %v7802_v9  ;;  %v5302_v12 = vmul.f32 %v7802_v9, %v5298_v32  ;;  %v6177_v14 = vld [vmem:[%s9803_s22 + $0x4c8] sm:$0xff]  ;;  %v6171_v8 = vld [vmem:[%s9803_s22 + $0x498] sm:$0xff] }
 0xb73   :  { %7805 = vtanh.f32 %v5290_v54  ;;  %7237 = vmatprep.subr.mxu0 %v6109_v30  ;;  %v6022_v30 = vmax.f32 %v6020_v51, 0.0  ;;  %v6161_v54 = vld [vmem:[%s9803_s22 + $0x448] sm:$0xff]  ;;  %v6074_v51 = vld [vmem:[%s9803_s22 + $0x190] sm:$0xff] }
 0xb74   :  { %7238 = vmatpush3.msra.mxu0 %v6093_v46  ;;  %v9452_v46 = vrot.slane %v6311_v6, %v8115_v57  ;;  %v6157_v9 = vld [vmem:[%s9803_s22 + $0x428] sm:$0xff] }
 0xb75   :  { %7239 = vmatprep.subr.mxu0 %v6108_v41  ;;  %v6081_v32 = vld [vmem:[%s9803_s22 + $0x1c8] sm:$0xff] }
 0xb76   :  { %7240 = vmatpush3.msra.mxu0 %v6092_v49  ;;  %v6175_v49 = vld [vmem:[%s9803_s22 + $0x4b8] sm:$0xff] }
 0xb77   :  { %7241 = vmatprep.subr.mxu0 %v6107_v48  ;;  %v6234_v48 = vrot.slane %v6022_v30, 5  ;;  %v6150_v30 = vld [vmem:[%s9803_s22 + $0x3f0] sm:$0xff] }
 0xb78   :  { %7242 = vmatpush3.msra.mxu0 %v6091_v63  ;;  %v6071_v63 = vld [vmem:[%s9803_s22 + $0x178] sm:$0xff] }
 0xb79   :  { %7243 = vmatprep.subr.mxu0 %v6106_v47  ;;  %v6327_v47 = vcombine.high %v9452_v46, %v9452_v46 }
 0xb7a   :  { %7244 = vmatpush3.msra.mxu0 %v6090_v4  ;;  %v6159_v4 = vld [vmem:[%s9803_s22 + $0x438] sm:$0xff] }
 0xb7b   :  { %7245 = vmatprep.subr.mxu0 %v6105_v36  ;;  %v6070_v36 = vld [vmem:[%s9803_s22 + $0x170] sm:$0xff] }
 0xb7c   :  { %7246 = vmatpush3.msra.mxu0 %v6089_v35  ;;  %v6085_v35 = vld [vmem:[%s9803_s22 + $0x1e8] sm:$0xff] }
 0xb7d   :  { %7247 = vmatprep.subr.mxu0 %v6104_v29  ;;  %v6069_v29 = vld [vmem:[%s9803_s22 + $0x168] sm:$0xff] }
 0xb7e   :  { %7248 = vmatpush3.msra.mxu0 %v6088_v13  ;;  %v6084_v13 = vld [vmem:[%s9803_s22 + $0x1e0] sm:$0xff] }
 0xb7f   :  { %v7804_v45 = vpop.eup %7803  ;;  %6577 = vmatmul.mubr.f32.vlgmr.msra.gmra.mxu0 %v9288_v0  ;;  %7287 = vmatprep.subr.mxu0 %v6183_v44  ;;  %v6068_v44 = vld [vmem:[%s9803_s22 + $0x160] sm:$0xff] }
 0xb80   :  { %v7806_v22 = vpop.eup %7805  ;;  %7288 = vmatpush3.msra.mxu0 %v6167_v60  ;;  %6716 = vmatprep.mubr.f32.mxu0 %v6360_v61  ;;  %v5295_v27 = vmul.f32 %v7804_v45, %v5293_v43  ;;  %v6083_v60 = vld [vmem:[%s9803_s22 + $0x1d8] sm:$0xff]  ;;  %v6156_v61 = vld [vmem:[%s9803_s22 + $0x420] sm:$0xff]  ;;  %v6066_v45 = vld [vmem:[%s9803_s22 + $0x150] sm:$0xff] }
 0xb81   :  { %v5296_v0 = vmul.f32 %v7806_v22, %v5294_v59  ;;  %7289 = vmatprep.subr.mxu0 %v6182_v52  ;;  %v6067_v43 = vld [vmem:[%s9803_s22 + $0x158] sm:$0xff]  ;;  %v6170_v59 = vld [vmem:[%s9803_s22 + $0x490] sm:$0xff]  ;;  %v6169_v22 = vld [vmem:[%s9803_s22 + $0x488] sm:$0xff] }
 0xb82   :  { %v5303_v50 = vadd.f32 %v5301_v19, %v5295_v27  ;;  %7290 = vmatpush3.msra.mxu0 %v6166_v18  ;;  %v6155_v52 = vld [vmem:[%s9803_s22 + $0x418] sm:$0xff]  ;;  %v6065_v18 = vld [vmem:[%s9803_s22 + $0x148] sm:$0xff]  ;;  %v6080_v27 = vld [vmem:[%s9803_s22 + $0x1c0] sm:$0xff] }
 0xb83   :  { %v5304_v1 = vadd.f32 %v5302_v12, %v5296_v0  ;;  %7291 = vmatprep.subr.mxu0 %v6181_v42  ;;  %v6153_v19 = vld [vmem:[%s9803_s22 + $0x408] sm:$0xff]  ;;  %v6064_v42 = vld [vmem:[%s9803_s22 + $0x140] sm:$0xff]  ;;  %v6079_v0 = vld [vmem:[%s9803_s22 + $0x1b8] sm:$0xff] }
 0xb84   :  { %v5919_v39 = vrot.slane %v5303_v50, 2  ;;  %7292 = vmatpush3.msra.mxu0 %v6165_v10  ;;  %v6152_v12 = vld [vmem:[%s9803_s22 + $0x400] sm:$0xff]  ;;  %v6063_v10 = vld [vmem:[%s9803_s22 + $0x138] sm:$0xff]  ;;  %v6078_v50 = vld [vmem:[%s9803_s22 + $0x1b0] sm:$0xff] }
 0xb85   :  { %v5920_v5 = vrot.slane %v5304_v1, 1  ;;  %7293 = vmatprep.subr.mxu0 %v6180_v7  ;;  %v6077_v7 = vld [vmem:[%s9803_s22 + $0x1a8] sm:$0xff] }
 0xb86   :  { %7294 = vmatpush3.msra.mxu0 %v6164_v11  ;;  %v6061_v1 = vld [vmem:[%s9803_s22 + $0x128] sm:$0xff]  ;;  %v6076_v11 = vld [vmem:[%s9803_s22 + $0x1a0] sm:$0xff] }
 0xb87   :  { %v5921_v37 = vsel %vm5914_vm15, %v5920_v5, %v5919_v39  ;;  %7295 = vmatprep.subr.mxu0 %v6179_v23  ;;  %v6060_v39 = vld [vmem:[%s9803_s22 + $0x120] sm:$0xff]  ;;  %v6059_v23 = vld [vmem:[%s9803_s22 + $0x118] sm:$0xff]  ;;  %v6328_v5 = vcombine.high %v9276_v33, %v9276_v33 }
 0xb88   :  { %v6021_v24 = vadd.f32 %v6017_v26, %v5921_v37  ;;  %7296 = vmatpush3.msra.mxu0 %v6163_v31  ;;  %v6058_v31 = vld [vmem:[%s9803_s22 + $0x110] sm:$0xff]  ;;  %v6073_v26 = vld [vmem:[%s9803_s22 + $0x188] sm:$0xff]  ;;  %v6072_v33 = vld [vmem:[%s9803_s22 + $0x180] sm:$0xff] }
 0xb89   :  { %7297 = vmatprep.subr.mxu0 %v6178_v16  ;;  %v6057_v16 = vld [vmem:[%s9803_s22 + $0x108] sm:$0xff]  ;;  %v9601_v6 = vrot.slane %v6328_v5, %v8115_v57  ;;  %v6056_v37 = vld [vmem:[%s9803_s22 + $0x100] sm:$0xff] }
 0xb8a   :  { %v6023_v38 = vmax.f32 %v6021_v24, 0.0  ;;  %7298 = vmatpush3.msra.mxu0 %v6162_v17  ;;  %v6151_v17 = vld [vmem:[%s9803_s22 + $0x3f8] sm:$0xff] }
 0xb8b   :  { %7299 = vmatprep.subr.mxu0 %v6177_v14  ;;  %v6135_v24 = vld [vmem:[%s9803_s22 + $0x378] sm:$0xff]  ;;  %v6344_v14 = vcombine.high %v9601_v6, %v9601_v6 }
 0xb8c   :  { %7300 = vmatpush3.msra.mxu0 %v6161_v54  ;;  %v6235_v41 = vrot.slane %v6023_v38, 5  ;;  %v6134_v54 = vld [vmem:[%s9803_s22 + $0x370] sm:$0xff]  ;;  %v6149_v38 = vld [vmem:[%s9803_s22 + $0x3e8] sm:$0xff] }
 0xb8d   :  { %7301 = vmatprep.subr.mxu0 %v6176_v21  ;;  %v6133_v21 = vld [vmem:[%s9803_s22 + $0x368] sm:$0xff] }
 0xb8e   :  { %6302 = vmatprep.mubr.f32.mxu1 %v6235_v41  ;;  %7302 = vmatpush3.msra.mxu0 %v6160_v55  ;;  %v6132_v55 = vld [vmem:[%s9803_s22 + $0x360] sm:$0xff]  ;;  %v6147_v41 = vld [vmem:[%s9803_s22 + $0x3d8] sm:$0xff] }
 0xb8f   :  { %6303 = vmatmul.mubr.f32.vlgmr.msra.gmra.mxu1 %v6234_v48  ;;  %7303 = vmatprep.subr.mxu0 %v6175_v49  ;;  %v6131_v49 = vld [vmem:[%s9803_s22 + $0x358] sm:$0xff]  ;;  %v6146_v48 = vld [vmem:[%s9803_s22 + $0x3d0] sm:$0xff] }
 0xb90   :  { %7183 = vmatpush3.msra.mxu1 %v6071_v63  ;;  %6506 = vmatprep.mubr.f32.mxu1 %v6327_v47  ;;  %v6130_v63 = vld [vmem:[%s9803_s22 + $0x350] sm:$0xff]  ;;  %v6129_v47 = vld [vmem:[%s9803_s22 + $0x348] sm:$0xff] }
 0xb91   :  { %7184 = vmatprep.subr.mxu1 %v6086_v28  ;;  %7304 = vmatpush3.msra.mxu0 %v6159_v4  ;;  %v6145_v28 = vld [vmem:[%s9803_s22 + $0x3c8] sm:$0xff]  ;;  %v6144_v4 = vld [vmem:[%s9803_s22 + $0x3c0] sm:$0xff] }
 0xb92   :  { %7185 = vmatpush3.msra.mxu1 %v6070_v36  ;;  %7305 = vmatprep.subr.mxu0 %v6174_v25  ;;  %v6128_v36 = vld [vmem:[%s9803_s22 + $0x340] sm:$0xff]  ;;  %v6143_v25 = vld [vmem:[%s9803_s22 + $0x3b8] sm:$0xff] }
 0xb93   :  { %7186 = vmatprep.subr.mxu1 %v6085_v35  ;;  %7306 = vmatpush3.msra.mxu0 %v6158_v53  ;;  %v6127_v35 = vld [vmem:[%s9803_s22 + $0x338] sm:$0xff]  ;;  %v6142_v53 = vld [vmem:[%s9803_s22 + $0x3b0] sm:$0xff] }
 0xb94   :  { %7187 = vmatpush3.msra.mxu1 %v6069_v29  ;;  %7307 = vmatprep.subr.mxu0 %v6173_v40  ;;  %v6126_v29 = vld [vmem:[%s9803_s22 + $0x330] sm:$0xff]  ;;  %v6141_v40 = vld [vmem:[%s9803_s22 + $0x3a8] sm:$0xff] }
 0xb95   :  { %7188 = vmatprep.subr.mxu1 %v6084_v13  ;;  %7308 = vmatpush3.msra.mxu0 %v6157_v9  ;;  %v6125_v13 = vld [vmem:[%s9803_s22 + $0x328] sm:$0xff]  ;;  %v6140_v9 = vld [vmem:[%s9803_s22 + $0x3a0] sm:$0xff] }
 0xb96   :  { %7189 = vmatpush3.msra.mxu1 %v6068_v44  ;;  %7309 = vmatprep.subr.mxu0 %v6172_v20  ;;  %v6124_v44 = vld [vmem:[%s9803_s22 + $0x320] sm:$0xff]  ;;  %v6139_v20 = vld [vmem:[%s9803_s22 + $0x398] sm:$0xff] }
 0xb97   :  { %7190 = vmatprep.subr.mxu1 %v6083_v60  ;;  %7310 = vmatpush3.msra.mxu0 %v6156_v61  ;;  %v6123_v60 = vld [vmem:[%s9803_s22 + $0x318] sm:$0xff]  ;;  %v6138_v61 = vld [vmem:[%s9803_s22 + $0x390] sm:$0xff] }
 0xb98   :  { %7191 = vmatpush3.msra.mxu1 %v6067_v43  ;;  %7311 = vmatprep.subr.mxu0 %v6171_v8  ;;  %v6122_v43 = vld [vmem:[%s9803_s22 + $0x310] sm:$0xff]  ;;  %v6137_v8 = vld [vmem:[%s9803_s22 + $0x388] sm:$0xff] }
 0xb99   :  { %7192 = vmatprep.subr.mxu1 %v6082_v56  ;;  %7312 = vmatpush3.msra.mxu0 %v6155_v52  ;;  %v6121_v56 = vld [vmem:[%s9803_s22 + $0x308] sm:$0xff]  ;;  %v6136_v52 = vld [vmem:[%s9803_s22 + $0x380] sm:$0xff] }
 0xb9a   :  { %7193 = vmatpush3.msra.mxu1 %v6066_v45  ;;  %7313 = vmatprep.subr.mxu0 %v6170_v59  ;;  %v6120_v45 = vld [vmem:[%s9803_s22 + $0x300] sm:$0xff]  ;;  %v6199_v59 = vld [vmem:[%s9803_s22 + $0x578] sm:$0xff] }
 0xb9b   :  { %7194 = vmatprep.subr.mxu1 %v6081_v32  ;;  %7314 = vmatpush3.msra.mxu0 %v6154_v15  ;;  %v6198_v32 = vld [vmem:[%s9803_s22 + $0x570] sm:$0xff]  ;;  %v6197_v15 = vld [vmem:[%s9803_s22 + $0x568] sm:$0xff] }
 0xb9c   :  { %7195 = vmatpush3.msra.mxu1 %v6065_v18  ;;  %7315 = vmatprep.subr.mxu0 %v6169_v22  ;;  %v6196_v18 = vld [vmem:[%s9803_s22 + $0x560] sm:$0xff]  ;;  %v6195_v22 = vld [vmem:[%s9803_s22 + $0x558] sm:$0xff] }
 0xb9d   :  { %7196 = vmatprep.subr.mxu1 %v6080_v27  ;;  %7316 = vmatpush3.msra.mxu0 %v6153_v19  ;;  %v6194_v27 = vld [vmem:[%s9803_s22 + $0x550] sm:$0xff]  ;;  %v6193_v19 = vld [vmem:[%s9803_s22 + $0x548] sm:$0xff] }
 0xb9e   :  { %7197 = vmatpush3.msra.mxu1 %v6064_v42  ;;  %7317 = vmatprep.subr.mxu0 %v6168_v2  ;;  %v6192_v42 = vld [vmem:[%s9803_s22 + $0x540] sm:$0xff]  ;;  %v6191_v2 = vld [vmem:[%s9803_s22 + $0x538] sm:$0xff] }
 0xb9f   :  { %7198 = vmatprep.subr.mxu1 %v6079_v0  ;;  %7318 = vmatpush3.msra.mxu0 %v6152_v12  ;;  %v6190_v0 = vld [vmem:[%s9803_s22 + $0x530] sm:$0xff]  ;;  %v6189_v12 = vld [vmem:[%s9803_s22 + $0x528] sm:$0xff] }
 0xba0   :  { %7199 = vmatpush3.msra.mxu1 %v6063_v10  ;;  %6717 = vmatmul.mubr.f32.vlgmr.msra.gmra.mxu0 %v9391_v62  ;;  %v6075_v62 = vld [vmem:[%s9803_s22 + $0x198] sm:$0xff]  ;;  %v6188_v10 = vld [vmem:[%s9803_s22 + $0x520] sm:$0xff] }
 0xba1   :  { %7200 = vmatprep.subr.mxu1 %v6078_v50  ;;  %v6187_v50 = vld [vmem:[%s9803_s22 + $0x518] sm:$0xff] }
 0xba2   :  { %7201 = vmatpush3.msra.mxu1 %v6062_v58  ;;  %v6186_v58 = vld [vmem:[%s9803_s22 + $0x510] sm:$0xff] }
 0xba3   :  { %7202 = vmatprep.subr.mxu1 %v6077_v7  ;;  %v6345_v7 = vcombine.high %v9368_v34, %v9368_v34 }
 0xba4   :  { %7203 = vmatpush3.msra.mxu1 %v6061_v1  ;;  %v6185_v1 = vld [vmem:[%s9803_s22 + $0x508] sm:$0xff] }
 0xba5   :  { %7204 = vmatprep.subr.mxu1 %v6076_v11  ;;  %v6184_v11 = vld [vmem:[%s9803_s22 + $0x500] sm:$0xff] }
 0xba6   :  { %7205 = vmatpush3.msra.mxu1 %v6060_v39  ;;  %v6359_v39 = vrot.slane %v6345_v7, %v8115_v57 }
 0xba7   :  { %7206 = vmatprep.subr.mxu1 %v6075_v62 }
 0xba8   :  { %7207 = vmatpush3.msra.mxu1 %v6059_v23 }
 0xba9   :  { %7208 = vmatprep.subr.mxu1 %v6074_v51 }
 0xbaa   :  { %7209 = vmatpush3.msra.mxu1 %v6058_v31 }
 0xbab   :  { %7210 = vmatprep.subr.mxu1 %v6073_v26 }
 0xbac   :  { %7211 = vmatpush3.msra.mxu1 %v6057_v16 }
 0xbad   :  { %7212 = vmatprep.subr.mxu1 %v6072_v33 }
 0xbae   :  { %7213 = vmatpush3.msra.mxu1 %v6056_v37 }
 0xbaf   :  { %6507 = vmatmul.mubr.f32.vlgmr.msra.gmra.mxu1 %v9452_v46  ;;  %7252 = vmatprep.subr.mxu1 %v6151_v17  ;;  %v6148_v46 = vld [vmem:[%s9803_s22 + $0x3e0] sm:$0xff] }
 0xbb0   :  { %7253 = vmatpush3.msra.mxu1 %v6135_v24  ;;  %6646 = vmatprep.mubr.f32.mxu1 %v6344_v14 }
 0xbb1   :  { %7254 = vmatprep.subr.mxu1 %v6150_v30 }
 0xbb2   :  { %7255 = vmatpush3.msra.mxu1 %v6134_v54 }
 0xbb3   :  { %7256 = vmatprep.subr.mxu1 %v6149_v38 }
 0xbb4   :  { %7257 = vmatpush3.msra.mxu1 %v6133_v21 }
 0xbb5   :  { %7258 = vmatprep.subr.mxu1 %v6148_v46 }
 0xbb6   :  { %7259 = vmatpush3.msra.mxu1 %v6132_v55 }
 0xbb7   :  { %7260 = vmatprep.subr.mxu1 %v6147_v41 }
 0xbb8   :  { %7261 = vmatpush3.msra.mxu1 %v6131_v49 }
 0xbb9   :  { %7262 = vmatprep.subr.mxu1 %v6146_v48  ;;  %v7051_v48 = vld [vmem:[%s9805_s24] ss:$0 sm:$0xff] }
 0xbba   :  { %7263 = vmatpush3.msra.mxu1 %v6130_v63 }
 0xbbb   :  { %7264 = vmatprep.subr.mxu1 %v6145_v28 }
 0xbbc   :  { %7265 = vmatpush3.msra.mxu1 %v6129_v47 }
 0xbbd   :  { %7266 = vmatprep.subr.mxu1 %v6144_v4 }
 0xbbe   :  { %7267 = vmatpush3.msra.mxu1 %v6128_v36 }
 0xbbf   :  { %7268 = vmatprep.subr.mxu1 %v6143_v25 }
 0xbc0   :  { %7269 = vmatpush3.msra.mxu1 %v6127_v35 }
 0xbc1   :  { %7270 = vmatprep.subr.mxu1 %v6142_v53 }
 0xbc2   :  { %7271 = vmatpush3.msra.mxu1 %v6126_v29 }
 0xbc3   :  { %7272 = vmatprep.subr.mxu1 %v6141_v40 }
 0xbc4   :  { %7273 = vmatpush3.msra.mxu1 %v6125_v13 }
 0xbc5   :  { %7274 = vmatprep.subr.mxu1 %v6140_v9 }
 0xbc6   :  { %7275 = vmatpush3.msra.mxu1 %v6124_v44 }
 0xbc7   :  { %7276 = vmatprep.subr.mxu1 %v6139_v20 }
 0xbc8   :  { %7277 = vmatpush3.msra.mxu1 %v6123_v60 }
 0xbc9   :  { %7278 = vmatprep.subr.mxu1 %v6138_v61 }
 0xbca   :  { %7279 = vmatpush3.msra.mxu1 %v6122_v43 }
 0xbcb   :  { %7280 = vmatprep.subr.mxu1 %v6137_v8 }
 0xbcc   :  { %7281 = vmatpush3.msra.mxu1 %v6121_v56 }
 0xbcd   :  { %7282 = vmatprep.subr.mxu1 %v6136_v52 }
 0xbce   :  { %7283 = vmatpush3.msra.mxu1 %v6120_v45 }
 0xbcf   :  { %6647 = vmatmul.mubr.f32.vlgmr.msra.gmra.mxu1 %v9601_v6  ;;  %7482 = vmatprep.subr.mxu1 %v7844_v3 }
 0xbd0   :  { %7483 = vmatpush3.msra.mxu1 %v6199_v59  ;;  %7514 = vmatprep.mubr.msk.f32.mxu1 %vm7845_vm2, %v7844_v3 }
 0xbd1   :  { %7484 = vmatprep.subr.mxu1 %v7844_v3 }
 0xbd2   :  { %7485 = vmatpush3.msra.mxu1 %v6198_v32 }
 0xbd3   :  { %7486 = vmatprep.subr.mxu1 %v7844_v3 }
 0xbd4   :  { %7487 = vmatpush3.msra.mxu1 %v6197_v15 }
 0xbd5   :  { %7488 = vmatprep.subr.mxu1 %v7844_v3 }
 0xbd6   :  { %7489 = vmatpush3.msra.mxu1 %v6196_v18 }
 0xbd7   :  { %7490 = vmatprep.subr.mxu1 %v7844_v3 }
 0xbd8   :  { %7491 = vmatpush3.msra.mxu1 %v6195_v22 }
 0xbd9   :  { %7492 = vmatprep.subr.mxu1 %v7844_v3 }
 0xbda   :  { %7493 = vmatpush3.msra.mxu1 %v6194_v27 }
 0xbdb   :  { %7494 = vmatprep.subr.mxu1 %v7844_v3 }
 0xbdc   :  { %7495 = vmatpush3.msra.mxu1 %v6193_v19 }
 0xbdd   :  { %7496 = vmatprep.subr.mxu1 %v7844_v3 }
 0xbde   :  { %7497 = vmatpush3.msra.mxu1 %v6192_v42 }
 0xbdf   :  { %7498 = vmatprep.subr.mxu1 %v7844_v3 }
 0xbe0   :  { %7499 = vmatpush3.msra.mxu1 %v6191_v2 }
 0xbe1   :  { %7500 = vmatprep.subr.mxu1 %v7844_v3 }
 0xbe2   :  { %7501 = vmatpush3.msra.mxu1 %v6190_v0 }
 0xbe3   :  { %7502 = vmatprep.subr.mxu1 %v7844_v3 }
 0xbe4   :  { %7503 = vmatpush3.msra.mxu1 %v6189_v12 }
 0xbe5   :  { %7504 = vmatprep.subr.mxu1 %v7844_v3 }
 0xbe6   :  { %7505 = vmatpush3.msra.mxu1 %v6188_v10 }
 0xbe7   :  { %7506 = vmatprep.subr.mxu1 %v7844_v3 }
 0xbe8   :  { %7507 = vmatpush3.msra.mxu1 %v6187_v50 }
 0xbe9   :  { %7508 = vmatprep.subr.mxu1 %v7844_v3 }
 0xbea   :  { %7509 = vmatpush3.msra.mxu1 %v6186_v58 }
 0xbeb   :  { %7510 = vmatprep.subr.mxu1 %v7844_v3 }
 0xbec   :  { %7511 = vmatpush3.msra.mxu1 %v6185_v1 }
 0xbed   :  { %7512 = vmatprep.subr.mxu1 %v7844_v3 }
 0xbee   :  { %7513 = vmatpush3.msra.mxu1 %v6184_v11 }
 0xbef   :  { %7515 = vmatmul.mubr.f32.vlgmr.msra.gmra.mxu1 %v6359_v39 }
 0xc1f   :  { %v7179_v23 = vpop.f32.mrf.mxu0 }
 0xc21   :  { %v7180_v5 = vpop.f32.mrf.mxu0 }
 0xc22   :  { %v7181_v6 = vadd.f32 %v7180_v5, %v7179_v23 }
 0xc3f   :  { %v7249_v16 = vpop.f32.mrf.mxu0 }
 0xc41   :  { %v7250_v24 = vpop.f32.mrf.mxu0 }
 0xc42   :  { %v7251_v54 = vadd.f32 %v7250_v24, %v7249_v16 }
 0xc4f   :  { %v7144_v34 = vpop.f32.mrf.mxu1 }
 0xc51   :  { %v7145_v62 = vpop.f32.mrf.mxu1 }
 0xc52   :  { %v7146_v26 = vadd.f32 %v7145_v62, %v7144_v34 }
 0xc54   :  { %v6439_v17 = vadd.f32 %v7181_v6, %v7146_v26 }
 0xc60   :  { %v7319_v3 = vpop.f32.mrf.mxu0 }
 0xc62   :  { %v7320_v21 = vpop.f32.mrf.mxu0 }
 0xc63   :  { %v7321_v55 = vadd.f32 %v7320_v21, %v7319_v3 }
 0xc6f   :  { %v7214_v51 = vpop.f32.mrf.mxu1 }
 0xc71   :  { %v7215_v31 = vpop.f32.mrf.mxu1 }
 0xc72   :  { %v7216_v37 = vadd.f32 %v7215_v31, %v7214_v51 }
 0xc74   :  { %v6509_v30 = vadd.f32 %v7216_v37, %v6439_v17 }
 0xc76   :  { %v6579_v38 = vadd.f32 %v7251_v54, %v6509_v30 }
 0xc8f   :  { %v7284_v33 = vpop.f32.mrf.mxu1 }
 0xc91   :  { %v7285_v14 = vpop.f32.mrf.mxu1 }
 0xc92   :  { %v7286_v57 = vadd.f32 %v7285_v14, %v7284_v33 }
 0xc94   :  { %v6649_v46 = vadd.f32 %v7286_v57, %v6579_v38 }
 0xc96   :  { %v6719_v41 = vadd.f32 %v7321_v55, %v6649_v46 }
 0xcaf   :  { %v6788_v49 = vpop.f32.mrf.mxu1 }
 0xcb0   :  { %v6789_v63 = vadd.f32 %v6788_v49, %v6719_v41 }
 0xcb1   :  { %v7516_v28 = vpop.f32.mrf.mxu1 }
 0xcb2   :  { %v6799_v47 = vadd.f32 %v7051_v48, %v6789_v63 }
 0xcb4   :  { %6801 = vst.msk [vmem:[#allocation6] sm:$0x3] %vm6800_vm1, %v6799_v47 }
 0xcb5   :  { %7833 = shalt.err (!%p7830_p4)
}
 0xcb6   :  { %6811 = dma.vmem_to_hbm [thread:$0]  %s6809_s9, 32, %s9806_s25, [#allocation7]  }
 0xcb7   :  { %7842 = dma.done.wait [#allocation7], 32  }
 0xcb8   :  { %7843 = vsyncadd [#allocation7], 4294967264 }
 0xcb9   :  { %6815 = vsyncpa [#allocation7], 1 }

</bundles_post_ra>
